<compile_context>
chip_gen: v5e
topology: v5e:2x2
jax: 0.10.0
libtpu: 0.0.40
codegen_flags: <defaults>
</compile_context>

<pallas_src>
import random

import numpy as np
import jax
import jax.numpy as jnp
from jax.experimental import pallas as pl
from jax.experimental.pallas import tpu as pltpu  # noqa: F401  (kept for TODO paths)

NEG_INF = -1e30  # finite stand-in for -inf (avoids NaN if a row were fully masked)


# ----------------------------------------------------------------------------
# Shared step math (used by the Pallas kernel and by the pure-JAX reference)
# ----------------------------------------------------------------------------
def _attend(ctx, target, bias, recip):
    """SoftDotAttention.  ctx:(B,S,E)  target:(B,E)=h@W_in  bias:(B,S) additive or None."""
    scores = jnp.sum(ctx * target[:, None, :], axis=-1)        # (B,S)  VPU mul + lane reduce
    if bias is not None:
        scores = scores + bias                                  # masked positions -> -1e30
    m = jnp.max(scores, axis=-1, keepdims=True)
    e = jnp.exp(scores - m)
    attn = e * recip(jnp.sum(e, axis=-1, keepdims=True))        # (B,S)
    return jnp.sum(attn[:, :, None] * ctx, axis=1)              # (B,E)  sublane reduce


def _lstm_cell(x, h, c, w_ih, w_hh, b):
    """Fused-gate LSTM cell.

    x:(B,in)  h,c:(B,H2)  w_ih:(in,4*H2)  w_hh:(H2,4*H2)  b:(1,4*H2) (= b_ih + b_hh)
    Gates stacked along the lane/output dim in nn.LSTM order: i, f, g, o.
    """
    H2 = h.shape[1]
    g = (jnp.dot(x, w_ih, preferred_element_type=jnp.float32)
         + jnp.dot(h, w_hh, preferred_element_type=jnp.float32) + b)    # (B, 4*H2)
    i = jax.nn.sigmoid(g[:, 0 * H2:1 * H2])
    f = jax.nn.sigmoid(g[:, 1 * H2:2 * H2])
    gg = jnp.tanh(g[:, 2 * H2:3 * H2])
    o = jax.nn.sigmoid(g[:, 3 * H2:4 * H2])
    c_new = f * c + i * gg
    h_new = o * jnp.tanh(c_new)
    return h_new, c_new


def _step_math(emb, h0, h1, c0, c1, src_ctx, vid_ctx, src_bias, p, recip):
    """One Decoder.onestep (dropout = identity, eval mode).

    The PyTorch attention query is last_hidden[0][0] = layer-0 hidden of the
    PREVIOUS step (h0 here).
    """
    E = emb.shape[1]
    # Both attention query projections in ONE matmul: w_att = [w_src | w_vid].
    tgt = jnp.dot(h0, p['w_att'], preferred_element_type=jnp.float32)    # (B, 2E)
    s_ctx = _attend(src_ctx, tgt[:, :E], src_bias, recip)
    v_ctx = _attend(vid_ctx, tgt[:, E:], None, recip)
    # Layer 0: [emb | src_ctx | vid_ctx] lane-concat + single fused-gate weight.
    x_cat = jnp.concatenate([emb, s_ctx, v_ctx], axis=1)                 # (B, 3E)
    h0n, c0n = _lstm_cell(x_cat, h0, c0, p['w_ih0'], p['w_hh0'], p['b0'])
    h1n, c1n = _lstm_cell(h0n, h1, c1, p['w_ih1'], p['w_hh1'], p['b1'])
    fc1 = jnp.tanh(jnp.dot(h1n, p['w_fc1'], preferred_element_type=jnp.float32)
                   + p['b_fc1'])
    logits = jnp.dot(fc1, p['w_fc2'], preferred_element_type=jnp.float32) + p['b_fc2']
    return logits, h0n, h1n, c0n, c1n


# ----------------------------------------------------------------------------
# Fused Pallas kernel: the whole decode loop inside one kernel invocation
# ----------------------------------------------------------------------------
def _decoder_kernel(trg_oh_ref, tf_ref, src_ref, vid_ref, bias_ref,
                    init_h_ref, init_c_ref, embed_ref,
                    w_att_ref, w_ih0_ref, w_hh0_ref, b0_ref,
                    w_ih1_ref, w_hh1_ref, b1_ref,
                    w_fc1_ref, b_fc1_ref, w_fc2_ref, b_fc2_ref,
                    out_ref):
    max_len, B, V_pad = out_ref.shape

    # ---- loop-invariant loads / constants, hoisted out of the recurrence ----
    src_ctx = src_ref[...]                     # (B, S,  E)
    vid_ctx = vid_ref[...]                     # (B, Sv, E)
    src_bias = bias_ref[...]                   # (B, S)   0 / -1e30 additive mask
    embed_tbl = embed_ref[...]                 # (V_pad, E)
    p = dict(w_att=w_att_ref[...],
             w_ih0=w_ih0_ref[...], w_hh0=w_hh0_ref[...], b0=b0_ref[...],
             w_ih1=w_ih1_ref[...], w_hh1=w_hh1_ref[...], b1=b1_ref[...],
             w_fc1=w_fc1_ref[...], b_fc1=b_fc1_ref[...],
             w_fc2=w_fc2_ref[...], b_fc2=b_fc2_ref[...])
    lane = jax.lax.broadcasted_iota(jnp.int32, (B, V_pad), 1)
    recip = lambda x: pl.reciprocal(x, approx=True)            # EUP slot

    out_ref[0] = jnp.zeros((B, V_pad), jnp.float32)            # outputs[:, 0, :] stays zero

    # Carried state lives in vregs across the (statically unrolled) time loop.
    tok_oh = trg_oh_ref[0]                                     # first input = trg[:, 0]
    h0 = init_h_ref[0]
    h1 = init_h_ref[1]
    c0 = init_c_ref[0]
    c1 = init_c_ref[1]

    # max_len is small; a static unroll keeps the whole recurrence visible to the
    # scheduler.  TODO(synk): switch to lax.fori_loop / @pl.loop for long max_len.
    for t in range(1, max_len):
        # Embedding lookup as one-hot @ table (single MXU issue, no gather).
        emb = jnp.dot(tok_oh, embed_tbl, preferred_element_type=jnp.float32)   # (B, E)

        logits, h0, h1, c0, c1 = _step_math(
            emb, h0, h1, c0, c1, src_ctx, vid_ctx, src_bias, p, recip)

        out_ref[t] = logits                                     # VMEM store; HBM write once

        # Next input token: teacher forcing (host-precomputed one-hot) or greedy
        # argmax.  First-index-of-max == torch .max(1)[1] / jnp.argmax semantics.
        maxv = jnp.max(logits, axis=1, keepdims=True)
        idx = jnp.min(jnp.where(logits == maxv, lane, V_pad), axis=1, keepdims=True)
        greedy_oh = (lane == idx).astype(jnp.float32)
        tok_oh = jnp.where(tf_ref[t] > 0.0, trg_oh_ref[t], greedy_oh)


# ----------------------------------------------------------------------------
# Decoder.forward drivers
# ----------------------------------------------------------------------------
def decoder_forward(params, embed_table, src, trg, init_h, init_c, src_out, vid_out,
                    max_len, tf_flags):
    """Fused-Pallas equivalent of Decoder.forward (eval-mode dropout)."""
    B, S = src.shape
    E = embed_table.shape[1]
    V = params['w_fc2'].shape[1]
    V_pad = ((V + 127) // 128) * 128            # lane-dense logits tile

    embed_pad = jnp.zeros((V_pad, E), jnp.float32).at[:V, :].set(embed_table)
    w_fc2_pad = jnp.zeros((E, V_pad), jnp.float32).at[:, :V].set(params['w_fc2'])
    # Pad-vocab columns get a hugely negative bias so greedy argmax never picks them.
    b_fc2_pad = jnp.full((1, V_pad), NEG_INF, jnp.float32).at[:, :V].set(params['b_fc2'])

    # Additive attention mask (src == 0 -> -1e30), teacher one-hots, tf flags.
    src_bias = jnp.where(src == 0, NEG_INF, 0.0).astype(jnp.float32)       # (B, S)
    trg_oh = jax.nn.one_hot(trg.T.astype(jnp.int32), V_pad, dtype=jnp.float32)  # (T, B, V_pad)
    tf = tf_flags.astype(jnp.float32).reshape(max_len, 1, 1)

    out = pl.pallas_call(
        _decoder_kernel,
        out_shape=jax.ShapeDtypeStruct((max_len, B, V_pad), jnp.float32),
    )(trg_oh, tf, src_out, vid_out, src_bias, init_h, init_c, embed_pad,
      params['w_att'], params['w_ih0'], params['w_hh0'], params['b0'],
      params['w_ih1'], params['w_hh1'], params['b1'],
      params['w_fc1'], params['b_fc1'], w_fc2_pad, b_fc2_pad)

    # (max_len, B, V_pad) -> (B, max_len, V)
    return jnp.transpose(out, (1, 0, 2))[:, :, :V]


def decoder_forward_ref(params, embed_table, src, trg, init_h, init_c, src_out, vid_out,
                        max_len, tf_flags):
    """Pure-JAX reference using the same math (no Pallas)."""
    B = trg.shape[0]
    V = params['w_fc2'].shape[1]
    src_bias = jnp.where(src == 0, NEG_INF, 0.0).astype(jnp.float32)
    outputs = jnp.zeros((B, max_len, V), jnp.float32)
    h0, h1 = init_h[0], init_h[1]
    c0, c1 = init_c[0], init_c[1]
    tokens = trg[:, 0]
    tf_host = np.asarray(tf_flags)
    recip = lambda x: 1.0 / x
    for t in range(1, max_len):
        emb = jnp.take(embed_table, tokens, axis=0)
        logits, h0, h1, c0, c1 = _step_math(emb, h0, h1, c0, c1,
                                            src_out, vid_out, src_bias, params, recip)
        outputs = outputs.at[:, t, :].set(logits)
        top1 = jnp.argmax(logits, axis=1)
        tokens = trg[:, t] if tf_host[t] else top1
    return outputs


# ----------------------------------------------------------------------------
if __name__ == "__main__":
    # Small shapes consistent with the module.
    B, S, Sv = 2, 8, 6          # batch, src seq len, video seq len
    E, H = 32, 16               # embed_size, hidden_size
    H2 = 2 * H                  # LSTM hidden (2 * hidden_size) -> 4*H2 = 128 lanes
    V = 64                      # vocab_size
    max_len = 6
    teacher_forcing_ratio = 1.0

    key = jax.random.PRNGKey(0)
    ks = jax.random.split(key, 24)
    s = 0.1

    # Weights stored pre-transposed, attention-query-fused and gate-fused:
    #   w_att           == [linear_in_src.weight.T | linear_in_vid.weight.T]      (H2, 2E)
    #   w_ih0[:, g*H2:(g+1)*H2] == weight_ih_l0[g*H2:(g+1)*H2, :].T   (3E, 4*H2), gate order i,f,g,o
    #   w_hh*[:, g*H2:(g+1)*H2] == weight_hh_l*[g*H2:(g+1)*H2, :].T   (H2, 4*H2)
    #   b*[:, g*H2:(g+1)*H2]    == (bias_ih_l* + bias_hh_l*)[g*H2:(g+1)*H2]
    embed_table = jax.random.normal(ks[0], (V, E), jnp.float32) * s
    params = {
        'w_att': jax.random.normal(ks[1], (H2, 2 * E), jnp.float32) * s,
        'w_ih0': jax.random.normal(ks[2], (3 * E, 4 * H2), jnp.float32) * s,
        'w_hh0': jax.random.normal(ks[3], (H2, 4 * H2), jnp.float32) * s,
        'b0': (jax.random.normal(ks[4], (1, 4 * H2), jnp.float32) * s
               + jax.random.normal(ks[5], (1, 4 * H2), jnp.float32) * s),
        'w_ih1': jax.random.normal(ks[6], (H2, 4 * H2), jnp.float32) * s,
        'w_hh1': jax.random.normal(ks[7], (H2, 4 * H2), jnp.float32) * s,
        'b1': (jax.random.normal(ks[8], (1, 4 * H2), jnp.float32) * s
               + jax.random.normal(ks[9], (1, 4 * H2), jnp.float32) * s),
        'w_fc1': jax.random.normal(ks[10], (H2, E), jnp.float32) * s,
        'b_fc1': jax.random.normal(ks[11], (1, E), jnp.float32) * s,
        'w_fc2': jax.random.normal(ks[12], (E, V), jnp.float32) * s,
        'b_fc2': jax.random.normal(ks[13], (1, V), jnp.float32) * s,
    }

    # Inputs.
    src = jax.random.randint(ks[17], (B, S), 0, V)             # zeros -> masked positions
    src = src.at[:, 0].set(1)                                  # >=1 unmasked per row
    trg = jax.random.randint(ks[18], (B, max_len), 1, V)
    src_out = jax.random.normal(ks[19], (B, S, E), jnp.float32)
    vid_out = jax.random.normal(ks[20], (B, Sv, E), jnp.float32)
    init_h = jax.random.normal(ks[21], (2, B, H2), jnp.float32) * s
    init_c = jax.random.normal(ks[22], (2, B, H2), jnp.float32) * s

    # Teacher-forcing decisions: drawn once on the host (mirrors the PyTorch
    # per-step random.random() calls) and shared by kernel + reference.
    # NOTE: with ratio=1.0 the greedy path is compiled & executed (vector select)
    # but its result is never chosen; validate with ratio<1 before relying on it.
    random.seed(0)
    tf_flags = jnp.array(
        [0] + [1 if random.random() < teacher_forcing_ratio else 0
               for _ in range(1, max_len)], dtype=jnp.int32)

    outputs = decoder_forward(params, embed_table, src, trg, init_h, init_c,
                              src_out, vid_out, max_len, tf_flags)
    outputs = jax.block_until_ready(outputs)

    outputs_ref = decoder_forward_ref(params, embed_table, src, trg, init_h, init_c,
                                      src_out, vid_out, max_len, tf_flags)
    outputs_ref = jax.block_until_ready(outputs_ref)

    assert bool(jnp.all(jnp.isfinite(outputs)))
    err = float(jnp.max(jnp.abs(outputs - outputs_ref)))
    assert bool(jnp.allclose(outputs, outputs_ref, rtol=1e-2, atol=1e-2)), err

    print("KERNEL_OK")
</pallas_src>

<mosaic_0001>
module attributes {stable_mosaic.version = 11 : i64} {
  func.func @_decoder_kernel(%arg0: memref<6x2x128xf32, #tpu.memory_space<vmem>>, %arg1: memref<6x1x1xf32, #tpu.memory_space<vmem>>, %arg2: memref<2x8x32xf32, #tpu.memory_space<vmem>>, %arg3: memref<2x6x32xf32, #tpu.memory_space<vmem>>, %arg4: memref<2x8xf32, #tpu.memory_space<vmem>>, %arg5: memref<2x2x32xf32, #tpu.memory_space<vmem>>, %arg6: memref<2x2x32xf32, #tpu.memory_space<vmem>>, %arg7: memref<128x32xf32, #tpu.memory_space<vmem>>, %arg8: memref<32x64xf32, #tpu.memory_space<vmem>>, %arg9: memref<96x128xf32, #tpu.memory_space<vmem>>, %arg10: memref<32x128xf32, #tpu.memory_space<vmem>>, %arg11: memref<1x128xf32, #tpu.memory_space<vmem>>, %arg12: memref<32x128xf32, #tpu.memory_space<vmem>>, %arg13: memref<32x128xf32, #tpu.memory_space<vmem>>, %arg14: memref<1x128xf32, #tpu.memory_space<vmem>>, %arg15: memref<32x32xf32, #tpu.memory_space<vmem>>, %arg16: memref<1x32xf32, #tpu.memory_space<vmem>>, %arg17: memref<32x128xf32, #tpu.memory_space<vmem>>, %arg18: memref<1x128xf32, #tpu.memory_space<vmem>>, %arg19: memref<6x2x128xf32, #tpu.memory_space<vmem>>) attributes {dimension_semantics = [], scalar_prefetch = 0 : i64, scratch_operands = 0 : i64, tpu.core_type = #tpu.core_type<tc>} {
    %c0 = arith.constant 0 : index
    %c0_0 = arith.constant 0 : index
    %c0_1 = arith.constant 0 : index
    %0 = vector.load %arg2[%c0, %c0_0, %c0_1] : memref<2x8x32xf32, #tpu.memory_space<vmem>>, vector<2x8x32xf32>
    %c0_2 = arith.constant 0 : index
    %c0_3 = arith.constant 0 : index
    %c0_4 = arith.constant 0 : index
    %1 = vector.load %arg3[%c0_2, %c0_3, %c0_4] : memref<2x6x32xf32, #tpu.memory_space<vmem>>, vector<2x6x32xf32>
    %c0_5 = arith.constant 0 : index
    %c0_6 = arith.constant 0 : index
    %2 = vector.load %arg4[%c0_5, %c0_6] : memref<2x8xf32, #tpu.memory_space<vmem>>, vector<2x8xf32>
    %c0_7 = arith.constant 0 : index
    %c0_8 = arith.constant 0 : index
    %3 = vector.load %arg7[%c0_7, %c0_8] : memref<128x32xf32, #tpu.memory_space<vmem>>, vector<128x32xf32>
    %c0_9 = arith.constant 0 : index
    %c0_10 = arith.constant 0 : index
    %4 = vector.load %arg8[%c0_9, %c0_10] : memref<32x64xf32, #tpu.memory_space<vmem>>, vector<32x64xf32>
    %c0_11 = arith.constant 0 : index
    %c0_12 = arith.constant 0 : index
    %5 = vector.load %arg9[%c0_11, %c0_12] : memref<96x128xf32, #tpu.memory_space<vmem>>, vector<96x128xf32>
    %c0_13 = arith.constant 0 : index
    %c0_14 = arith.constant 0 : index
    %6 = vector.load %arg10[%c0_13, %c0_14] : memref<32x128xf32, #tpu.memory_space<vmem>>, vector<32x128xf32>
    %c0_15 = arith.constant 0 : index
    %c0_16 = arith.constant 0 : index
    %7 = vector.load %arg11[%c0_15, %c0_16] : memref<1x128xf32, #tpu.memory_space<vmem>>, vector<1x128xf32>
    %c0_17 = arith.constant 0 : index
    %c0_18 = arith.constant 0 : index
    %8 = vector.load %arg12[%c0_17, %c0_18] : memref<32x128xf32, #tpu.memory_space<vmem>>, vector<32x128xf32>
    %c0_19 = arith.constant 0 : index
    %c0_20 = arith.constant 0 : index
    %9 = vector.load %arg13[%c0_19, %c0_20] : memref<32x128xf32, #tpu.memory_space<vmem>>, vector<32x128xf32>
    %c0_21 = arith.constant 0 : index
    %c0_22 = arith.constant 0 : index
    %10 = vector.load %arg14[%c0_21, %c0_22] : memref<1x128xf32, #tpu.memory_space<vmem>>, vector<1x128xf32>
    %c0_23 = arith.constant 0 : index
    %c0_24 = arith.constant 0 : index
    %11 = vector.load %arg15[%c0_23, %c0_24] : memref<32x32xf32, #tpu.memory_space<vmem>>, vector<32x32xf32>
    %c0_25 = arith.constant 0 : index
    %c0_26 = arith.constant 0 : index
    %12 = vector.load %arg16[%c0_25, %c0_26] : memref<1x32xf32, #tpu.memory_space<vmem>>, vector<1x32xf32>
    %c0_27 = arith.constant 0 : index
    %c0_28 = arith.constant 0 : index
    %13 = vector.load %arg17[%c0_27, %c0_28] : memref<32x128xf32, #tpu.memory_space<vmem>>, vector<32x128xf32>
    %c0_29 = arith.constant 0 : index
    %c0_30 = arith.constant 0 : index
    %14 = vector.load %arg18[%c0_29, %c0_30] : memref<1x128xf32, #tpu.memory_space<vmem>>, vector<1x128xf32>
    %15 = tpu.iota {dimensions = array<i32: 1>} : vector<2x128xi32>
    %cst = arith.constant 0.000000e+00 : f32
    %16 = vector.broadcast %cst : f32 to vector<2x128xf32>
    %c0_31 = arith.constant 0 : index
    %c0_32 = arith.constant 0 : index
    %c0_33 = arith.constant 0 : index
    %17 = vector.load %arg19[%c0_31, %c0_32, %c0_33] : memref<6x2x128xf32, #tpu.memory_space<vmem>>, vector<1x2x128xf32>
    %18 = vector.shape_cast %17 : vector<1x2x128xf32> to vector<2x128xf32>
    %19 = vector.shape_cast %16 : vector<2x128xf32> to vector<1x2x128xf32>
    tpu.vector_store %arg19[%c0_31, %c0_32, %c0_33], %19 {strides = array<i32>} : memref<6x2x128xf32, #tpu.memory_space<vmem>>, vector<1x2x128xf32>,
    %c0_34 = arith.constant 0 : index
    %c0_35 = arith.constant 0 : index
    %c0_36 = arith.constant 0 : index
    %20 = vector.load %arg0[%c0_34, %c0_35, %c0_36] : memref<6x2x128xf32, #tpu.memory_space<vmem>>, vector<1x2x128xf32>
    %21 = vector.shape_cast %20 : vector<1x2x128xf32> to vector<2x128xf32>
    %c0_37 = arith.constant 0 : index
    %c0_38 = arith.constant 0 : index
    %c0_39 = arith.constant 0 : index
    %22 = vector.load %arg5[%c0_37, %c0_38, %c0_39] : memref<2x2x32xf32, #tpu.memory_space<vmem>>, vector<1x2x32xf32>
    %23 = vector.shape_cast %22 : vector<1x2x32xf32> to vector<2x32xf32>
    %c1 = arith.constant 1 : index
    %c0_40 = arith.constant 0 : index
    %c0_41 = arith.constant 0 : index
    %24 = vector.load %arg5[%c1, %c0_40, %c0_41] : memref<2x2x32xf32, #tpu.memory_space<vmem>>, vector<1x2x32xf32>
    %25 = vector.shape_cast %24 : vector<1x2x32xf32> to vector<2x32xf32>
    %c0_42 = arith.constant 0 : index
    %c0_43 = arith.constant 0 : index
    %c0_44 = arith.constant 0 : index
    %26 = vector.load %arg6[%c0_42, %c0_43, %c0_44] : memref<2x2x32xf32, #tpu.memory_space<vmem>>, vector<1x2x32xf32>
    %27 = vector.shape_cast %26 : vector<1x2x32xf32> to vector<2x32xf32>
    %c1_45 = arith.constant 1 : index
    %c0_46 = arith.constant 0 : index
    %c0_47 = arith.constant 0 : index
    %28 = vector.load %arg6[%c1_45, %c0_46, %c0_47] : memref<2x2x32xf32, #tpu.memory_space<vmem>>, vector<1x2x32xf32>
    %29 = vector.shape_cast %28 : vector<1x2x32xf32> to vector<2x32xf32>
    %cst_48 = arith.constant dense<0.000000e+00> : vector<2x32xf32>
    %30 = tpu.matmul %21, %3, %cst_48 {dimension_numbers = #tpu.dot_dimension_numbers<[1], [0], [0], [1], [0, 0, 1, 1], [], []>} : vector<2x128xf32>, vector<128x32xf32>, vector<2x32xf32> -> vector<2x32xf32>
    %cst_49 = arith.constant dense<0.000000e+00> : vector<2x64xf32>
    %31 = tpu.matmul %23, %4, %cst_49 {dimension_numbers = #tpu.dot_dimension_numbers<[1], [0], [0], [1], [0, 0, 1, 1], [], []>} : vector<2x32xf32>, vector<32x64xf32>, vector<2x64xf32> -> vector<2x64xf32>
    %32 = vector.extract_strided_slice %31 {offsets = [0, 0], sizes = [2, 32], strides = [1, 1]} : vector<2x64xf32> to vector<2x32xf32>
    %33 = vector.shape_cast %32 : vector<2x32xf32> to vector<2x1x32xf32>
    %34 = vector.broadcast %33 : vector<2x1x32xf32> to vector<2x8x32xf32>
    %35 = arith.mulf %0, %34 : vector<2x8x32xf32>
    %cst_50 = arith.constant dense<0.000000e+00> : vector<2x8xf32>
    %36 = vector.multi_reduction <add>, %35, %cst_50 [2] : vector<2x8x32xf32> to vector<2x8xf32>
    %37 = arith.addf %36, %2 : vector<2x8xf32>
    %cst_51 = arith.constant dense<0xFF800000> : vector<2xf32>
    %38 = vector.multi_reduction <maximumf>, %37, %cst_51 [1] : vector<2x8xf32> to vector<2xf32>
    %39 = vector.shape_cast %38 : vector<2xf32> to vector<2x1xf32>
    %40 = vector.broadcast %39 : vector<2x1xf32> to vector<2x8xf32>
    %41 = arith.subf %37, %40 : vector<2x8xf32>
    %42 = math.exp %41 : vector<2x8xf32>
    %cst_52 = arith.constant dense<0.000000e+00> : vector<2xf32>
    %43 = vector.multi_reduction <add>, %42, %cst_52 [1] : vector<2x8xf32> to vector<2xf32>
    %44 = vector.shape_cast %43 : vector<2xf32> to vector<2x1xf32>
    %45 = tpu.reciprocal %44 {approx = true} : vector<2x1xf32> -> vector<2x1xf32>
    %46 = vector.broadcast %45 : vector<2x1xf32> to vector<2x8xf32>
    %47 = arith.mulf %42, %46 : vector<2x8xf32>
    %48 = vector.shape_cast %47 : vector<2x8xf32> to vector<2x8x1xf32>
    %49 = vector.broadcast %48 : vector<2x8x1xf32> to vector<2x8x32xf32>
    %50 = arith.mulf %49, %0 : vector<2x8x32xf32>
    %cst_53 = arith.constant dense<0.000000e+00> : vector<2x32xf32>
    %51 = vector.multi_reduction <add>, %50, %cst_53 [1] : vector<2x8x32xf32> to vector<2x32xf32>
    %52 = vector.extract_strided_slice %31 {offsets = [0, 32], sizes = [2, 32], strides = [1, 1]} : vector<2x64xf32> to vector<2x32xf32>
    %53 = vector.shape_cast %52 : vector<2x32xf32> to vector<2x1x32xf32>
    %54 = vector.broadcast %53 : vector<2x1x32xf32> to vector<2x6x32xf32>
    %55 = arith.mulf %1, %54 : vector<2x6x32xf32>
    %cst_54 = arith.constant dense<0.000000e+00> : vector<2x6xf32>
    %56 = vector.multi_reduction <add>, %55, %cst_54 [2] : vector<2x6x32xf32> to vector<2x6xf32>
    %cst_55 = arith.constant dense<0xFF800000> : vector<2xf32>
    %57 = vector.multi_reduction <maximumf>, %56, %cst_55 [1] : vector<2x6xf32> to vector<2xf32>
    %58 = vector.shape_cast %57 : vector<2xf32> to vector<2x1xf32>
    %59 = vector.broadcast %58 : vector<2x1xf32> to vector<2x6xf32>
    %60 = arith.subf %56, %59 : vector<2x6xf32>
    %61 = math.exp %60 : vector<2x6xf32>
    %cst_56 = arith.constant dense<0.000000e+00> : vector<2xf32>
    %62 = vector.multi_reduction <add>, %61, %cst_56 [1] : vector<2x6xf32> to vector<2xf32>
    %63 = vector.shape_cast %62 : vector<2xf32> to vector<2x1xf32>
    %64 = tpu.reciprocal %63 {approx = true} : vector<2x1xf32> -> vector<2x1xf32>
    %65 = vector.broadcast %64 : vector<2x1xf32> to vector<2x6xf32>
    %66 = arith.mulf %61, %65 : vector<2x6xf32>
    %67 = vector.shape_cast %66 : vector<2x6xf32> to vector<2x6x1xf32>
    %68 = vector.broadcast %67 : vector<2x6x1xf32> to vector<2x6x32xf32>
    %69 = arith.mulf %68, %1 : vector<2x6x32xf32>
    %cst_57 = arith.constant dense<0.000000e+00> : vector<2x32xf32>
    %70 = vector.multi_reduction <add>, %69, %cst_57 [1] : vector<2x6x32xf32> to vector<2x32xf32>
    %71 = tpu.concatenate %30, %51, %70 in 1 : vector<2x32xf32>, vector<2x32xf32>, vector<2x32xf32> -> vector<2x96xf32>
    %cst_58 = arith.constant dense<0.000000e+00> : vector<2x128xf32>
    %72 = tpu.matmul %71, %5, %cst_58 {dimension_numbers = #tpu.dot_dimension_numbers<[1], [0], [0], [1], [0, 0, 1, 1], [], []>} : vector<2x96xf32>, vector<96x128xf32>, vector<2x128xf32> -> vector<2x128xf32>
    %cst_59 = arith.constant dense<0.000000e+00> : vector<2x128xf32>
    %73 = tpu.matmul %23, %6, %cst_59 {dimension_numbers = #tpu.dot_dimension_numbers<[1], [0], [0], [1], [0, 0, 1, 1], [], []>} : vector<2x32xf32>, vector<32x128xf32>, vector<2x128xf32> -> vector<2x128xf32>
    %74 = arith.addf %72, %73 : vector<2x128xf32>
    %75 = vector.broadcast %7 : vector<1x128xf32> to vector<2x128xf32>
    %76 = arith.addf %74, %75 : vector<2x128xf32>
    %77 = vector.extract_strided_slice %76 {offsets = [0, 0], sizes = [2, 32], strides = [1, 1]} : vector<2x128xf32> to vector<2x32xf32>
    %78 = arith.negf %77 : vector<2x32xf32>
    %79 = math.exp %78 : vector<2x32xf32>
    %cst_60 = arith.constant 1.000000e+00 : f32
    %80 = vector.broadcast %cst_60 : f32 to vector<2x32xf32>
    %81 = arith.addf %80, %79 : vector<2x32xf32>
    %82 = arith.divf %80, %81 : vector<2x32xf32>
    %83 = vector.extract_strided_slice %76 {offsets = [0, 32], sizes = [2, 32], strides = [1, 1]} : vector<2x128xf32> to vector<2x32xf32>
    %84 = arith.negf %83 : vector<2x32xf32>
    %85 = math.exp %84 : vector<2x32xf32>
    %cst_61 = arith.constant 1.000000e+00 : f32
    %86 = vector.broadcast %cst_61 : f32 to vector<2x32xf32>
    %87 = arith.addf %86, %85 : vector<2x32xf32>
    %88 = arith.divf %86, %87 : vector<2x32xf32>
    %89 = vector.extract_strided_slice %76 {offsets = [0, 64], sizes = [2, 32], strides = [1, 1]} : vector<2x128xf32> to vector<2x32xf32>
    %90 = math.tanh %89 : vector<2x32xf32>
    %91 = vector.extract_strided_slice %76 {offsets = [0, 96], sizes = [2, 32], strides = [1, 1]} : vector<2x128xf32> to vector<2x32xf32>
    %92 = arith.negf %91 : vector<2x32xf32>
    %93 = math.exp %92 : vector<2x32xf32>
    %cst_62 = arith.constant 1.000000e+00 : f32
    %94 = vector.broadcast %cst_62 : f32 to vector<2x32xf32>
    %95 = arith.addf %94, %93 : vector<2x32xf32>
    %96 = arith.divf %94, %95 : vector<2x32xf32>
    %97 = arith.mulf %88, %27 : vector<2x32xf32>
    %98 = arith.mulf %82, %90 : vector<2x32xf32>
    %99 = arith.addf %97, %98 : vector<2x32xf32>
    %100 = math.tanh %99 : vector<2x32xf32>
    %101 = arith.mulf %96, %100 : vector<2x32xf32>
    %cst_63 = arith.constant dense<0.000000e+00> : vector<2x128xf32>
    %102 = tpu.matmul %101, %8, %cst_63 {dimension_numbers = #tpu.dot_dimension_numbers<[1], [0], [0], [1], [0, 0, 1, 1], [], []>} : vector<2x32xf32>, vector<32x128xf32>, vector<2x128xf32> -> vector<2x128xf32>
    %cst_64 = arith.constant dense<0.000000e+00> : vector<2x128xf32>
    %103 = tpu.matmul %25, %9, %cst_64 {dimension_numbers = #tpu.dot_dimension_numbers<[1], [0], [0], [1], [0, 0, 1, 1], [], []>} : vector<2x32xf32>, vector<32x128xf32>, vector<2x128xf32> -> vector<2x128xf32>
    %104 = arith.addf %102, %103 : vector<2x128xf32>
    %105 = vector.broadcast %10 : vector<1x128xf32> to vector<2x128xf32>
    %106 = arith.addf %104, %105 : vector<2x128xf32>
    %107 = vector.extract_strided_slice %106 {offsets = [0, 0], sizes = [2, 32], strides = [1, 1]} : vector<2x128xf32> to vector<2x32xf32>
    %108 = arith.negf %107 : vector<2x32xf32>
    %109 = math.exp %108 : vector<2x32xf32>
    %cst_65 = arith.constant 1.000000e+00 : f32
    %110 = vector.broadcast %cst_65 : f32 to vector<2x32xf32>
    %111 = arith.addf %110, %109 : vector<2x32xf32>
    %112 = arith.divf %110, %111 : vector<2x32xf32>
    %113 = vector.extract_strided_slice %106 {offsets = [0, 32], sizes = [2, 32], strides = [1, 1]} : vector<2x128xf32> to vector<2x32xf32>
    %114 = arith.negf %113 : vector<2x32xf32>
    %115 = math.exp %114 : vector<2x32xf32>
    %cst_66 = arith.constant 1.000000e+00 : f32
    %116 = vector.broadcast %cst_66 : f32 to vector<2x32xf32>
    %117 = arith.addf %116, %115 : vector<2x32xf32>
    %118 = arith.divf %116, %117 : vector<2x32xf32>
    %119 = vector.extract_strided_slice %106 {offsets = [0, 64], sizes = [2, 32], strides = [1, 1]} : vector<2x128xf32> to vector<2x32xf32>
    %120 = math.tanh %119 : vector<2x32xf32>
    %121 = vector.extract_strided_slice %106 {offsets = [0, 96], sizes = [2, 32], strides = [1, 1]} : vector<2x128xf32> to vector<2x32xf32>
    %122 = arith.negf %121 : vector<2x32xf32>
    %123 = math.exp %122 : vector<2x32xf32>
    %cst_67 = arith.constant 1.000000e+00 : f32
    %124 = vector.broadcast %cst_67 : f32 to vector<2x32xf32>
    %125 = arith.addf %124, %123 : vector<2x32xf32>
    %126 = arith.divf %124, %125 : vector<2x32xf32>
    %127 = arith.mulf %118, %29 : vector<2x32xf32>
    %128 = arith.mulf %112, %120 : vector<2x32xf32>
    %129 = arith.addf %127, %128 : vector<2x32xf32>
    %130 = math.tanh %129 : vector<2x32xf32>
    %131 = arith.mulf %126, %130 : vector<2x32xf32>
    %cst_68 = arith.constant dense<0.000000e+00> : vector<2x32xf32>
    %132 = tpu.matmul %131, %11, %cst_68 {dimension_numbers = #tpu.dot_dimension_numbers<[1], [0], [0], [1], [0, 0, 1, 1], [], []>} : vector<2x32xf32>, vector<32x32xf32>, vector<2x32xf32> -> vector<2x32xf32>
    %133 = vector.broadcast %12 : vector<1x32xf32> to vector<2x32xf32>
    %134 = arith.addf %132, %133 : vector<2x32xf32>
    %135 = math.tanh %134 : vector<2x32xf32>
    %cst_69 = arith.constant dense<0.000000e+00> : vector<2x128xf32>
    %136 = tpu.matmul %135, %13, %cst_69 {dimension_numbers = #tpu.dot_dimension_numbers<[1], [0], [0], [1], [0, 0, 1, 1], [], []>} : vector<2x32xf32>, vector<32x128xf32>, vector<2x128xf32> -> vector<2x128xf32>
    %137 = vector.broadcast %14 : vector<1x128xf32> to vector<2x128xf32>
    %138 = arith.addf %136, %137 : vector<2x128xf32>
    %c1_70 = arith.constant 1 : index
    %c0_71 = arith.constant 0 : index
    %c0_72 = arith.constant 0 : index
    %139 = vector.load %arg19[%c1_70, %c0_71, %c0_72] : memref<6x2x128xf32, #tpu.memory_space<vmem>>, vector<1x2x128xf32>
    %140 = vector.shape_cast %139 : vector<1x2x128xf32> to vector<2x128xf32>
    %141 = vector.shape_cast %138 : vector<2x128xf32> to vector<1x2x128xf32>
    tpu.vector_store %arg19[%c1_70, %c0_71, %c0_72], %141 {strides = array<i32>} : memref<6x2x128xf32, #tpu.memory_space<vmem>>, vector<1x2x128xf32>,
    %cst_73 = arith.constant dense<0xFF800000> : vector<2xf32>
    %142 = vector.multi_reduction <maximumf>, %138, %cst_73 [1] : vector<2x128xf32> to vector<2xf32>
    %143 = vector.shape_cast %142 : vector<2xf32> to vector<2x1xf32>
    %144 = vector.broadcast %143 : vector<2x1xf32> to vector<2x128xf32>
    %145 = arith.cmpf oeq, %138, %144 : vector<2x128xf32>
    %c128_i32 = arith.constant 128 : i32
    %146 = vector.broadcast %c128_i32 : i32 to vector<2x128xi32>
    %147 = arith.select %145, %15, %146 : vector<2x128xi1>, vector<2x128xi32>
    %cst_74 = arith.constant dense<2147483647> : vector<2xi32>
    %148 = vector.multi_reduction <minsi>, %147, %cst_74 [1] : vector<2x128xi32> to vector<2xi32>
    %149 = vector.shape_cast %148 : vector<2xi32> to vector<2x1xi32>
    %150 = vector.broadcast %149 : vector<2x1xi32> to vector<2x128xi32>
    %151 = arith.cmpi eq, %15, %150 : vector<2x128xi32>
    %152 = arith.extui %151 : vector<2x128xi1> to vector<2x128xi32>
    %153 = arith.sitofp %152 : vector<2x128xi32> to vector<2x128xf32>
    %c1_75 = arith.constant 1 : index
    %c0_76 = arith.constant 0 : index
    %c0_77 = arith.constant 0 : index
    %154 = vector.load %arg1[%c1_75, %c0_76, %c0_77] : memref<6x1x1xf32, #tpu.memory_space<vmem>>, vector<1x1x1xf32>
    %155 = vector.shape_cast %154 : vector<1x1x1xf32> to vector<1x1xf32>
    %cst_78 = arith.constant 0.000000e+00 : f32
    %156 = vector.broadcast %cst_78 : f32 to vector<1x1xf32>
    %157 = arith.cmpf ogt, %155, %156 : vector<1x1xf32>
    %c1_79 = arith.constant 1 : index
    %c0_80 = arith.constant 0 : index
    %c0_81 = arith.constant 0 : index
    %158 = vector.load %arg0[%c1_79, %c0_80, %c0_81] : memref<6x2x128xf32, #tpu.memory_space<vmem>>, vector<1x2x128xf32>
    %159 = vector.shape_cast %158 : vector<1x2x128xf32> to vector<2x128xf32>
    %160 = vector.shape_cast %157 : vector<1x1xi1> to vector<1x1xi1>
    %161 = vector.broadcast %160 : vector<1x1xi1> to vector<2x128xi1>
    %162 = arith.select %161, %159, %153 : vector<2x128xi1>, vector<2x128xf32>
    %cst_82 = arith.constant dense<0.000000e+00> : vector<2x32xf32>
    %163 = tpu.matmul %162, %3, %cst_82 {dimension_numbers = #tpu.dot_dimension_numbers<[1], [0], [0], [1], [0, 0, 1, 1], [], []>} : vector<2x128xf32>, vector<128x32xf32>, vector<2x32xf32> -> vector<2x32xf32>
    %cst_83 = arith.constant dense<0.000000e+00> : vector<2x64xf32>
    %164 = tpu.matmul %101, %4, %cst_83 {dimension_numbers = #tpu.dot_dimension_numbers<[1], [0], [0], [1], [0, 0, 1, 1], [], []>} : vector<2x32xf32>, vector<32x64xf32>, vector<2x64xf32> -> vector<2x64xf32>
    %165 = vector.extract_strided_slice %164 {offsets = [0, 0], sizes = [2, 32], strides = [1, 1]} : vector<2x64xf32> to vector<2x32xf32>
    %166 = vector.shape_cast %165 : vector<2x32xf32> to vector<2x1x32xf32>
    %167 = vector.broadcast %166 : vector<2x1x32xf32> to vector<2x8x32xf32>
    %168 = arith.mulf %0, %167 : vector<2x8x32xf32>
    %cst_84 = arith.constant dense<0.000000e+00> : vector<2x8xf32>
    %169 = vector.multi_reduction <add>, %168, %cst_84 [2] : vector<2x8x32xf32> to vector<2x8xf32>
    %170 = arith.addf %169, %2 : vector<2x8xf32>
    %cst_85 = arith.constant dense<0xFF800000> : vector<2xf32>
    %171 = vector.multi_reduction <maximumf>, %170, %cst_85 [1] : vector<2x8xf32> to vector<2xf32>
    %172 = vector.shape_cast %171 : vector<2xf32> to vector<2x1xf32>
    %173 = vector.broadcast %172 : vector<2x1xf32> to vector<2x8xf32>
    %174 = arith.subf %170, %173 : vector<2x8xf32>
    %175 = math.exp %174 : vector<2x8xf32>
    %cst_86 = arith.constant dense<0.000000e+00> : vector<2xf32>
    %176 = vector.multi_reduction <add>, %175, %cst_86 [1] : vector<2x8xf32> to vector<2xf32>
    %177 = vector.shape_cast %176 : vector<2xf32> to vector<2x1xf32>
    %178 = tpu.reciprocal %177 {approx = true} : vector<2x1xf32> -> vector<2x1xf32>
    %179 = vector.broadcast %178 : vector<2x1xf32> to vector<2x8xf32>
    %180 = arith.mulf %175, %179 : vector<2x8xf32>
    %181 = vector.shape_cast %180 : vector<2x8xf32> to vector<2x8x1xf32>
    %182 = vector.broadcast %181 : vector<2x8x1xf32> to vector<2x8x32xf32>
    %183 = arith.mulf %182, %0 : vector<2x8x32xf32>
    %cst_87 = arith.constant dense<0.000000e+00> : vector<2x32xf32>
    %184 = vector.multi_reduction <add>, %183, %cst_87 [1] : vector<2x8x32xf32> to vector<2x32xf32>
    %185 = vector.extract_strided_slice %164 {offsets = [0, 32], sizes = [2, 32], strides = [1, 1]} : vector<2x64xf32> to vector<2x32xf32>
    %186 = vector.shape_cast %185 : vector<2x32xf32> to vector<2x1x32xf32>
    %187 = vector.broadcast %186 : vector<2x1x32xf32> to vector<2x6x32xf32>
    %188 = arith.mulf %1, %187 : vector<2x6x32xf32>
    %cst_88 = arith.constant dense<0.000000e+00> : vector<2x6xf32>
    %189 = vector.multi_reduction <add>, %188, %cst_88 [2] : vector<2x6x32xf32> to vector<2x6xf32>
    %cst_89 = arith.constant dense<0xFF800000> : vector<2xf32>
    %190 = vector.multi_reduction <maximumf>, %189, %cst_89 [1] : vector<2x6xf32> to vector<2xf32>
    %191 = vector.shape_cast %190 : vector<2xf32> to vector<2x1xf32>
    %192 = vector.broadcast %191 : vector<2x1xf32> to vector<2x6xf32>
    %193 = arith.subf %189, %192 : vector<2x6xf32>
    %194 = math.exp %193 : vector<2x6xf32>
    %cst_90 = arith.constant dense<0.000000e+00> : vector<2xf32>
    %195 = vector.multi_reduction <add>, %194, %cst_90 [1] : vector<2x6xf32> to vector<2xf32>
    %196 = vector.shape_cast %195 : vector<2xf32> to vector<2x1xf32>
    %197 = tpu.reciprocal %196 {approx = true} : vector<2x1xf32> -> vector<2x1xf32>
    %198 = vector.broadcast %197 : vector<2x1xf32> to vector<2x6xf32>
    %199 = arith.mulf %194, %198 : vector<2x6xf32>
    %200 = vector.shape_cast %199 : vector<2x6xf32> to vector<2x6x1xf32>
    %201 = vector.broadcast %200 : vector<2x6x1xf32> to vector<2x6x32xf32>
    %202 = arith.mulf %201, %1 : vector<2x6x32xf32>
    %cst_91 = arith.constant dense<0.000000e+00> : vector<2x32xf32>
    %203 = vector.multi_reduction <add>, %202, %cst_91 [1] : vector<2x6x32xf32> to vector<2x32xf32>
    %204 = tpu.concatenate %163, %184, %203 in 1 : vector<2x32xf32>, vector<2x32xf32>, vector<2x32xf32> -> vector<2x96xf32>
    %cst_92 = arith.constant dense<0.000000e+00> : vector<2x128xf32>
    %205 = tpu.matmul %204, %5, %cst_92 {dimension_numbers = #tpu.dot_dimension_numbers<[1], [0], [0], [1], [0, 0, 1, 1], [], []>} : vector<2x96xf32>, vector<96x128xf32>, vector<2x128xf32> -> vector<2x128xf32>
    %cst_93 = arith.constant dense<0.000000e+00> : vector<2x128xf32>
    %206 = tpu.matmul %101, %6, %cst_93 {dimension_numbers = #tpu.dot_dimension_numbers<[1], [0], [0], [1], [0, 0, 1, 1], [], []>} : vector<2x32xf32>, vector<32x128xf32>, vector<2x128xf32> -> vector<2x128xf32>
    %207 = arith.addf %205, %206 : vector<2x128xf32>
    %208 = vector.broadcast %7 : vector<1x128xf32> to vector<2x128xf32>
    %209 = arith.addf %207, %208 : vector<2x128xf32>
    %210 = vector.extract_strided_slice %209 {offsets = [0, 0], sizes = [2, 32], strides = [1, 1]} : vector<2x128xf32> to vector<2x32xf32>
    %211 = arith.negf %210 : vector<2x32xf32>
    %212 = math.exp %211 : vector<2x32xf32>
    %cst_94 = arith.constant 1.000000e+00 : f32
    %213 = vector.broadcast %cst_94 : f32 to vector<2x32xf32>
    %214 = arith.addf %213, %212 : vector<2x32xf32>
    %215 = arith.divf %213, %214 : vector<2x32xf32>
    %216 = vector.extract_strided_slice %209 {offsets = [0, 32], sizes = [2, 32], strides = [1, 1]} : vector<2x128xf32> to vector<2x32xf32>
    %217 = arith.negf %216 : vector<2x32xf32>
    %218 = math.exp %217 : vector<2x32xf32>
    %cst_95 = arith.constant 1.000000e+00 : f32
    %219 = vector.broadcast %cst_95 : f32 to vector<2x32xf32>
    %220 = arith.addf %219, %218 : vector<2x32xf32>
    %221 = arith.divf %219, %220 : vector<2x32xf32>
    %222 = vector.extract_strided_slice %209 {offsets = [0, 64], sizes = [2, 32], strides = [1, 1]} : vector<2x128xf32> to vector<2x32xf32>
    %223 = math.tanh %222 : vector<2x32xf32>
    %224 = vector.extract_strided_slice %209 {offsets = [0, 96], sizes = [2, 32], strides = [1, 1]} : vector<2x128xf32> to vector<2x32xf32>
    %225 = arith.negf %224 : vector<2x32xf32>
    %226 = math.exp %225 : vector<2x32xf32>
    %cst_96 = arith.constant 1.000000e+00 : f32
    %227 = vector.broadcast %cst_96 : f32 to vector<2x32xf32>
    %228 = arith.addf %227, %226 : vector<2x32xf32>
    %229 = arith.divf %227, %228 : vector<2x32xf32>
    %230 = arith.mulf %221, %99 : vector<2x32xf32>
    %231 = arith.mulf %215, %223 : vector<2x32xf32>
    %232 = arith.addf %230, %231 : vector<2x32xf32>
    %233 = math.tanh %232 : vector<2x32xf32>
    %234 = arith.mulf %229, %233 : vector<2x32xf32>
    %cst_97 = arith.constant dense<0.000000e+00> : vector<2x128xf32>
    %235 = tpu.matmul %234, %8, %cst_97 {dimension_numbers = #tpu.dot_dimension_numbers<[1], [0], [0], [1], [0, 0, 1, 1], [], []>} : vector<2x32xf32>, vector<32x128xf32>, vector<2x128xf32> -> vector<2x128xf32>
    %cst_98 = arith.constant dense<0.000000e+00> : vector<2x128xf32>
    %236 = tpu.matmul %131, %9, %cst_98 {dimension_numbers = #tpu.dot_dimension_numbers<[1], [0], [0], [1], [0, 0, 1, 1], [], []>} : vector<2x32xf32>, vector<32x128xf32>, vector<2x128xf32> -> vector<2x128xf32>
    %237 = arith.addf %235, %236 : vector<2x128xf32>
    %238 = vector.broadcast %10 : vector<1x128xf32> to vector<2x128xf32>
    %239 = arith.addf %237, %238 : vector<2x128xf32>
    %240 = vector.extract_strided_slice %239 {offsets = [0, 0], sizes = [2, 32], strides = [1, 1]} : vector<2x128xf32> to vector<2x32xf32>
    %241 = arith.negf %240 : vector<2x32xf32>
    %242 = math.exp %241 : vector<2x32xf32>
    %cst_99 = arith.constant 1.000000e+00 : f32
    %243 = vector.broadcast %cst_99 : f32 to vector<2x32xf32>
    %244 = arith.addf %243, %242 : vector<2x32xf32>
    %245 = arith.divf %243, %244 : vector<2x32xf32>
    %246 = vector.extract_strided_slice %239 {offsets = [0, 32], sizes = [2, 32], strides = [1, 1]} : vector<2x128xf32> to vector<2x32xf32>
    %247 = arith.negf %246 : vector<2x32xf32>
    %248 = math.exp %247 : vector<2x32xf32>
    %cst_100 = arith.constant 1.000000e+00 : f32
    %249 = vector.broadcast %cst_100 : f32 to vector<2x32xf32>
    %250 = arith.addf %249, %248 : vector<2x32xf32>
    %251 = arith.divf %249, %250 : vector<2x32xf32>
    %252 = vector.extract_strided_slice %239 {offsets = [0, 64], sizes = [2, 32], strides = [1, 1]} : vector<2x128xf32> to vector<2x32xf32>
    %253 = math.tanh %252 : vector<2x32xf32>
    %254 = vector.extract_strided_slice %239 {offsets = [0, 96], sizes = [2, 32], strides = [1, 1]} : vector<2x128xf32> to vector<2x32xf32>
    %255 = arith.negf %254 : vector<2x32xf32>
    %256 = math.exp %255 : vector<2x32xf32>
    %cst_101 = arith.constant 1.000000e+00 : f32
    %257 = vector.broadcast %cst_101 : f32 to vector<2x32xf32>
    %258 = arith.addf %257, %256 : vector<2x32xf32>
    %259 = arith.divf %257, %258 : vector<2x32xf32>
    %260 = arith.mulf %251, %129 : vector<2x32xf32>
    %261 = arith.mulf %245, %253 : vector<2x32xf32>
    %262 = arith.addf %260, %261 : vector<2x32xf32>
    %263 = math.tanh %262 : vector<2x32xf32>
    %264 = arith.mulf %259, %263 : vector<2x32xf32>
    %cst_102 = arith.constant dense<0.000000e+00> : vector<2x32xf32>
    %265 = tpu.matmul %264, %11, %cst_102 {dimension_numbers = #tpu.dot_dimension_numbers<[1], [0], [0], [1], [0, 0, 1, 1], [], []>} : vector<2x32xf32>, vector<32x32xf32>, vector<2x32xf32> -> vector<2x32xf32>
    %266 = vector.broadcast %12 : vector<1x32xf32> to vector<2x32xf32>
    %267 = arith.addf %265, %266 : vector<2x32xf32>
    %268 = math.tanh %267 : vector<2x32xf32>
    %cst_103 = arith.constant dense<0.000000e+00> : vector<2x128xf32>
    %269 = tpu.matmul %268, %13, %cst_103 {dimension_numbers = #tpu.dot_dimension_numbers<[1], [0], [0], [1], [0, 0, 1, 1], [], []>} : vector<2x32xf32>, vector<32x128xf32>, vector<2x128xf32> -> vector<2x128xf32>
    %270 = vector.broadcast %14 : vector<1x128xf32> to vector<2x128xf32>
    %271 = arith.addf %269, %270 : vector<2x128xf32>
    %c2 = arith.constant 2 : index
    %c0_104 = arith.constant 0 : index
    %c0_105 = arith.constant 0 : index
    %272 = vector.load %arg19[%c2, %c0_104, %c0_105] : memref<6x2x128xf32, #tpu.memory_space<vmem>>, vector<1x2x128xf32>
    %273 = vector.shape_cast %272 : vector<1x2x128xf32> to vector<2x128xf32>
    %274 = vector.shape_cast %271 : vector<2x128xf32> to vector<1x2x128xf32>
    tpu.vector_store %arg19[%c2, %c0_104, %c0_105], %274 {strides = array<i32>} : memref<6x2x128xf32, #tpu.memory_space<vmem>>, vector<1x2x128xf32>,
    %cst_106 = arith.constant dense<0xFF800000> : vector<2xf32>
    %275 = vector.multi_reduction <maximumf>, %271, %cst_106 [1] : vector<2x128xf32> to vector<2xf32>
    %276 = vector.shape_cast %275 : vector<2xf32> to vector<2x1xf32>
    %277 = vector.broadcast %276 : vector<2x1xf32> to vector<2x128xf32>
    %278 = arith.cmpf oeq, %271, %277 : vector<2x128xf32>
    %c128_i32_107 = arith.constant 128 : i32
    %279 = vector.broadcast %c128_i32_107 : i32 to vector<2x128xi32>
    %280 = arith.select %278, %15, %279 : vector<2x128xi1>, vector<2x128xi32>
    %cst_108 = arith.constant dense<2147483647> : vector<2xi32>
    %281 = vector.multi_reduction <minsi>, %280, %cst_108 [1] : vector<2x128xi32> to vector<2xi32>
    %282 = vector.shape_cast %281 : vector<2xi32> to vector<2x1xi32>
    %283 = vector.broadcast %282 : vector<2x1xi32> to vector<2x128xi32>
    %284 = arith.cmpi eq, %15, %283 : vector<2x128xi32>
    %285 = arith.extui %284 : vector<2x128xi1> to vector<2x128xi32>
    %286 = arith.sitofp %285 : vector<2x128xi32> to vector<2x128xf32>
    %c2_109 = arith.constant 2 : index
    %c0_110 = arith.constant 0 : index
    %c0_111 = arith.constant 0 : index
    %287 = vector.load %arg1[%c2_109, %c0_110, %c0_111] : memref<6x1x1xf32, #tpu.memory_space<vmem>>, vector<1x1x1xf32>
    %288 = vector.shape_cast %287 : vector<1x1x1xf32> to vector<1x1xf32>
    %cst_112 = arith.constant 0.000000e+00 : f32
    %289 = vector.broadcast %cst_112 : f32 to vector<1x1xf32>
    %290 = arith.cmpf ogt, %288, %289 : vector<1x1xf32>
    %c2_113 = arith.constant 2 : index
    %c0_114 = arith.constant 0 : index
    %c0_115 = arith.constant 0 : index
    %291 = vector.load %arg0[%c2_113, %c0_114, %c0_115] : memref<6x2x128xf32, #tpu.memory_space<vmem>>, vector<1x2x128xf32>
    %292 = vector.shape_cast %291 : vector<1x2x128xf32> to vector<2x128xf32>
    %293 = vector.shape_cast %290 : vector<1x1xi1> to vector<1x1xi1>
    %294 = vector.broadcast %293 : vector<1x1xi1> to vector<2x128xi1>
    %295 = arith.select %294, %292, %286 : vector<2x128xi1>, vector<2x128xf32>
    %cst_116 = arith.constant dense<0.000000e+00> : vector<2x32xf32>
    %296 = tpu.matmul %295, %3, %cst_116 {dimension_numbers = #tpu.dot_dimension_numbers<[1], [0], [0], [1], [0, 0, 1, 1], [], []>} : vector<2x128xf32>, vector<128x32xf32>, vector<2x32xf32> -> vector<2x32xf32>
    %cst_117 = arith.constant dense<0.000000e+00> : vector<2x64xf32>
    %297 = tpu.matmul %234, %4, %cst_117 {dimension_numbers = #tpu.dot_dimension_numbers<[1], [0], [0], [1], [0, 0, 1, 1], [], []>} : vector<2x32xf32>, vector<32x64xf32>, vector<2x64xf32> -> vector<2x64xf32>
    %298 = vector.extract_strided_slice %297 {offsets = [0, 0], sizes = [2, 32], strides = [1, 1]} : vector<2x64xf32> to vector<2x32xf32>
    %299 = vector.shape_cast %298 : vector<2x32xf32> to vector<2x1x32xf32>
    %300 = vector.broadcast %299 : vector<2x1x32xf32> to vector<2x8x32xf32>
    %301 = arith.mulf %0, %300 : vector<2x8x32xf32>
    %cst_118 = arith.constant dense<0.000000e+00> : vector<2x8xf32>
    %302 = vector.multi_reduction <add>, %301, %cst_118 [2] : vector<2x8x32xf32> to vector<2x8xf32>
    %303 = arith.addf %302, %2 : vector<2x8xf32>
    %cst_119 = arith.constant dense<0xFF800000> : vector<2xf32>
    %304 = vector.multi_reduction <maximumf>, %303, %cst_119 [1] : vector<2x8xf32> to vector<2xf32>
    %305 = vector.shape_cast %304 : vector<2xf32> to vector<2x1xf32>
    %306 = vector.broadcast %305 : vector<2x1xf32> to vector<2x8xf32>
    %307 = arith.subf %303, %306 : vector<2x8xf32>
    %308 = math.exp %307 : vector<2x8xf32>
    %cst_120 = arith.constant dense<0.000000e+00> : vector<2xf32>
    %309 = vector.multi_reduction <add>, %308, %cst_120 [1] : vector<2x8xf32> to vector<2xf32>
    %310 = vector.shape_cast %309 : vector<2xf32> to vector<2x1xf32>
    %311 = tpu.reciprocal %310 {approx = true} : vector<2x1xf32> -> vector<2x1xf32>
    %312 = vector.broadcast %311 : vector<2x1xf32> to vector<2x8xf32>
    %313 = arith.mulf %308, %312 : vector<2x8xf32>
    %314 = vector.shape_cast %313 : vector<2x8xf32> to vector<2x8x1xf32>
    %315 = vector.broadcast %314 : vector<2x8x1xf32> to vector<2x8x32xf32>
    %316 = arith.mulf %315, %0 : vector<2x8x32xf32>
    %cst_121 = arith.constant dense<0.000000e+00> : vector<2x32xf32>
    %317 = vector.multi_reduction <add>, %316, %cst_121 [1] : vector<2x8x32xf32> to vector<2x32xf32>
    %318 = vector.extract_strided_slice %297 {offsets = [0, 32], sizes = [2, 32], strides = [1, 1]} : vector<2x64xf32> to vector<2x32xf32>
    %319 = vector.shape_cast %318 : vector<2x32xf32> to vector<2x1x32xf32>
    %320 = vector.broadcast %319 : vector<2x1x32xf32> to vector<2x6x32xf32>
    %321 = arith.mulf %1, %320 : vector<2x6x32xf32>
    %cst_122 = arith.constant dense<0.000000e+00> : vector<2x6xf32>
    %322 = vector.multi_reduction <add>, %321, %cst_122 [2] : vector<2x6x32xf32> to vector<2x6xf32>
    %cst_123 = arith.constant dense<0xFF800000> : vector<2xf32>
    %323 = vector.multi_reduction <maximumf>, %322, %cst_123 [1] : vector<2x6xf32> to vector<2xf32>
    %324 = vector.shape_cast %323 : vector<2xf32> to vector<2x1xf32>
    %325 = vector.broadcast %324 : vector<2x1xf32> to vector<2x6xf32>
    %326 = arith.subf %322, %325 : vector<2x6xf32>
    %327 = math.exp %326 : vector<2x6xf32>
    %cst_124 = arith.constant dense<0.000000e+00> : vector<2xf32>
    %328 = vector.multi_reduction <add>, %327, %cst_124 [1] : vector<2x6xf32> to vector<2xf32>
    %329 = vector.shape_cast %328 : vector<2xf32> to vector<2x1xf32>
    %330 = tpu.reciprocal %329 {approx = true} : vector<2x1xf32> -> vector<2x1xf32>
    %331 = vector.broadcast %330 : vector<2x1xf32> to vector<2x6xf32>
    %332 = arith.mulf %327, %331 : vector<2x6xf32>
    %333 = vector.shape_cast %332 : vector<2x6xf32> to vector<2x6x1xf32>
    %334 = vector.broadcast %333 : vector<2x6x1xf32> to vector<2x6x32xf32>
    %335 = arith.mulf %334, %1 : vector<2x6x32xf32>
    %cst_125 = arith.constant dense<0.000000e+00> : vector<2x32xf32>
    %336 = vector.multi_reduction <add>, %335, %cst_125 [1] : vector<2x6x32xf32> to vector<2x32xf32>
    %337 = tpu.concatenate %296, %317, %336 in 1 : vector<2x32xf32>, vector<2x32xf32>, vector<2x32xf32> -> vector<2x96xf32>
    %cst_126 = arith.constant dense<0.000000e+00> : vector<2x128xf32>
    %338 = tpu.matmul %337, %5, %cst_126 {dimension_numbers = #tpu.dot_dimension_numbers<[1], [0], [0], [1], [0, 0, 1, 1], [], []>} : vector<2x96xf32>, vector<96x128xf32>, vector<2x128xf32> -> vector<2x128xf32>
    %cst_127 = arith.constant dense<0.000000e+00> : vector<2x128xf32>
    %339 = tpu.matmul %234, %6, %cst_127 {dimension_numbers = #tpu.dot_dimension_numbers<[1], [0], [0], [1], [0, 0, 1, 1], [], []>} : vector<2x32xf32>, vector<32x128xf32>, vector<2x128xf32> -> vector<2x128xf32>
    %340 = arith.addf %338, %339 : vector<2x128xf32>
    %341 = vector.broadcast %7 : vector<1x128xf32> to vector<2x128xf32>
    %342 = arith.addf %340, %341 : vector<2x128xf32>
    %343 = vector.extract_strided_slice %342 {offsets = [0, 0], sizes = [2, 32], strides = [1, 1]} : vector<2x128xf32> to vector<2x32xf32>
    %344 = arith.negf %343 : vector<2x32xf32>
    %345 = math.exp %344 : vector<2x32xf32>
    %cst_128 = arith.constant 1.000000e+00 : f32
    %346 = vector.broadcast %cst_128 : f32 to vector<2x32xf32>
    %347 = arith.addf %346, %345 : vector<2x32xf32>
    %348 = arith.divf %346, %347 : vector<2x32xf32>
    %349 = vector.extract_strided_slice %342 {offsets = [0, 32], sizes = [2, 32], strides = [1, 1]} : vector<2x128xf32> to vector<2x32xf32>
    %350 = arith.negf %349 : vector<2x32xf32>
    %351 = math.exp %350 : vector<2x32xf32>
    %cst_129 = arith.constant 1.000000e+00 : f32
    %352 = vector.broadcast %cst_129 : f32 to vector<2x32xf32>
    %353 = arith.addf %352, %351 : vector<2x32xf32>
    %354 = arith.divf %352, %353 : vector<2x32xf32>
    %355 = vector.extract_strided_slice %342 {offsets = [0, 64], sizes = [2, 32], strides = [1, 1]} : vector<2x128xf32> to vector<2x32xf32>
    %356 = math.tanh %355 : vector<2x32xf32>
    %357 = vector.extract_strided_slice %342 {offsets = [0, 96], sizes = [2, 32], strides = [1, 1]} : vector<2x128xf32> to vector<2x32xf32>
    %358 = arith.negf %357 : vector<2x32xf32>
    %359 = math.exp %358 : vector<2x32xf32>
    %cst_130 = arith.constant 1.000000e+00 : f32
    %360 = vector.broadcast %cst_130 : f32 to vector<2x32xf32>
    %361 = arith.addf %360, %359 : vector<2x32xf32>
    %362 = arith.divf %360, %361 : vector<2x32xf32>
    %363 = arith.mulf %354, %232 : vector<2x32xf32>
    %364 = arith.mulf %348, %356 : vector<2x32xf32>
    %365 = arith.addf %363, %364 : vector<2x32xf32>
    %366 = math.tanh %365 : vector<2x32xf32>
    %367 = arith.mulf %362, %366 : vector<2x32xf32>
    %cst_131 = arith.constant dense<0.000000e+00> : vector<2x128xf32>
    %368 = tpu.matmul %367, %8, %cst_131 {dimension_numbers = #tpu.dot_dimension_numbers<[1], [0], [0], [1], [0, 0, 1, 1], [], []>} : vector<2x32xf32>, vector<32x128xf32>, vector<2x128xf32> -> vector<2x128xf32>
    %cst_132 = arith.constant dense<0.000000e+00> : vector<2x128xf32>
    %369 = tpu.matmul %264, %9, %cst_132 {dimension_numbers = #tpu.dot_dimension_numbers<[1], [0], [0], [1], [0, 0, 1, 1], [], []>} : vector<2x32xf32>, vector<32x128xf32>, vector<2x128xf32> -> vector<2x128xf32>
    %370 = arith.addf %368, %369 : vector<2x128xf32>
    %371 = vector.broadcast %10 : vector<1x128xf32> to vector<2x128xf32>
    %372 = arith.addf %370, %371 : vector<2x128xf32>
    %373 = vector.extract_strided_slice %372 {offsets = [0, 0], sizes = [2, 32], strides = [1, 1]} : vector<2x128xf32> to vector<2x32xf32>
    %374 = arith.negf %373 : vector<2x32xf32>
    %375 = math.exp %374 : vector<2x32xf32>
    %cst_133 = arith.constant 1.000000e+00 : f32
    %376 = vector.broadcast %cst_133 : f32 to vector<2x32xf32>
    %377 = arith.addf %376, %375 : vector<2x32xf32>
    %378 = arith.divf %376, %377 : vector<2x32xf32>
    %379 = vector.extract_strided_slice %372 {offsets = [0, 32], sizes = [2, 32], strides = [1, 1]} : vector<2x128xf32> to vector<2x32xf32>
    %380 = arith.negf %379 : vector<2x32xf32>
    %381 = math.exp %380 : vector<2x32xf32>
    %cst_134 = arith.constant 1.000000e+00 : f32
    %382 = vector.broadcast %cst_134 : f32 to vector<2x32xf32>
    %383 = arith.addf %382, %381 : vector<2x32xf32>
    %384 = arith.divf %382, %383 : vector<2x32xf32>
    %385 = vector.extract_strided_slice %372 {offsets = [0, 64], sizes = [2, 32], strides = [1, 1]} : vector<2x128xf32> to vector<2x32xf32>
    %386 = math.tanh %385 : vector<2x32xf32>
    %387 = vector.extract_strided_slice %372 {offsets = [0, 96], sizes = [2, 32], strides = [1, 1]} : vector<2x128xf32> to vector<2x32xf32>
    %388 = arith.negf %387 : vector<2x32xf32>
    %389 = math.exp %388 : vector<2x32xf32>
    %cst_135 = arith.constant 1.000000e+00 : f32
    %390 = vector.broadcast %cst_135 : f32 to vector<2x32xf32>
    %391 = arith.addf %390, %389 : vector<2x32xf32>
    %392 = arith.divf %390, %391 : vector<2x32xf32>
    %393 = arith.mulf %384, %262 : vector<2x32xf32>
    %394 = arith.mulf %378, %386 : vector<2x32xf32>
    %395 = arith.addf %393, %394 : vector<2x32xf32>
    %396 = math.tanh %395 : vector<2x32xf32>
    %397 = arith.mulf %392, %396 : vector<2x32xf32>
    %cst_136 = arith.constant dense<0.000000e+00> : vector<2x32xf32>
    %398 = tpu.matmul %397, %11, %cst_136 {dimension_numbers = #tpu.dot_dimension_numbers<[1], [0], [0], [1], [0, 0, 1, 1], [], []>} : vector<2x32xf32>, vector<32x32xf32>, vector<2x32xf32> -> vector<2x32xf32>
    %399 = vector.broadcast %12 : vector<1x32xf32> to vector<2x32xf32>
    %400 = arith.addf %398, %399 : vector<2x32xf32>
    %401 = math.tanh %400 : vector<2x32xf32>
    %cst_137 = arith.constant dense<0.000000e+00> : vector<2x128xf32>
    %402 = tpu.matmul %401, %13, %cst_137 {dimension_numbers = #tpu.dot_dimension_numbers<[1], [0], [0], [1], [0, 0, 1, 1], [], []>} : vector<2x32xf32>, vector<32x128xf32>, vector<2x128xf32> -> vector<2x128xf32>
    %403 = vector.broadcast %14 : vector<1x128xf32> to vector<2x128xf32>
    %404 = arith.addf %402, %403 : vector<2x128xf32>
    %c3 = arith.constant 3 : index
    %c0_138 = arith.constant 0 : index
    %c0_139 = arith.constant 0 : index
    %405 = vector.load %arg19[%c3, %c0_138, %c0_139] : memref<6x2x128xf32, #tpu.memory_space<vmem>>, vector<1x2x128xf32>
    %406 = vector.shape_cast %405 : vector<1x2x128xf32> to vector<2x128xf32>
    %407 = vector.shape_cast %404 : vector<2x128xf32> to vector<1x2x128xf32>
    tpu.vector_store %arg19[%c3, %c0_138, %c0_139], %407 {strides = array<i32>} : memref<6x2x128xf32, #tpu.memory_space<vmem>>, vector<1x2x128xf32>,
    %cst_140 = arith.constant dense<0xFF800000> : vector<2xf32>
    %408 = vector.multi_reduction <maximumf>, %404, %cst_140 [1] : vector<2x128xf32> to vector<2xf32>
    %409 = vector.shape_cast %408 : vector<2xf32> to vector<2x1xf32>
    %410 = vector.broadcast %409 : vector<2x1xf32> to vector<2x128xf32>
    %411 = arith.cmpf oeq, %404, %410 : vector<2x128xf32>
    %c128_i32_141 = arith.constant 128 : i32
    %412 = vector.broadcast %c128_i32_141 : i32 to vector<2x128xi32>
    %413 = arith.select %411, %15, %412 : vector<2x128xi1>, vector<2x128xi32>
    %cst_142 = arith.constant dense<2147483647> : vector<2xi32>
    %414 = vector.multi_reduction <minsi>, %413, %cst_142 [1] : vector<2x128xi32> to vector<2xi32>
    %415 = vector.shape_cast %414 : vector<2xi32> to vector<2x1xi32>
    %416 = vector.broadcast %415 : vector<2x1xi32> to vector<2x128xi32>
    %417 = arith.cmpi eq, %15, %416 : vector<2x128xi32>
    %418 = arith.extui %417 : vector<2x128xi1> to vector<2x128xi32>
    %419 = arith.sitofp %418 : vector<2x128xi32> to vector<2x128xf32>
    %c3_143 = arith.constant 3 : index
    %c0_144 = arith.constant 0 : index
    %c0_145 = arith.constant 0 : index
    %420 = vector.load %arg1[%c3_143, %c0_144, %c0_145] : memref<6x1x1xf32, #tpu.memory_space<vmem>>, vector<1x1x1xf32>
    %421 = vector.shape_cast %420 : vector<1x1x1xf32> to vector<1x1xf32>
    %cst_146 = arith.constant 0.000000e+00 : f32
    %422 = vector.broadcast %cst_146 : f32 to vector<1x1xf32>
    %423 = arith.cmpf ogt, %421, %422 : vector<1x1xf32>
    %c3_147 = arith.constant 3 : index
    %c0_148 = arith.constant 0 : index
    %c0_149 = arith.constant 0 : index
    %424 = vector.load %arg0[%c3_147, %c0_148, %c0_149] : memref<6x2x128xf32, #tpu.memory_space<vmem>>, vector<1x2x128xf32>
    %425 = vector.shape_cast %424 : vector<1x2x128xf32> to vector<2x128xf32>
    %426 = vector.shape_cast %423 : vector<1x1xi1> to vector<1x1xi1>
    %427 = vector.broadcast %426 : vector<1x1xi1> to vector<2x128xi1>
    %428 = arith.select %427, %425, %419 : vector<2x128xi1>, vector<2x128xf32>
    %cst_150 = arith.constant dense<0.000000e+00> : vector<2x32xf32>
    %429 = tpu.matmul %428, %3, %cst_150 {dimension_numbers = #tpu.dot_dimension_numbers<[1], [0], [0], [1], [0, 0, 1, 1], [], []>} : vector<2x128xf32>, vector<128x32xf32>, vector<2x32xf32> -> vector<2x32xf32>
    %cst_151 = arith.constant dense<0.000000e+00> : vector<2x64xf32>
    %430 = tpu.matmul %367, %4, %cst_151 {dimension_numbers = #tpu.dot_dimension_numbers<[1], [0], [0], [1], [0, 0, 1, 1], [], []>} : vector<2x32xf32>, vector<32x64xf32>, vector<2x64xf32> -> vector<2x64xf32>
    %431 = vector.extract_strided_slice %430 {offsets = [0, 0], sizes = [2, 32], strides = [1, 1]} : vector<2x64xf32> to vector<2x32xf32>
    %432 = vector.shape_cast %431 : vector<2x32xf32> to vector<2x1x32xf32>
    %433 = vector.broadcast %432 : vector<2x1x32xf32> to vector<2x8x32xf32>
    %434 = arith.mulf %0, %433 : vector<2x8x32xf32>
    %cst_152 = arith.constant dense<0.000000e+00> : vector<2x8xf32>
    %435 = vector.multi_reduction <add>, %434, %cst_152 [2] : vector<2x8x32xf32> to vector<2x8xf32>
    %436 = arith.addf %435, %2 : vector<2x8xf32>
    %cst_153 = arith.constant dense<0xFF800000> : vector<2xf32>
    %437 = vector.multi_reduction <maximumf>, %436, %cst_153 [1] : vector<2x8xf32> to vector<2xf32>
    %438 = vector.shape_cast %437 : vector<2xf32> to vector<2x1xf32>
    %439 = vector.broadcast %438 : vector<2x1xf32> to vector<2x8xf32>
    %440 = arith.subf %436, %439 : vector<2x8xf32>
    %441 = math.exp %440 : vector<2x8xf32>
    %cst_154 = arith.constant dense<0.000000e+00> : vector<2xf32>
    %442 = vector.multi_reduction <add>, %441, %cst_154 [1] : vector<2x8xf32> to vector<2xf32>
    %443 = vector.shape_cast %442 : vector<2xf32> to vector<2x1xf32>
    %444 = tpu.reciprocal %443 {approx = true} : vector<2x1xf32> -> vector<2x1xf32>
    %445 = vector.broadcast %444 : vector<2x1xf32> to vector<2x8xf32>
    %446 = arith.mulf %441, %445 : vector<2x8xf32>
    %447 = vector.shape_cast %446 : vector<2x8xf32> to vector<2x8x1xf32>
    %448 = vector.broadcast %447 : vector<2x8x1xf32> to vector<2x8x32xf32>
    %449 = arith.mulf %448, %0 : vector<2x8x32xf32>
    %cst_155 = arith.constant dense<0.000000e+00> : vector<2x32xf32>
    %450 = vector.multi_reduction <add>, %449, %cst_155 [1] : vector<2x8x32xf32> to vector<2x32xf32>
    %451 = vector.extract_strided_slice %430 {offsets = [0, 32], sizes = [2, 32], strides = [1, 1]} : vector<2x64xf32> to vector<2x32xf32>
    %452 = vector.shape_cast %451 : vector<2x32xf32> to vector<2x1x32xf32>
    %453 = vector.broadcast %452 : vector<2x1x32xf32> to vector<2x6x32xf32>
    %454 = arith.mulf %1, %453 : vector<2x6x32xf32>
    %cst_156 = arith.constant dense<0.000000e+00> : vector<2x6xf32>
    %455 = vector.multi_reduction <add>, %454, %cst_156 [2] : vector<2x6x32xf32> to vector<2x6xf32>
    %cst_157 = arith.constant dense<0xFF800000> : vector<2xf32>
    %456 = vector.multi_reduction <maximumf>, %455, %cst_157 [1] : vector<2x6xf32> to vector<2xf32>
    %457 = vector.shape_cast %456 : vector<2xf32> to vector<2x1xf32>
    %458 = vector.broadcast %457 : vector<2x1xf32> to vector<2x6xf32>
    %459 = arith.subf %455, %458 : vector<2x6xf32>
    %460 = math.exp %459 : vector<2x6xf32>
    %cst_158 = arith.constant dense<0.000000e+00> : vector<2xf32>
    %461 = vector.multi_reduction <add>, %460, %cst_158 [1] : vector<2x6xf32> to vector<2xf32>
    %462 = vector.shape_cast %461 : vector<2xf32> to vector<2x1xf32>
    %463 = tpu.reciprocal %462 {approx = true} : vector<2x1xf32> -> vector<2x1xf32>
    %464 = vector.broadcast %463 : vector<2x1xf32> to vector<2x6xf32>
    %465 = arith.mulf %460, %464 : vector<2x6xf32>
    %466 = vector.shape_cast %465 : vector<2x6xf32> to vector<2x6x1xf32>
    %467 = vector.broadcast %466 : vector<2x6x1xf32> to vector<2x6x32xf32>
    %468 = arith.mulf %467, %1 : vector<2x6x32xf32>
    %cst_159 = arith.constant dense<0.000000e+00> : vector<2x32xf32>
    %469 = vector.multi_reduction <add>, %468, %cst_159 [1] : vector<2x6x32xf32> to vector<2x32xf32>
    %470 = tpu.concatenate %429, %450, %469 in 1 : vector<2x32xf32>, vector<2x32xf32>, vector<2x32xf32> -> vector<2x96xf32>
    %cst_160 = arith.constant dense<0.000000e+00> : vector<2x128xf32>
    %471 = tpu.matmul %470, %5, %cst_160 {dimension_numbers = #tpu.dot_dimension_numbers<[1], [0], [0], [1], [0, 0, 1, 1], [], []>} : vector<2x96xf32>, vector<96x128xf32>, vector<2x128xf32> -> vector<2x128xf32>
    %cst_161 = arith.constant dense<0.000000e+00> : vector<2x128xf32>
    %472 = tpu.matmul %367, %6, %cst_161 {dimension_numbers = #tpu.dot_dimension_numbers<[1], [0], [0], [1], [0, 0, 1, 1], [], []>} : vector<2x32xf32>, vector<32x128xf32>, vector<2x128xf32> -> vector<2x128xf32>
    %473 = arith.addf %471, %472 : vector<2x128xf32>
    %474 = vector.broadcast %7 : vector<1x128xf32> to vector<2x128xf32>
    %475 = arith.addf %473, %474 : vector<2x128xf32>
    %476 = vector.extract_strided_slice %475 {offsets = [0, 0], sizes = [2, 32], strides = [1, 1]} : vector<2x128xf32> to vector<2x32xf32>
    %477 = arith.negf %476 : vector<2x32xf32>
    %478 = math.exp %477 : vector<2x32xf32>
    %cst_162 = arith.constant 1.000000e+00 : f32
    %479 = vector.broadcast %cst_162 : f32 to vector<2x32xf32>
    %480 = arith.addf %479, %478 : vector<2x32xf32>
    %481 = arith.divf %479, %480 : vector<2x32xf32>
    %482 = vector.extract_strided_slice %475 {offsets = [0, 32], sizes = [2, 32], strides = [1, 1]} : vector<2x128xf32> to vector<2x32xf32>
    %483 = arith.negf %482 : vector<2x32xf32>
    %484 = math.exp %483 : vector<2x32xf32>
    %cst_163 = arith.constant 1.000000e+00 : f32
    %485 = vector.broadcast %cst_163 : f32 to vector<2x32xf32>
    %486 = arith.addf %485, %484 : vector<2x32xf32>
    %487 = arith.divf %485, %486 : vector<2x32xf32>
    %488 = vector.extract_strided_slice %475 {offsets = [0, 64], sizes = [2, 32], strides = [1, 1]} : vector<2x128xf32> to vector<2x32xf32>
    %489 = math.tanh %488 : vector<2x32xf32>
    %490 = vector.extract_strided_slice %475 {offsets = [0, 96], sizes = [2, 32], strides = [1, 1]} : vector<2x128xf32> to vector<2x32xf32>
    %491 = arith.negf %490 : vector<2x32xf32>
    %492 = math.exp %491 : vector<2x32xf32>
    %cst_164 = arith.constant 1.000000e+00 : f32
    %493 = vector.broadcast %cst_164 : f32 to vector<2x32xf32>
    %494 = arith.addf %493, %492 : vector<2x32xf32>
    %495 = arith.divf %493, %494 : vector<2x32xf32>
    %496 = arith.mulf %487, %365 : vector<2x32xf32>
    %497 = arith.mulf %481, %489 : vector<2x32xf32>
    %498 = arith.addf %496, %497 : vector<2x32xf32>
    %499 = math.tanh %498 : vector<2x32xf32>
    %500 = arith.mulf %495, %499 : vector<2x32xf32>
    %cst_165 = arith.constant dense<0.000000e+00> : vector<2x128xf32>
    %501 = tpu.matmul %500, %8, %cst_165 {dimension_numbers = #tpu.dot_dimension_numbers<[1], [0], [0], [1], [0, 0, 1, 1], [], []>} : vector<2x32xf32>, vector<32x128xf32>, vector<2x128xf32> -> vector<2x128xf32>
    %cst_166 = arith.constant dense<0.000000e+00> : vector<2x128xf32>
    %502 = tpu.matmul %397, %9, %cst_166 {dimension_numbers = #tpu.dot_dimension_numbers<[1], [0], [0], [1], [0, 0, 1, 1], [], []>} : vector<2x32xf32>, vector<32x128xf32>, vector<2x128xf32> -> vector<2x128xf32>
    %503 = arith.addf %501, %502 : vector<2x128xf32>
    %504 = vector.broadcast %10 : vector<1x128xf32> to vector<2x128xf32>
    %505 = arith.addf %503, %504 : vector<2x128xf32>
    %506 = vector.extract_strided_slice %505 {offsets = [0, 0], sizes = [2, 32], strides = [1, 1]} : vector<2x128xf32> to vector<2x32xf32>
    %507 = arith.negf %506 : vector<2x32xf32>
    %508 = math.exp %507 : vector<2x32xf32>
    %cst_167 = arith.constant 1.000000e+00 : f32
    %509 = vector.broadcast %cst_167 : f32 to vector<2x32xf32>
    %510 = arith.addf %509, %508 : vector<2x32xf32>
    %511 = arith.divf %509, %510 : vector<2x32xf32>
    %512 = vector.extract_strided_slice %505 {offsets = [0, 32], sizes = [2, 32], strides = [1, 1]} : vector<2x128xf32> to vector<2x32xf32>
    %513 = arith.negf %512 : vector<2x32xf32>
    %514 = math.exp %513 : vector<2x32xf32>
    %cst_168 = arith.constant 1.000000e+00 : f32
    %515 = vector.broadcast %cst_168 : f32 to vector<2x32xf32>
    %516 = arith.addf %515, %514 : vector<2x32xf32>
    %517 = arith.divf %515, %516 : vector<2x32xf32>
    %518 = vector.extract_strided_slice %505 {offsets = [0, 64], sizes = [2, 32], strides = [1, 1]} : vector<2x128xf32> to vector<2x32xf32>
    %519 = math.tanh %518 : vector<2x32xf32>
    %520 = vector.extract_strided_slice %505 {offsets = [0, 96], sizes = [2, 32], strides = [1, 1]} : vector<2x128xf32> to vector<2x32xf32>
    %521 = arith.negf %520 : vector<2x32xf32>
    %522 = math.exp %521 : vector<2x32xf32>
    %cst_169 = arith.constant 1.000000e+00 : f32
    %523 = vector.broadcast %cst_169 : f32 to vector<2x32xf32>
    %524 = arith.addf %523, %522 : vector<2x32xf32>
    %525 = arith.divf %523, %524 : vector<2x32xf32>
    %526 = arith.mulf %517, %395 : vector<2x32xf32>
    %527 = arith.mulf %511, %519 : vector<2x32xf32>
    %528 = arith.addf %526, %527 : vector<2x32xf32>
    %529 = math.tanh %528 : vector<2x32xf32>
    %530 = arith.mulf %525, %529 : vector<2x32xf32>
    %cst_170 = arith.constant dense<0.000000e+00> : vector<2x32xf32>
    %531 = tpu.matmul %530, %11, %cst_170 {dimension_numbers = #tpu.dot_dimension_numbers<[1], [0], [0], [1], [0, 0, 1, 1], [], []>} : vector<2x32xf32>, vector<32x32xf32>, vector<2x32xf32> -> vector<2x32xf32>
    %532 = vector.broadcast %12 : vector<1x32xf32> to vector<2x32xf32>
    %533 = arith.addf %531, %532 : vector<2x32xf32>
    %534 = math.tanh %533 : vector<2x32xf32>
    %cst_171 = arith.constant dense<0.000000e+00> : vector<2x128xf32>
    %535 = tpu.matmul %534, %13, %cst_171 {dimension_numbers = #tpu.dot_dimension_numbers<[1], [0], [0], [1], [0, 0, 1, 1], [], []>} : vector<2x32xf32>, vector<32x128xf32>, vector<2x128xf32> -> vector<2x128xf32>
    %536 = vector.broadcast %14 : vector<1x128xf32> to vector<2x128xf32>
    %537 = arith.addf %535, %536 : vector<2x128xf32>
    %c4 = arith.constant 4 : index
    %c0_172 = arith.constant 0 : index
    %c0_173 = arith.constant 0 : index
    %538 = vector.load %arg19[%c4, %c0_172, %c0_173] : memref<6x2x128xf32, #tpu.memory_space<vmem>>, vector<1x2x128xf32>
    %539 = vector.shape_cast %538 : vector<1x2x128xf32> to vector<2x128xf32>
    %540 = vector.shape_cast %537 : vector<2x128xf32> to vector<1x2x128xf32>
    tpu.vector_store %arg19[%c4, %c0_172, %c0_173], %540 {strides = array<i32>} : memref<6x2x128xf32, #tpu.memory_space<vmem>>, vector<1x2x128xf32>,
    %cst_174 = arith.constant dense<0xFF800000> : vector<2xf32>
    %541 = vector.multi_reduction <maximumf>, %537, %cst_174 [1] : vector<2x128xf32> to vector<2xf32>
    %542 = vector.shape_cast %541 : vector<2xf32> to vector<2x1xf32>
    %543 = vector.broadcast %542 : vector<2x1xf32> to vector<2x128xf32>
    %544 = arith.cmpf oeq, %537, %543 : vector<2x128xf32>
    %c128_i32_175 = arith.constant 128 : i32
    %545 = vector.broadcast %c128_i32_175 : i32 to vector<2x128xi32>
    %546 = arith.select %544, %15, %545 : vector<2x128xi1>, vector<2x128xi32>
    %cst_176 = arith.constant dense<2147483647> : vector<2xi32>
    %547 = vector.multi_reduction <minsi>, %546, %cst_176 [1] : vector<2x128xi32> to vector<2xi32>
    %548 = vector.shape_cast %547 : vector<2xi32> to vector<2x1xi32>
    %549 = vector.broadcast %548 : vector<2x1xi32> to vector<2x128xi32>
    %550 = arith.cmpi eq, %15, %549 : vector<2x128xi32>
    %551 = arith.extui %550 : vector<2x128xi1> to vector<2x128xi32>
    %552 = arith.sitofp %551 : vector<2x128xi32> to vector<2x128xf32>
    %c4_177 = arith.constant 4 : index
    %c0_178 = arith.constant 0 : index
    %c0_179 = arith.constant 0 : index
    %553 = vector.load %arg1[%c4_177, %c0_178, %c0_179] : memref<6x1x1xf32, #tpu.memory_space<vmem>>, vector<1x1x1xf32>
    %554 = vector.shape_cast %553 : vector<1x1x1xf32> to vector<1x1xf32>
    %cst_180 = arith.constant 0.000000e+00 : f32
    %555 = vector.broadcast %cst_180 : f32 to vector<1x1xf32>
    %556 = arith.cmpf ogt, %554, %555 : vector<1x1xf32>
    %c4_181 = arith.constant 4 : index
    %c0_182 = arith.constant 0 : index
    %c0_183 = arith.constant 0 : index
    %557 = vector.load %arg0[%c4_181, %c0_182, %c0_183] : memref<6x2x128xf32, #tpu.memory_space<vmem>>, vector<1x2x128xf32>
    %558 = vector.shape_cast %557 : vector<1x2x128xf32> to vector<2x128xf32>
    %559 = vector.shape_cast %556 : vector<1x1xi1> to vector<1x1xi1>
    %560 = vector.broadcast %559 : vector<1x1xi1> to vector<2x128xi1>
    %561 = arith.select %560, %558, %552 : vector<2x128xi1>, vector<2x128xf32>
    %cst_184 = arith.constant dense<0.000000e+00> : vector<2x32xf32>
    %562 = tpu.matmul %561, %3, %cst_184 {dimension_numbers = #tpu.dot_dimension_numbers<[1], [0], [0], [1], [0, 0, 1, 1], [], []>} : vector<2x128xf32>, vector<128x32xf32>, vector<2x32xf32> -> vector<2x32xf32>
    %cst_185 = arith.constant dense<0.000000e+00> : vector<2x64xf32>
    %563 = tpu.matmul %500, %4, %cst_185 {dimension_numbers = #tpu.dot_dimension_numbers<[1], [0], [0], [1], [0, 0, 1, 1], [], []>} : vector<2x32xf32>, vector<32x64xf32>, vector<2x64xf32> -> vector<2x64xf32>
    %564 = vector.extract_strided_slice %563 {offsets = [0, 0], sizes = [2, 32], strides = [1, 1]} : vector<2x64xf32> to vector<2x32xf32>
    %565 = vector.shape_cast %564 : vector<2x32xf32> to vector<2x1x32xf32>
    %566 = vector.broadcast %565 : vector<2x1x32xf32> to vector<2x8x32xf32>
    %567 = arith.mulf %0, %566 : vector<2x8x32xf32>
    %cst_186 = arith.constant dense<0.000000e+00> : vector<2x8xf32>
    %568 = vector.multi_reduction <add>, %567, %cst_186 [2] : vector<2x8x32xf32> to vector<2x8xf32>
    %569 = arith.addf %568, %2 : vector<2x8xf32>
    %cst_187 = arith.constant dense<0xFF800000> : vector<2xf32>
    %570 = vector.multi_reduction <maximumf>, %569, %cst_187 [1] : vector<2x8xf32> to vector<2xf32>
    %571 = vector.shape_cast %570 : vector<2xf32> to vector<2x1xf32>
    %572 = vector.broadcast %571 : vector<2x1xf32> to vector<2x8xf32>
    %573 = arith.subf %569, %572 : vector<2x8xf32>
    %574 = math.exp %573 : vector<2x8xf32>
    %cst_188 = arith.constant dense<0.000000e+00> : vector<2xf32>
    %575 = vector.multi_reduction <add>, %574, %cst_188 [1] : vector<2x8xf32> to vector<2xf32>
    %576 = vector.shape_cast %575 : vector<2xf32> to vector<2x1xf32>
    %577 = tpu.reciprocal %576 {approx = true} : vector<2x1xf32> -> vector<2x1xf32>
    %578 = vector.broadcast %577 : vector<2x1xf32> to vector<2x8xf32>
    %579 = arith.mulf %574, %578 : vector<2x8xf32>
    %580 = vector.shape_cast %579 : vector<2x8xf32> to vector<2x8x1xf32>
    %581 = vector.broadcast %580 : vector<2x8x1xf32> to vector<2x8x32xf32>
    %582 = arith.mulf %581, %0 : vector<2x8x32xf32>
    %cst_189 = arith.constant dense<0.000000e+00> : vector<2x32xf32>
    %583 = vector.multi_reduction <add>, %582, %cst_189 [1] : vector<2x8x32xf32> to vector<2x32xf32>
    %584 = vector.extract_strided_slice %563 {offsets = [0, 32], sizes = [2, 32], strides = [1, 1]} : vector<2x64xf32> to vector<2x32xf32>
    %585 = vector.shape_cast %584 : vector<2x32xf32> to vector<2x1x32xf32>
    %586 = vector.broadcast %585 : vector<2x1x32xf32> to vector<2x6x32xf32>
    %587 = arith.mulf %1, %586 : vector<2x6x32xf32>
    %cst_190 = arith.constant dense<0.000000e+00> : vector<2x6xf32>
    %588 = vector.multi_reduction <add>, %587, %cst_190 [2] : vector<2x6x32xf32> to vector<2x6xf32>
    %cst_191 = arith.constant dense<0xFF800000> : vector<2xf32>
    %589 = vector.multi_reduction <maximumf>, %588, %cst_191 [1] : vector<2x6xf32> to vector<2xf32>
    %590 = vector.shape_cast %589 : vector<2xf32> to vector<2x1xf32>
    %591 = vector.broadcast %590 : vector<2x1xf32> to vector<2x6xf32>
    %592 = arith.subf %588, %591 : vector<2x6xf32>
    %593 = math.exp %592 : vector<2x6xf32>
    %cst_192 = arith.constant dense<0.000000e+00> : vector<2xf32>
    %594 = vector.multi_reduction <add>, %593, %cst_192 [1] : vector<2x6xf32> to vector<2xf32>
    %595 = vector.shape_cast %594 : vector<2xf32> to vector<2x1xf32>
    %596 = tpu.reciprocal %595 {approx = true} : vector<2x1xf32> -> vector<2x1xf32>
    %597 = vector.broadcast %596 : vector<2x1xf32> to vector<2x6xf32>
    %598 = arith.mulf %593, %597 : vector<2x6xf32>
    %599 = vector.shape_cast %598 : vector<2x6xf32> to vector<2x6x1xf32>
    %600 = vector.broadcast %599 : vector<2x6x1xf32> to vector<2x6x32xf32>
    %601 = arith.mulf %600, %1 : vector<2x6x32xf32>
    %cst_193 = arith.constant dense<0.000000e+00> : vector<2x32xf32>
    %602 = vector.multi_reduction <add>, %601, %cst_193 [1] : vector<2x6x32xf32> to vector<2x32xf32>
    %603 = tpu.concatenate %562, %583, %602 in 1 : vector<2x32xf32>, vector<2x32xf32>, vector<2x32xf32> -> vector<2x96xf32>
    %cst_194 = arith.constant dense<0.000000e+00> : vector<2x128xf32>
    %604 = tpu.matmul %603, %5, %cst_194 {dimension_numbers = #tpu.dot_dimension_numbers<[1], [0], [0], [1], [0, 0, 1, 1], [], []>} : vector<2x96xf32>, vector<96x128xf32>, vector<2x128xf32> -> vector<2x128xf32>
    %cst_195 = arith.constant dense<0.000000e+00> : vector<2x128xf32>
    %605 = tpu.matmul %500, %6, %cst_195 {dimension_numbers = #tpu.dot_dimension_numbers<[1], [0], [0], [1], [0, 0, 1, 1], [], []>} : vector<2x32xf32>, vector<32x128xf32>, vector<2x128xf32> -> vector<2x128xf32>
    %606 = arith.addf %604, %605 : vector<2x128xf32>
    %607 = vector.broadcast %7 : vector<1x128xf32> to vector<2x128xf32>
    %608 = arith.addf %606, %607 : vector<2x128xf32>
    %609 = vector.extract_strided_slice %608 {offsets = [0, 0], sizes = [2, 32], strides = [1, 1]} : vector<2x128xf32> to vector<2x32xf32>
    %610 = arith.negf %609 : vector<2x32xf32>
    %611 = math.exp %610 : vector<2x32xf32>
    %cst_196 = arith.constant 1.000000e+00 : f32
    %612 = vector.broadcast %cst_196 : f32 to vector<2x32xf32>
    %613 = arith.addf %612, %611 : vector<2x32xf32>
    %614 = arith.divf %612, %613 : vector<2x32xf32>
    %615 = vector.extract_strided_slice %608 {offsets = [0, 32], sizes = [2, 32], strides = [1, 1]} : vector<2x128xf32> to vector<2x32xf32>
    %616 = arith.negf %615 : vector<2x32xf32>
    %617 = math.exp %616 : vector<2x32xf32>
    %cst_197 = arith.constant 1.000000e+00 : f32
    %618 = vector.broadcast %cst_197 : f32 to vector<2x32xf32>
    %619 = arith.addf %618, %617 : vector<2x32xf32>
    %620 = arith.divf %618, %619 : vector<2x32xf32>
    %621 = vector.extract_strided_slice %608 {offsets = [0, 64], sizes = [2, 32], strides = [1, 1]} : vector<2x128xf32> to vector<2x32xf32>
    %622 = math.tanh %621 : vector<2x32xf32>
    %623 = vector.extract_strided_slice %608 {offsets = [0, 96], sizes = [2, 32], strides = [1, 1]} : vector<2x128xf32> to vector<2x32xf32>
    %624 = arith.negf %623 : vector<2x32xf32>
    %625 = math.exp %624 : vector<2x32xf32>
    %cst_198 = arith.constant 1.000000e+00 : f32
    %626 = vector.broadcast %cst_198 : f32 to vector<2x32xf32>
    %627 = arith.addf %626, %625 : vector<2x32xf32>
    %628 = arith.divf %626, %627 : vector<2x32xf32>
    %629 = arith.mulf %620, %498 : vector<2x32xf32>
    %630 = arith.mulf %614, %622 : vector<2x32xf32>
    %631 = arith.addf %629, %630 : vector<2x32xf32>
    %632 = math.tanh %631 : vector<2x32xf32>
    %633 = arith.mulf %628, %632 : vector<2x32xf32>
    %cst_199 = arith.constant dense<0.000000e+00> : vector<2x128xf32>
    %634 = tpu.matmul %633, %8, %cst_199 {dimension_numbers = #tpu.dot_dimension_numbers<[1], [0], [0], [1], [0, 0, 1, 1], [], []>} : vector<2x32xf32>, vector<32x128xf32>, vector<2x128xf32> -> vector<2x128xf32>
    %cst_200 = arith.constant dense<0.000000e+00> : vector<2x128xf32>
    %635 = tpu.matmul %530, %9, %cst_200 {dimension_numbers = #tpu.dot_dimension_numbers<[1], [0], [0], [1], [0, 0, 1, 1], [], []>} : vector<2x32xf32>, vector<32x128xf32>, vector<2x128xf32> -> vector<2x128xf32>
    %636 = arith.addf %634, %635 : vector<2x128xf32>
    %637 = vector.broadcast %10 : vector<1x128xf32> to vector<2x128xf32>
    %638 = arith.addf %636, %637 : vector<2x128xf32>
    %639 = vector.extract_strided_slice %638 {offsets = [0, 0], sizes = [2, 32], strides = [1, 1]} : vector<2x128xf32> to vector<2x32xf32>
    %640 = arith.negf %639 : vector<2x32xf32>
    %641 = math.exp %640 : vector<2x32xf32>
    %cst_201 = arith.constant 1.000000e+00 : f32
    %642 = vector.broadcast %cst_201 : f32 to vector<2x32xf32>
    %643 = arith.addf %642, %641 : vector<2x32xf32>
    %644 = arith.divf %642, %643 : vector<2x32xf32>
    %645 = vector.extract_strided_slice %638 {offsets = [0, 32], sizes = [2, 32], strides = [1, 1]} : vector<2x128xf32> to vector<2x32xf32>
    %646 = arith.negf %645 : vector<2x32xf32>
    %647 = math.exp %646 : vector<2x32xf32>
    %cst_202 = arith.constant 1.000000e+00 : f32
    %648 = vector.broadcast %cst_202 : f32 to vector<2x32xf32>
    %649 = arith.addf %648, %647 : vector<2x32xf32>
    %650 = arith.divf %648, %649 : vector<2x32xf32>
    %651 = vector.extract_strided_slice %638 {offsets = [0, 64], sizes = [2, 32], strides = [1, 1]} : vector<2x128xf32> to vector<2x32xf32>
    %652 = math.tanh %651 : vector<2x32xf32>
    %653 = vector.extract_strided_slice %638 {offsets = [0, 96], sizes = [2, 32], strides = [1, 1]} : vector<2x128xf32> to vector<2x32xf32>
    %654 = arith.negf %653 : vector<2x32xf32>
    %655 = math.exp %654 : vector<2x32xf32>
    %cst_203 = arith.constant 1.000000e+00 : f32
    %656 = vector.broadcast %cst_203 : f32 to vector<2x32xf32>
    %657 = arith.addf %656, %655 : vector<2x32xf32>
    %658 = arith.divf %656, %657 : vector<2x32xf32>
    %659 = arith.mulf %650, %528 : vector<2x32xf32>
    %660 = arith.mulf %644, %652 : vector<2x32xf32>
    %661 = arith.addf %659, %660 : vector<2x32xf32>
    %662 = math.tanh %661 : vector<2x32xf32>
    %663 = arith.mulf %658, %662 : vector<2x32xf32>
    %cst_204 = arith.constant dense<0.000000e+00> : vector<2x32xf32>
    %664 = tpu.matmul %663, %11, %cst_204 {dimension_numbers = #tpu.dot_dimension_numbers<[1], [0], [0], [1], [0, 0, 1, 1], [], []>} : vector<2x32xf32>, vector<32x32xf32>, vector<2x32xf32> -> vector<2x32xf32>
    %665 = vector.broadcast %12 : vector<1x32xf32> to vector<2x32xf32>
    %666 = arith.addf %664, %665 : vector<2x32xf32>
    %667 = math.tanh %666 : vector<2x32xf32>
    %cst_205 = arith.constant dense<0.000000e+00> : vector<2x128xf32>
    %668 = tpu.matmul %667, %13, %cst_205 {dimension_numbers = #tpu.dot_dimension_numbers<[1], [0], [0], [1], [0, 0, 1, 1], [], []>} : vector<2x32xf32>, vector<32x128xf32>, vector<2x128xf32> -> vector<2x128xf32>
    %669 = vector.broadcast %14 : vector<1x128xf32> to vector<2x128xf32>
    %670 = arith.addf %668, %669 : vector<2x128xf32>
    %c5 = arith.constant 5 : index
    %c0_206 = arith.constant 0 : index
    %c0_207 = arith.constant 0 : index
    %671 = vector.load %arg19[%c5, %c0_206, %c0_207] : memref<6x2x128xf32, #tpu.memory_space<vmem>>, vector<1x2x128xf32>
    %672 = vector.shape_cast %671 : vector<1x2x128xf32> to vector<2x128xf32>
    %673 = vector.shape_cast %670 : vector<2x128xf32> to vector<1x2x128xf32>
    tpu.vector_store %arg19[%c5, %c0_206, %c0_207], %673 {strides = array<i32>} : memref<6x2x128xf32, #tpu.memory_space<vmem>>, vector<1x2x128xf32>,
    return
  }
}

</mosaic_0001>

<bundles_post_ra>
// kernel: tpu_custom_call.1
= control target key start
LH: loop header
LB: loop body
LE: loop exit
PB: predicated region body
PF: predicated region fallthrough
CT: control target
= control target key end

     0   :  { %s4533_s0 = inlined_call_operand.hbm [shape: f32[6,2,128], index: 0, kind: input, shape index: {}]   ;;  %s4534_s1 = inlined_call_operand.vmem [shape: f32[6,1,1], index: 1, kind: input, shape index: {}]   ;;  %s4535_s2 = inlined_call_operand.hbm [shape: f32[2,8,32], index: 2, kind: input, shape index: {}]   ;;  %s4536_s3 = inlined_call_operand.vmem [shape: f32[2,6,32], index: 3, kind: input, shape index: {}]   ;;  %s4537_s4 = inlined_call_operand.hbm [shape: f32[2,8], index: 4, kind: input, shape index: {}]   ;;  %s4538_s5 = inlined_call_operand.vmem [shape: f32[2,2,32], index: 5, kind: input, shape index: {}]   ;;  %s4539_s6 = inlined_call_operand.vmem [shape: f32[2,2,32], index: 6, kind: input, shape index: {}]   ;;  %s4540_s7 = inlined_call_operand.vmem [shape: f32[128,32], index: 7, kind: input, shape index: {}]   ;;  %s4541_s8 = inlined_call_operand.vmem [shape: f32[32,64], index: 8, kind: input, shape index: {}]   ;;  %s4542_s9 = inlined_call_operand.vmem [shape: f32[96,128], index: 9, kind: input, shape index: {}]   ;;  %s4543_s10 = inlined_call_operand.vmem [shape: f32[32,128], index: 10, kind: input, shape index: {}]   ;;  %s4544_s11 = inlined_call_operand.vmem [shape: f32[1,128], index: 11, kind: input, shape index: {}]   ;;  %s4545_s12 = inlined_call_operand.hbm [shape: f32[32,128], index: 12, kind: input, shape index: {}]   ;;  %s4546_s13 = inlined_call_operand.hbm [shape: f32[32,128], index: 13, kind: input, shape index: {}]   ;;  %s4547_s14 = inlined_call_operand.vmem [shape: f32[1,128], index: 14, kind: input, shape index: {}]   ;;  %s4548_s15 = inlined_call_operand.hbm [shape: f32[32,32], index: 15, kind: input, shape index: {}]   ;;  %s4549_s16 = inlined_call_operand.vmem [shape: f32[1,32], index: 16, kind: input, shape index: {}]   ;;  %s4550_s17 = inlined_call_operand.hbm [shape: f32[32,128], index: 17, kind: input, shape index: {}]   ;;  %s4551_s18 = inlined_call_operand.vmem [shape: f32[1,128], index: 18, kind: input, shape index: {}]   ;;  %s4552_s19 = inlined_call_operand.hbm [shape: f32[6,2,128], index: 19, kind: output, shape index: {}]  }
   0x1   :  { %4569 = sst [smem:[#allocation28_spill]] %s4533_s0 }
   0x2   :  { %4570 = sst [smem:[#allocation29_spill]] %s4534_s1 }
   0x3   :  { %4571 = sst [smem:[#allocation30_spill]] %s4535_s2 }
   0x4   :  { %4572 = sst [smem:[#allocation31_spill]] %s4536_s3 }
   0x5   :  { %24 = vsyncpa [#allocation3], 0 }
   0x6   :  { %25 = vsyncpa [#allocation6], 0 }
   0x7   :  { %26 = vsyncpa [#allocation9], 0 }
   0x8   :  { %27 = vsyncpa [#allocation12], 0  ;;  %s4573_s20 = sld [smem:[#allocation30_spill]] }
   0xe   :  { %s48_s21 = sshll.u32 %s4573_s20, 4  ;;  %s49_s21 = int_to_ptr.hbm [resolvable:$true] %s48_s21 }
   0xf   :  { %28 = vsyncpa [#allocation4], 0  ;;  %s3172_s1 = smov [#allocation5]   ;;  %s88_s24 = sshll.u32 %s4545_s12, 4  ;;  %s89_s24 = int_to_ptr.hbm [resolvable:$true] %s88_s24 }
  0x10   :  { %s50_s22 = sshll.u32 %s3172_s1, 4  ;;  %s4555_s25 = smov 128   ;;  %s51_s22 = int_to_ptr.vmem [resolvable:$true] %s50_s22 }
  0x11   :  { %s3174_s3 = smov 8   ;;  %s3175_s26 = smov [#allocation8]  }
  0x12   :  { %56 = dma.hbm_to_vmem [thread:$0]  %s49_s21, 256, %s51_s22, [#allocation6], %s4555_s25, %s4555_s25, %s3174_s3  }
  0x13   :  { %s90_s27 = sshll.u32 %s3175_s26, 4  ;;  %s116_s0 = sshll.u32 %s4548_s15, 4  ;;  %s91_s27 = int_to_ptr.vmem [resolvable:$true] %s90_s27  ;;  %s117_s0 = int_to_ptr.hbm [resolvable:$true] %s116_s0 }
  0x14   :  { %96 = dma.hbm_to_vmem [thread:$0]  %s89_s24, 512, %s91_s27, [#allocation9], %s4555_s25, %s4555_s25, %s3174_s3  }
  0x15   :  { %s4574_s20 = sld [smem:[#allocation28_spill]]  ;;  %s3176_s2 = smov [#allocation11]  }
  0x16   :  { %s118_s23 = sshll.u32 %s3176_s2, 4  ;;  %s3177_s21 = smov [#allocation2]   ;;  %s119_s23 = int_to_ptr.vmem [resolvable:$true] %s118_s23 }
  0x17   :  { %124 = dma.hbm_to_vmem [thread:$0]  %s117_s0, 512, %s119_s23, [#allocation12], %s4555_s25, %s4555_s25, %s3174_s3  }
  0x18   :  { %s35_s15 = sshll.u32 %s3177_s21, 4  ;;  %s3178_s22 = smov 32   ;;  %s36_s15 = int_to_ptr.vmem [resolvable:$true] %s35_s15 }
  0x19   :  { %s3179_s26 = smov 2   ;;  %s64_s28 = sshll.u32 %s4537_s4, 4  ;;  %s65_s28 = int_to_ptr.hbm [resolvable:$true] %s64_s28 }
  0x1a   :  { %s3180_s29 = smov [#allocation7]   ;;  %s101_s0 = sshll.u32 %s4546_s13, 4  ;;  %s102_s0 = int_to_ptr.hbm [resolvable:$true] %s101_s0 }
  0x1b   :  { %s33_s1 = sshll.u32 %s4574_s20, 4  ;;  %s66_s12 = sshll.u32 %s3180_s29, 4  ;;  %s34_s1 = int_to_ptr.hbm [resolvable:$true] %s33_s1  ;;  %s67_s12 = int_to_ptr.vmem [resolvable:$true] %s66_s12 }
  0x1c   :  { %41 = dma.hbm_to_vmem [thread:$0]  %s34_s1, 192, %s36_s15, [#allocation3], %s3178_s22, %s3178_s22, %s3179_s26  }
  0x1d   :  { %69 = dma.hbm_to_vmem [thread:$0]  %s65_s28, 32, %s67_s12, [#allocation6]  }
  0x1e   :  { %s3181_s2 = smov [#allocation10]   ;;  %s131_s1 = sshll.u32 %s4550_s17, 4  ;;  %s132_s1 = int_to_ptr.hbm [resolvable:$true] %s131_s1 }
  0x1f   :  { %s103_s23 = sshll.u32 %s3181_s2, 4  ;;  %s4575_s15 = smov 128   ;;  %s104_s23 = int_to_ptr.vmem [resolvable:$true] %s103_s23 }
  0x20   :  { %109 = dma.hbm_to_vmem [thread:$0]  %s102_s0, 512, %s104_s23, [#allocation9], %s4575_s15, %s4575_s15, %s3174_s3  }
  0x21   :  { %s3182_s4 = smov [#allocation13]  }
  0x22   :  { %s133_s24 = sshll.u32 %s3182_s4, 4  ;;  %s134_s24 = int_to_ptr.vmem [resolvable:$true] %s133_s24 }
  0x23   :  { %139 = dma.hbm_to_vmem [thread:$0]  %s132_s1, 512, %s134_s24, [#allocation12], %s4575_s15, %s4575_s15, %s3174_s3  }
  0x24   :  { %3162 = dma.done.wait [#allocation3], 192  }
  0x25   :  { %3163 = vsyncadd [#allocation3], 4294967104 }
  0x26   :  { %3164 = dma.done.wait [#allocation6], 288  }
  0x27   :  { %3165 = vsyncadd [#allocation6], 4294967008 }
  0x28   :  { %3166 = dma.done.wait [#allocation9], 1024  }
  0x29   :  { %3167 = vsyncadd [#allocation9], 4294966272 }
  0x2a   :  { %3168 = dma.done.wait [#allocation12], 1024  }
  0x2b   :  { %3169 = vsyncadd [#allocation12], 4294966272  ;;  %v3330_v0 = vld [vmem:[%s4541_s8 + $0x18] sm:$0xff]  ;;  %v3335_v1 = vld [vmem:[%s4541_s8 + $0x10] sm:$0xff]  ;;  %vm261_vm0 = vcmask 261120   ;;  %v231_v5 = vlaneseq  ;;  %s3183_s0 = smov 96  }
  0x2c   :  { %277 = vmatpush.msra.mxu1 %v3330_v0  ;;  %v3341_v2 = vld [vmem:[%s4541_s8 + $0x8] sm:$0xff]  ;;  %v3347_v3 = vld [vmem:[%s4541_s8] sm:$0xff]  ;;  %v174_v7 = vld [vmem:[#allocation7] sm:$0x3]  ;;  %v4557_v20 = vmov 0   ;;  %s4576_s21 = sld [smem:[#allocation31_spill]] }
  0x2d   :  { %v3353_v4 = vld [vmem:[%s4538_s5] sm:$0x3]  ;;  %v302_v6 = vshrl.u32 %v231_v5, 7  ;;  %v300_v8 = vperm.slane %v174_v7, 0  ;;  %v307_v9 = vperm.slane %v174_v7, 1  ;;  %v3358_v11 = vld [vmem:[#allocation5] sm:$0xff]  ;;  %2741 = vset.pattern.permute.xlu0 %v4557_v20  ;;  %2742 = vset.pattern.permute.xlu1 %v4557_v20 }
  0x2e   :  { %278 = vmatpush.msra.mxu1 %v3335_v1  ;;  %v3363_v17 = vld [vmem:[#allocation5 + $0x8] sm:$0xff]  ;;  %vm403_vm1 = vcmask 259072   ;;  %v3391_v36 = vand.u32 127, %v231_v5  ;;  %vm328_vm2 = vcmask 1041409   ;;  %vm331_vm3 = vcmask 58368   ;;  %s3185_s4 = smov 64  }
  0x2f   :  { %2740 = vset.pattern.permute.xlu2 %v302_v6  ;;  %vm416_vm4 = vcmask 41984   ;;  %vm493_vm5 = vcmask 523264   ;;  %vm515_vm6 = vcmask 785408   ;;  %vm734_vm15 = vcmask 1041408   ;;  %s4585_s13 = sld [smem:[#allocation29_spill]]  ;;  %s3187_s25 = smov [#allocation14]  }
  0x30   :  { %279 = vmatpush.msra.mxu1 %v3341_v2  ;;  %s2653_s27 = sshll.u32 %s4552_s19, 4  ;;  %s2654_s27 = int_to_ptr.hbm [resolvable:$true] %s2653_s27 }
  0x32   :  { %280 = vmatpush.msra.mxu1 %v3347_v3  ;;  %v3374_v21 = vld [vmem:[%s4576_s21] sm:$0x3f]  ;;  %v3387_v32 = vld [vmem:[%s4576_s21 + $0x8] sm:$0x3f] }
  0x33   :  { %2671 = vmatmul.msk.f32.vlgmr.msra.gmra.mxu1 %vm261_vm0, %v3353_v4 }
  0x37   :  { %305 = vperm.xlu2 %2740, %v300_v8  }
  0x3f   :  { %312 = vperm.xlu2 %2740, %v307_v9  }
  0x47   :  { %2743 = vset.pattern.permute.xlu2 %v4557_v20 }
  0x91   :  { %v3377_v24 = vpop.permute.xlu2 %305 }
  0x99   :  { %v3381_v28 = vpop.permute.xlu2 %312 }
  0xb0   :  { %v282_v10 = vpop.f32.mrf.mxu1 }
  0xb1   :  { %v286_v12 = vrot.slane %v282_v10, 1  ;;  %v287_v13 = vperm.slane %v282_v10, 0 }
  0xb3   :  { %395 = vrot.lane.b32.xlu1 %v287_v13, %s3183_s0  ;;  %v291_v14 = vmul.f32 %v287_v13, %v3358_v11  ;;  %v288_v15 = vperm.slane %v286_v12, 0 }
  0xb5   :  { %v293_v16 = vsel %vm261_vm0, %v291_v14, 0.0  ;;  %v292_v18 = vmul.f32 %v288_v15, %v3363_v17 }
  0xb6   :  { %294 = vadd.xlane.f32.xlu0 %v293_v16 }
  0xb7   :  { %v296_v19 = vsel %vm261_vm0, %v292_v18, 0.0 }
  0xbb   :  { %397 = vrot.lane.b32.xlu1 %v288_v15, %s3183_s0 }
  0xbe   :  { %297 = vadd.xlane.f32.xlu0 %v296_v19 }
 0x125   :  { %v396_v22 = vpop.permute.xlu1 %395 }
 0x126   :  { %v401_v23 = vmul.f32 %v396_v22, %v3374_v21 }
 0x128   :  { %v404_v25 = vsel %vm403_vm1, %v401_v23, 0.0 }
 0x129   :  { %405 = vadd.xlane.f32.xlu2 %v404_v25  ;;  %v295_v26 = vpop.xlane.xlu0 %294 }
 0x12a   :  { %v316_v27 = vadd.f32 %v3377_v24, %v295_v26 }
 0x12c   :  { %321 = vperm.xlu0 %2741, %v316_v27  }
 0x12d   :  { %v398_v31 = vpop.permute.xlu1 %397 }
 0x12e   :  { %v402_v33 = vmul.f32 %v398_v31, %v3387_v32  ;;  %v3412_v31 = vld [vmem:[%s4540_s7 + $0x78] sm:$0xff] }
 0x12f   :  { %241 = vmatpush.msra.mxu0 %v3412_v31 }
 0x130   :  { %v407_v34 = vsel %vm403_vm1, %v402_v33, 0.0  ;;  %v3417_v33 = vld [vmem:[%s4540_s7 + $0x70] sm:$0xff] }
 0x131   :  { %v298_v29 = vpop.xlane.xlu0 %297  ;;  %242 = vmatpush.msra.mxu0 %v3417_v33 }
 0x132   :  { %v317_v30 = vadd.f32 %v3381_v28, %v298_v29 }
 0x134   :  { %324 = vperm.xlu1 %2742, %v317_v30  }
 0x15e   :  { %408 = vadd.xlane.f32.xlu1 %v407_v34  ;;  %v3423_v34 = vld [vmem:[%s4540_s7 + $0x68] sm:$0xff] }
 0x15f   :  { %243 = vmatpush.msra.mxu0 %v3423_v34 }
 0x19c   :  { %v406_v42 = vpop.xlane.xlu2 %405 }
 0x19d   :  { %v412_v44 = vperm.slane %v406_v42, %v3391_v36 }
 0x19e   :  { %v322_v35 = vpop.permute.xlu0 %321 }
 0x19f   :  { %v326_v38 = vperm.slane %v322_v35, %v3391_v36  ;;  %v3429_v35 = vld [vmem:[%s4540_s7 + $0x60] sm:$0xff] }
 0x1a0   :  { %244 = vmatpush.msra.mxu0 %v3429_v35 }
 0x1a6   :  { %v325_v37 = vpop.permute.xlu1 %324 }
 0x1a7   :  { %v327_v39 = vperm.slane %v325_v37, %v3391_v36  ;;  %v3435_v37 = vld [vmem:[%s4540_s7 + $0x58] sm:$0xff] }
 0x1a8   :  { %245 = vmatpush.msra.mxu0 %v3435_v37 }
 0x1a9   :  { %v329_v40 = vsel %vm328_vm2, %v327_v39, %v326_v38  ;;  %v3441_v38 = vld [vmem:[%s4540_s7 + $0x50] sm:$0xff]  ;;  %v3447_v39 = vld [vmem:[%s4540_s7 + $0x48] sm:$0xff] }
 0x1aa   :  { %v332_v41 = vsel %vm331_vm3, %v329_v40, -inf  ;;  %246 = vmatpush.msra.mxu0 %v3441_v38 }
 0x1ab   :  { %333 = vmax.xlane.f32.xlu0 %v332_v41  ;;  %v3453_v41 = vld [vmem:[%s4540_s7 + $0x40] sm:$0xff] }
 0x1ac   :  { %247 = vmatpush.msra.mxu0 %v3447_v39 }
 0x1ae   :  { %248 = vmatpush.msra.mxu0 %v3453_v41 }
 0x1d1   :  { %v409_v43 = vpop.xlane.xlu1 %408 }
 0x1d2   :  { %v413_v45 = vperm.slane %v409_v43, %v3391_v36 }
 0x1d4   :  { %v414_v46 = vsel %vm328_vm2, %v413_v45, %v412_v44  ;;  %v3471_v44 = vld [vmem:[%s4540_s7 + $0x28] sm:$0xff] }
 0x1d5   :  { %v417_v47 = vsel %vm416_vm4, %v414_v46, -inf }
 0x1d6   :  { %418 = vmax.xlane.f32.xlu2 %v417_v47  ;;  %v3477_v47 = vld [vmem:[%s4540_s7 + $0x20] sm:$0xff] }
 0x21e   :  { %v334_v48 = vpop.xlane.xlu0 %333 }
 0x21f   :  { %v336_v49 = vperm.slane %v334_v48, 0  ;;  %v337_v50 = vperm.slane %v334_v48, 1 }
 0x221   :  { %v340_v51 = vsub.f32 %v316_v27, %v336_v49  ;;  %v341_v52 = vsub.f32 %v317_v30, %v337_v50  ;;  %v3483_v49 = vld [vmem:[%s4540_s7 + $0x18] sm:$0xff] }
 0x223   :  { %v342_v53 = vmul.f32 1.442695, %v340_v51  ;;  %v344_v54 = vmul.f32 1.442695, %v341_v52  ;;  %v3490_v52 = vld [vmem:[%s4540_s7 + $0x10] sm:$0xff] }
 0x225   :  { %2748 = vpow2.f32 %v342_v53  ;;  %v3496_v53 = vld [vmem:[%s4540_s7 + $0x8] sm:$0xff] }
 0x226   :  { %2750 = vpow2.f32 %v344_v54  ;;  %v3502_v54 = vld [vmem:[%s4540_s7] sm:$0xff] }
 0x22b   :  { %v2749_v55 = vpop.eup %2748 }
 0x22c   :  { %v2751_v56 = vpop.eup %2750  ;;  %349 = vperm.xlu2 %2743, %v2749_v55  }
 0x22d   :  { %352 = vperm.xlu1 %2742, %v2751_v56  }
 0x249   :  { %v419_v57 = vpop.xlane.xlu2 %418 }
 0x24a   :  { %v421_v58 = vperm.slane %v419_v57, 0  ;;  %v422_v59 = vperm.slane %v419_v57, 1 }
 0x24c   :  { %v425_v60 = vsub.f32 %v406_v42, %v421_v58  ;;  %v426_v61 = vsub.f32 %v409_v43, %v422_v59  ;;  %v3459_v42 = vld [vmem:[%s4540_s7 + $0x38] sm:$0xff]  ;;  %v3465_v43 = vld [vmem:[%s4540_s7 + $0x30] sm:$0xff] }
 0x24d   :  { %249 = vmatpush.msra.mxu0 %v3459_v42 }
 0x24e   :  { %v427_v62 = vmul.f32 1.442695, %v425_v60  ;;  %v429_v63 = vmul.f32 1.442695, %v426_v61 }
 0x24f   :  { %250 = vmatpush.msra.mxu0 %v3465_v43 }
 0x250   :  { %2752 = vpow2.f32 %v427_v62 }
 0x251   :  { %2754 = vpow2.f32 %v429_v63  ;;  %251 = vmatpush.msra.mxu0 %v3471_v44 }
 0x253   :  { %252 = vmatpush.msra.mxu0 %v3477_v47 }
 0x255   :  { %253 = vmatpush.msra.mxu0 %v3483_v49 }
 0x256   :  { %v2753_v5 = vpop.eup %2752 }
 0x257   :  { %v2755_v6 = vpop.eup %2754  ;;  %434 = vperm.xlu2 %2743, %v2753_v5   ;;  %254 = vmatpush.msra.mxu0 %v3490_v52 }
 0x258   :  { %437 = vperm.xlu1 %2742, %v2755_v6  }
 0x259   :  { %255 = vmatpush.msra.mxu0 %v3496_v53 }
 0x25b   :  { %256 = vmatpush.msra.mxu0 %v3502_v54 }
 0x286   :  { %v350_v7 = vpop.permute.xlu2 %349 }
 0x287   :  { %v354_v9 = vperm.slane %v350_v7, %v3391_v36 }
 0x29f   :  { %v353_v8 = vpop.permute.xlu1 %352 }
 0x2a0   :  { %v355_v10 = vperm.slane %v353_v8, %v3391_v36 }
 0x2a2   :  { %v356_v12 = vsel %vm328_vm2, %v355_v10, %v354_v9 }
 0x2a3   :  { %v358_v13 = vsel %vm331_vm3, %v356_v12, 0.0 }
 0x2a4   :  { %359 = vadd.xlane.f32.xlu2 %v358_v13 }
 0x2b1   :  { %v435_v14 = vpop.permute.xlu2 %434 }
 0x2b2   :  { %v439_v16 = vperm.slane %v435_v14, %v3391_v36 }
 0x2ca   :  { %v438_v15 = vpop.permute.xlu1 %437 }
 0x2cb   :  { %v440_v18 = vperm.slane %v438_v15, %v3391_v36 }
 0x2cd   :  { %v441_v19 = vsel %vm328_vm2, %v440_v18, %v439_v16 }
 0x2ce   :  { %v443_v22 = vsel %vm416_vm4, %v441_v19, 0.0 }
 0x2cf   :  { %444 = vadd.xlane.f32.xlu0 %v443_v22 }
 0x317   :  { %v360_v23 = vpop.xlane.xlu2 %359 }
 0x318   :  { %2756 = vrcp.f32 %v360_v23 }
 0x31e   :  { %v2757_v25 = vpop.eup %2756 }
 0x31f   :  { %v364_v26 = vperm.slane %v2757_v25, 1  ;;  %v363_v27 = vperm.slane %v2757_v25, 0 }
 0x321   :  { %v368_v29 = vmul.f32 %v2751_v56, %v364_v26  ;;  %v367_v30 = vmul.f32 %v2749_v55, %v363_v27  ;;  %v234_v55 = vld [vmem:[#allocation2] sm:$0x3] }
 0x322   :  { %257 = vmatmul.f32.vlgmr.msra.gmra.mxu0 %v234_v55 }
 0x323   :  { %376 = vperm.xlu0 %2741, %v368_v29   ;;  %371 = vperm.xlu1 %2742, %v367_v30  }
 0x342   :  { %v445_v40 = vpop.xlane.xlu0 %444 }
 0x343   :  { %2758 = vrcp.f32 %v445_v40 }
 0x349   :  { %v2759_v45 = vpop.eup %2758 }
 0x34a   :  { %v448_v46 = vperm.slane %v2759_v45, 0  ;;  %v449_v50 = vperm.slane %v2759_v45, 1 }
 0x34c   :  { %v452_v48 = vmul.f32 %v2753_v5, %v448_v46  ;;  %v453_v51 = vmul.f32 %v2755_v6, %v449_v50 }
 0x34e   :  { %456 = vperm.xlu1 %2742, %v452_v48  }
 0x356   :  { %461 = vperm.xlu1 %2742, %v453_v51  }
 0x395   :  { %v377_v56 = vpop.permute.xlu0 %376  ;;  %v372_v57 = vpop.permute.xlu1 %371 }
 0x396   :  { %v380_v58 = vmul.f32 %v377_v56, %v3363_v17  ;;  %v379_v59 = vmul.f32 %v372_v57, %v3358_v11 }
 0x398   :  { %v388_v60 = vsel %vm261_vm0, %v380_v58, 0.0  ;;  %v381_v61 = vsel %vm261_vm0, %v379_v59, 0.0  ;;  %v3520_v59 = vld [vmem:[%s4542_s9 + $0x58] sm:$0xff] }
 0x399   :  { %v389_v62 = vrot.slane %v388_v60, 4  ;;  %v382_v63 = vrot.slane %v381_v61, 4  ;;  %523 = vmatpush.msra.mxu3 %v3520_v59  ;;  %1025 = vmatpush.msrb.mxu0 %v3520_v59 }
 0x39b   :  { %v390_v5 = vadd.f32 %v389_v62, %v388_v60  ;;  %v383_v6 = vadd.f32 %v382_v63, %v381_v61  ;;  %v3525_v60 = vld [vmem:[%s4542_s9 + $0x50] sm:$0xff]  ;;  %v3532_v61 = vld [vmem:[%s4542_s9 + $0x48] sm:$0xff]  ;;  %v3537_v62 = vld [vmem:[%s4543_s10 + $0x18] sm:$0xff] }
 0x39c   :  { %524 = vmatpush.msra.mxu3 %v3525_v60  ;;  %507 = vmatpush.msra.mxu2 %v3537_v62  ;;  %v3544_v63 = vld [vmem:[%s4543_s10 + $0x10] sm:$0xff] }
 0x39d   :  { %v391_v7 = vrot.slane %v390_v5, 2  ;;  %v384_v8 = vrot.slane %v383_v6, 2  ;;  %1026 = vmatpush.msrb.mxu0 %v3525_v60 }
 0x39e   :  { %525 = vmatpush.msra.mxu3 %v3532_v61  ;;  %508 = vmatpush.msra.mxu2 %v3544_v63 }
 0x39f   :  { %v392_v9 = vadd.f32 %v391_v7, %v390_v5  ;;  %v385_v10 = vadd.f32 %v384_v8, %v383_v6  ;;  %v3549_v5 = vld [vmem:[%s4542_s9 + $0x40] sm:$0xff]  ;;  %v3554_v6 = vld [vmem:[%s4543_s10 + $0x8] sm:$0xff]  ;;  %v3562_v7 = vld [vmem:[%s4542_s9 + $0x38] sm:$0xff]  ;;  %1027 = vmatpush.msrb.mxu0 %v3532_v61 }
 0x3a0   :  { %526 = vmatpush.msra.mxu3 %v3549_v5  ;;  %509 = vmatpush.msra.mxu2 %v3554_v6  ;;  %v3570_v8 = vld [vmem:[%s4542_s9 + $0x30] sm:$0xff] }
 0x3a1   :  { %v386_v12 = vrot.slane %v385_v10, 1  ;;  %v393_v13 = vrot.slane %v392_v9, 1  ;;  %1028 = vmatpush.msrb.mxu0 %v3549_v5 }
 0x3a2   :  { %527 = vmatpush.msra.mxu3 %v3562_v7 }
 0x3a3   :  { %v387_v14 = vadd.f32 %v386_v12, %v385_v10  ;;  %v394_v15 = vadd.f32 %v393_v13, %v392_v9  ;;  %v3577_v9 = vld [vmem:[%s4542_s9 + $0x28] sm:$0xff]  ;;  %1029 = vmatpush.msrb.mxu0 %v3562_v7  ;;  %v3584_v10 = vld [vmem:[%s4542_s9 + $0x20] sm:$0xff]  ;;  %v3591_v12 = vld [vmem:[%s4542_s9 + $0x18] sm:$0xff] }
 0x3a4   :  { %528 = vmatpush.msra.mxu3 %v3570_v8  ;;  %v3598_v13 = vld [vmem:[%s4542_s9 + $0x10] sm:$0xff] }
 0x3a5   :  { %v482_v16 = vsel %vm328_vm2, %v394_v15, %v387_v14  ;;  %1030 = vmatpush.msrb.mxu0 %v3570_v8  ;;  %v3605_v14 = vld [vmem:[%s4542_s9 + $0x8] sm:$0xff]  ;;  %v3615_v15 = vld [vmem:[%s4543_s10] sm:$0xff] }
 0x3a6   :  { %483 = vrot.lane.b32.xlu1 %v482_v16, %s3178_s22  ;;  %529 = vmatpush.msra.mxu3 %v3577_v9  ;;  %4577 = vst [vmem:[#allocation20_spill] sm:$0xff] %v3615_v15  ;;  %v3620_v16 = vld [vmem:[%s4542_s9] sm:$0xff] }
 0x3a7   :  { %1031 = vmatpush.msrb.mxu0 %v3577_v9  ;;  %510 = vmatpush.msra.mxu2 %v3615_v15 }
 0x3a8   :  { %530 = vmatpush.msra.mxu3 %v3584_v10  ;;  %2672 = vmatmul.msk.f32.vlgmr.msra.gmra.mxu2 %vm261_vm0, %v3353_v4  ;;  %v258_v4 = vpop.f32.mrf.mxu0 }
 0x3a9   :  { %1032 = vmatpush.msrb.mxu0 %v3584_v10 }
 0x3aa   :  { %531 = vmatpush.msra.mxu3 %v3591_v12 }
 0x3ab   :  { %1033 = vmatpush.msrb.mxu0 %v3591_v12 }
 0x3ac   :  { %532 = vmatpush.msra.mxu3 %v3598_v13 }
 0x3ad   :  { %1034 = vmatpush.msrb.mxu0 %v3598_v13 }
 0x3ae   :  { %533 = vmatpush.msra.mxu3 %v3605_v14 }
 0x3af   :  { %1035 = vmatpush.msrb.mxu0 %v3605_v14 }
 0x3b0   :  { %534 = vmatpush.msra.mxu3 %v3620_v16 }
 0x3b1   :  { %1036 = vmatpush.msrb.mxu0 %v3620_v16 }
 0x3b2   :  { %1010 = vmatpush.msrb.mxu3 %v3537_v62 }
 0x3b3   :  { %1488 = vmatpush.msra.mxu0 %v3537_v62 }
 0x3b4   :  { %1011 = vmatpush.msrb.mxu3 %v3544_v63 }
 0x3b5   :  { %1489 = vmatpush.msra.mxu0 %v3544_v63 }
 0x3b6   :  { %1012 = vmatpush.msrb.mxu3 %v3554_v6 }
 0x3b7   :  { %1490 = vmatpush.msra.mxu0 %v3554_v6 }
 0x3b8   :  { %1013 = vmatpush.msrb.mxu3 %v3615_v15 }
 0x3b9   :  { %1491 = vmatpush.msra.mxu0 %v3615_v15 }
 0x3c0   :  { %v457_v18 = vpop.permute.xlu1 %456 }
 0x3c1   :  { %v464_v19 = vmul.f32 %v457_v18, %v3374_v21  ;;  %v238_v18 = vld [vmem:[%s4539_s6] sm:$0x3] }
 0x3c3   :  { %v466_v22 = vsel %vm403_vm1, %v464_v19, 0.0 }
 0x3c4   :  { %v467_v23 = vrot.slane %v466_v22, 4 }
 0x3c6   :  { %v468_v25 = vadd.f32 %v467_v23, %v466_v22 }
 0x3c8   :  { %v462_v26 = vpop.permute.xlu1 %461  ;;  %v469_v29 = vrot.slane %v468_v25, 2 }
 0x3c9   :  { %v465_v27 = vmul.f32 %v462_v26, %v3387_v32 }
 0x3ca   :  { %v470_v45 = vadd.f32 %v469_v29, %v468_v25 }
 0x3cb   :  { %v473_v30 = vsel %vm403_vm1, %v465_v27, 0.0  ;;  %v3645_v27 = vld [vmem:[%s4544_s11] ss:$0 sm:$0xff] }
 0x3cc   :  { %v474_v40 = vrot.slane %v473_v30, 4  ;;  %v471_v51 = vrot.slane %v470_v45, 1  ;;  %4578 = vst [vmem:[#allocation21_spill] sm:$0xff] %v3645_v27 }
 0x3ce   :  { %v475_v46 = vadd.f32 %v474_v40, %v473_v30  ;;  %v472_v56 = vadd.f32 %v471_v51, %v470_v45 }
 0x3d0   :  { %v476_v48 = vrot.slane %v475_v46, 2 }
 0x3d2   :  { %v477_v50 = vadd.f32 %v476_v48, %v475_v46 }
 0x3d4   :  { %v478_v55 = vrot.slane %v477_v50, 1 }
 0x3d6   :  { %v479_v57 = vadd.f32 %v478_v55, %v477_v50 }
 0x3d8   :  { %v488_v58 = vsel %vm328_vm2, %v479_v57, %v472_v56 }
 0x3d9   :  { %489 = vrot.lane.b32.xlu0 %v488_v58, %s3185_s4 }
 0x3e1   :  { %564 = vrot.lane.b32.xlu0 %v238_v18, %s3178_s22 }
 0x418   :  { %v484_v19 = vpop.permute.xlu1 %483 }
 0x419   :  { %v492_v22 = vsel %vm261_vm0, %v258_v4, %v484_v19 }
 0x42b   :  { %v512_v26 = vpop.f32.mrf.mxu2 }
 0x44b   :  { %v490_v23 = vpop.permute.xlu0 %489 }
 0x44c   :  { %v494_v25 = vsel %vm493_vm5, %v492_v22, %v490_v23 }
 0x44d   :  { %2673 = vmatmul.msk.f32.vlgmr.msra.gmra.mxu3 %vm515_vm6, %v494_v25 }
 0x4d0   :  { %v536_v29 = vpop.f32.mrf.mxu3 }
 0x4d1   :  { %v537_v30 = vadd.f32 %v536_v29, %v512_v26  ;;  %v565_v29 = vpop.permute.xlu0 %564 }
 0x4d3   :  { %v542_v40 = vadd.f32 %v3645_v27, %v537_v30 }
 0x4d5   :  { %2760 = vtanh.f32 %v542_v40  ;;  %v2674_v46 = vmul.f32 -1.442695, %v542_v40 }
 0x4d7   :  { %2762 = vpow2.f32 %v2674_v46 }
 0x4db   :  { %v2761_v45 = vpop.eup %2760 }
 0x4dc   :  { %569 = vrot.lane.b32.xlu1 %v2761_v45, %s3185_s4 }
 0x4dd   :  { %v2763_v48 = vpop.eup %2762 }
 0x4de   :  { %v546_v50 = vadd.f32 1.0, %v2763_v48  ;;  %v3654_v48 = vld [vmem:[#allocation8 + $0x18] sm:$0xff] }
 0x4df   :  { %4580 = vst [vmem:[#allocation23_spill] sm:$0xff] %v3654_v48  ;;  %624 = vmatpush.msrb.mxu2 %v3654_v48  ;;  %1116 = vmatpush.msra.mxu3 %v3654_v48 }
 0x4e0   :  { %2764 = vrcp.f32 %v546_v50  ;;  %v558_v18 = vand.u32 2147483648, %v546_v50  ;;  %vm552_vm8 = vweird.f32 %v546_v50  ;;  %v556_v4 = vand.u32 2147483647, %v546_v50 }
 0x4e2   :  { %v559_v22 = vor.u32 1.1754944e-38, %v558_v18  ;;  %vm557_vm10 = vcmp.eq.f32.partialorder %v556_v4, 8.507059e+37  ;;  %v3674_v18 = vld [vmem:[#allocation10 + $0x10] sm:$0xff]  ;;  %v3677_v4 = vld [vmem:[#allocation10 + $0x8] sm:$0xff] }
 0x4e6   :  { %v2765_v51 = vpop.eup %2764 }
 0x4e7   :  { %v548_v55 = vmul.f32 %v2765_v51, %v546_v50  ;;  %vm553_vm7 = vweird.f32 %v2765_v51  ;;  %v3656_v50 = vld [vmem:[#allocation8 + $0x10] sm:$0xff] }
 0x4e8   :  { %vm554_vm9 = vmor %vm552_vm8, %vm553_vm7  ;;  %4581 = vst [vmem:[#allocation24_spill] sm:$0xff] %v3656_v50  ;;  %625 = vmatpush.msrb.mxu2 %v3656_v50  ;;  %1117 = vmatpush.msra.mxu3 %v3656_v50 }
 0x4e9   :  { %v549_v56 = vsub.f32 1.0, %v548_v55  ;;  %v3662_v55 = vld [vmem:[#allocation8 + $0x8] sm:$0xff] }
 0x4ea   :  { %4582 = vst [vmem:[#allocation25_spill] sm:$0xff] %v3662_v55  ;;  %626 = vmatpush.msrb.mxu2 %v3662_v55  ;;  %1118 = vmatpush.msra.mxu3 %v3662_v55 }
 0x4eb   :  { %v550_v57 = vmul.f32 %v2765_v51, %v549_v56  ;;  %v3667_v56 = vld [vmem:[#allocation8] sm:$0xff] }
 0x4ec   :  { %4583 = vst [vmem:[#allocation26_spill] sm:$0xff] %v3667_v56  ;;  %627 = vmatpush.msrb.mxu2 %v3667_v56  ;;  %1119 = vmatpush.msra.mxu3 %v3667_v56 }
 0x4ed   :  { %v551_v58 = vadd.f32 %v2765_v51, %v550_v57 }
 0x4ef   :  { %v555_v19 = vsel %vm554_vm9, %v2765_v51, %v551_v58  ;;  %v3659_v51 = vld [vmem:[#allocation10 + $0x18] sm:$0xff] }
 0x4f0   :  { %v560_v23 = vsel %vm557_vm10, %v559_v22, %v555_v19  ;;  %599 = vmatpush.msrb.mxu1 %v3659_v51  ;;  %v3679_v19 = vld [vmem:[#allocation10] sm:$0xff] }
 0x4f1   :  { %v567_v30 = vmul.f32 %v565_v29, %v560_v23  ;;  %v2670_v22 = vld [vmem:[%s4539_s6 + $0x2] sm:$0x3]  ;;  %v3700_v29 = vld [vmem:[%s4547_s14] ss:$0 sm:$0xff] }
 0x4f2   :  { %600 = vmatpush.msrb.mxu1 %v3674_v18  ;;  %4584 = vst [vmem:[#allocation27_spill] sm:$0xff] %v3700_v29 }
 0x4f4   :  { %601 = vmatpush.msrb.mxu1 %v3677_v4 }
 0x4f6   :  { %602 = vmatpush.msrb.mxu1 %v3679_v19 }
 0x54e   :  { %v570_v25 = vpop.permute.xlu1 %569 }
 0x54f   :  { %v572_v26 = vmul.f32 %v570_v25, %v560_v23 }
 0x551   :  { %574 = vrot.lane.b32.xlu2 %v572_v26, %s3178_s22 }
 0x5ab   :  { %v575_v40 = vpop.permute.xlu2 %574 }
 0x5ac   :  { %v3650_v45 = vadd.f32 %v575_v40, %v567_v30 }
 0x5ae   :  { %4579 = vst [vmem:[#allocation22_spill] sm:$0xff] %v3650_v45  ;;  %2766 = vtanh.f32 %v3650_v45 }
 0x5b4   :  { %v2767_v46 = vpop.eup %2766 }
 0x5b5   :  { %580 = vrot.lane.b32.xlu1 %v2767_v46, %s3185_s4 }
 0x627   :  { %v581_v57 = vpop.permute.xlu1 %580 }
 0x628   :  { %v583_v58 = vmul.f32 %v581_v57, %v560_v23  ;;  %v2669_v23 = vld [vmem:[%s4538_s5 + $0x2] sm:$0x3] }
 0x629   :  { %2675 = vmatmul.msk.f32.vlgmr.msrb.gmra.mxu1 %vm261_vm0, %v2669_v23 }
 0x62a   :  { %608 = vrot.lane.b32.xlu0 %v583_v58, %s3178_s22 }
 0x632   :  { %657 = vrot.lane.b32.xlu0 %v2670_v22, %s3178_s22 }
 0x69c   :  { %v3691_v25 = vpop.permute.xlu0 %608 }
 0x69d   :  { %2676 = vmatmul.msk.f32.vlgmr.msrb.gmra.mxu2 %vm261_vm0, %v3691_v25  ;;  %2683 = vmatmul.msk.f32.vlgmr.msrb.gmra.mxu3 %vm261_vm0, %v3691_v25 }
 0x6a6   :  { %v604_v26 = vpop.f32.mrf.mxu1 }
 0x720   :  { %v629_v30 = vpop.f32.mrf.mxu2 }
 0x721   :  { %v630_v40 = vadd.f32 %v629_v30, %v604_v26 }
 0x723   :  { %v635_v46 = vadd.f32 %v3700_v29, %v630_v40 }
 0x725   :  { %2768 = vtanh.f32 %v635_v46  ;;  %v2677_v58 = vmul.f32 -1.442695, %v635_v46 }
 0x727   :  { %2770 = vpow2.f32 %v2677_v58  ;;  %v658_v58 = vpop.permute.xlu0 %657 }
 0x72b   :  { %v2769_v57 = vpop.eup %2768 }
 0x72c   :  { %662 = vrot.lane.b32.xlu1 %v2769_v57, %s3185_s4 }
 0x72d   :  { %v2771_v22 = vpop.eup %2770 }
 0x72e   :  { %v639_v23 = vadd.f32 1.0, %v2771_v22 }
 0x730   :  { %2772 = vrcp.f32 %v639_v23  ;;  %v651_v50 = vand.u32 2147483648, %v639_v23  ;;  %vm645_vm12 = vweird.f32 %v639_v23  ;;  %v649_v26 = vand.u32 2147483647, %v639_v23 }
 0x732   :  { %v652_v40 = vor.u32 1.1754944e-38, %v651_v50  ;;  %vm650_vm14 = vcmp.eq.f32.partialorder %v649_v26, 8.507059e+37  ;;  %v3714_v50 = vld [vmem:[#allocation11 + $0x8] sm:$0xff] }
 0x736   :  { %v2773_v20 = vpop.eup %2772 }
 0x737   :  { %v641_v45 = vmul.f32 %v2773_v20, %v639_v23  ;;  %vm646_vm11 = vweird.f32 %v2773_v20 }
 0x738   :  { %vm647_vm13 = vmor %vm645_vm12, %vm646_vm11 }
 0x739   :  { %v642_v27 = vsub.f32 1.0, %v641_v45  ;;  %v3709_v45 = vld [vmem:[#allocation11 + $0x18] sm:$0xff] }
 0x73a   :  { %697 = vmatpush.msra.mxu1 %v3709_v45 }
 0x73b   :  { %v643_v56 = vmul.f32 %v2773_v20, %v642_v27 }
 0x73d   :  { %v644_v55 = vadd.f32 %v2773_v20, %v643_v56 }
 0x73f   :  { %v648_v30 = vsel %vm647_vm13, %v2773_v20, %v644_v55  ;;  %v3711_v20 = vld [vmem:[#allocation11 + $0x10] sm:$0xff]  ;;  %v3717_v55 = vld [vmem:[#allocation11] sm:$0xff] }
 0x740   :  { %v653_v29 = vsel %vm650_vm14, %v652_v40, %v648_v30  ;;  %698 = vmatpush.msra.mxu1 %v3711_v20 }
 0x741   :  { %v660_v22 = vmul.f32 %v658_v58, %v653_v29 }
 0x742   :  { %699 = vmatpush.msra.mxu1 %v3714_v50 }
 0x744   :  { %700 = vmatpush.msra.mxu1 %v3717_v55 }
 0x746   :  { %770 = vmatpush.msrb.mxu1 %v3412_v31 }
 0x748   :  { %771 = vmatpush.msrb.mxu1 %v3417_v33 }
 0x74a   :  { %772 = vmatpush.msrb.mxu1 %v3423_v34 }
 0x74c   :  { %773 = vmatpush.msrb.mxu1 %v3429_v35 }
 0x74e   :  { %774 = vmatpush.msrb.mxu1 %v3435_v37 }
 0x750   :  { %775 = vmatpush.msrb.mxu1 %v3441_v38 }
 0x752   :  { %776 = vmatpush.msrb.mxu1 %v3447_v39 }
 0x754   :  { %777 = vmatpush.msrb.mxu1 %v3453_v41 }
 0x756   :  { %778 = vmatpush.msrb.mxu1 %v3459_v42 }
 0x758   :  { %779 = vmatpush.msrb.mxu1 %v3465_v43 }
 0x75a   :  { %780 = vmatpush.msrb.mxu1 %v3471_v44 }
 0x75c   :  { %781 = vmatpush.msrb.mxu1 %v3477_v47 }
 0x75e   :  { %782 = vmatpush.msrb.mxu1 %v3483_v49 }
 0x760   :  { %783 = vmatpush.msrb.mxu1 %v3490_v52 }
 0x762   :  { %784 = vmatpush.msrb.mxu1 %v3496_v53 }
 0x764   :  { %785 = vmatpush.msrb.mxu1 %v3502_v54 }
 0x79e   :  { %v663_v57 = vpop.permute.xlu1 %662 }
 0x79f   :  { %v665_v46 = vmul.f32 %v663_v57, %v653_v29 }
 0x7a1   :  { %667 = vrot.lane.b32.xlu1 %v665_v46, %s3178_s22 }
 0x813   :  { %v668_v48 = vpop.permute.xlu1 %667 }
 0x814   :  { %v3705_v15 = vadd.f32 %v668_v48, %v660_v22 }
 0x816   :  { %2774 = vtanh.f32 %v3705_v15 }
 0x81c   :  { %v2775_v27 = vpop.eup %2774 }
 0x81d   :  { %673 = vrot.lane.b32.xlu0 %v2775_v27, %s3185_s4 }
 0x88f   :  { %v674_v48 = vpop.permute.xlu0 %673 }
 0x890   :  { %v676_v56 = vmul.f32 %v674_v48, %v653_v29 }
 0x892   :  { %681 = vrot.lane.b32.xlu2 %v676_v56, %s3178_s22 }
 0x8ec   :  { %v682_v23 = vpop.permute.xlu2 %681 }
 0x8ed   :  { %2678 = vmatmul.msk.f32.vlgmr.msra.gmra.mxu1 %vm261_vm0, %v682_v23 }
 0x8ee   :  { %1503 = vmatpush.msra.mxu1 %v3520_v59  ;;  %v3751_v59 = vld [vmem:[#allocation13 + $0x18] sm:$0xff] }
 0x8ef   :  { %724 = vmatpush.msra.mxu2 %v3751_v59  ;;  %1203 = vmatpush.msrb.mxu3 %v3751_v59 }
 0x8f0   :  { %1504 = vmatpush.msra.mxu1 %v3525_v60  ;;  %v3754_v60 = vld [vmem:[#allocation13 + $0x10] sm:$0xff] }
 0x8f1   :  { %725 = vmatpush.msra.mxu2 %v3754_v60  ;;  %1204 = vmatpush.msrb.mxu3 %v3754_v60 }
 0x8f2   :  { %1505 = vmatpush.msra.mxu1 %v3532_v61  ;;  %v3757_v61 = vld [vmem:[#allocation13 + $0x8] sm:$0xff] }
 0x8f3   :  { %726 = vmatpush.msra.mxu2 %v3757_v61  ;;  %1205 = vmatpush.msrb.mxu3 %v3757_v61 }
 0x8f4   :  { %1506 = vmatpush.msra.mxu1 %v3549_v5  ;;  %v3761_v5 = vld [vmem:[#allocation13] sm:$0xff] }
 0x8f5   :  { %727 = vmatpush.msra.mxu2 %v3761_v5  ;;  %1206 = vmatpush.msrb.mxu3 %v3761_v5 }
 0x8f6   :  { %1507 = vmatpush.msra.mxu1 %v3562_v7  ;;  %v3774_v7 = vld [vmem:[%s4549_s16] ss:$0 sm:$0xff] }
 0x8f7   :  { %802 = vmatpush.msrb.mxu2 %v3330_v0  ;;  %v3808_v0 = vld [vmem:[%s4551_s18] ss:$0 sm:$0xff] }
 0x8f8   :  { %1508 = vmatpush.msra.mxu1 %v3570_v8 }
 0x8f9   :  { %803 = vmatpush.msrb.mxu2 %v3335_v1 }
 0x8fa   :  { %1509 = vmatpush.msra.mxu1 %v3577_v9 }
 0x8fb   :  { %804 = vmatpush.msrb.mxu2 %v3341_v2 }
 0x8fc   :  { %1510 = vmatpush.msra.mxu1 %v3584_v10 }
 0x8fd   :  { %805 = vmatpush.msrb.mxu2 %v3347_v3 }
 0x8fe   :  { %1511 = vmatpush.msra.mxu1 %v3591_v12 }
 0x900   :  { %1512 = vmatpush.msra.mxu1 %v3598_v13 }
 0x902   :  { %1513 = vmatpush.msra.mxu1 %v3605_v14 }
 0x904   :  { %1514 = vmatpush.msra.mxu1 %v3620_v16 }
 0x96a   :  { %v702_v8 = vpop.f32.mrf.mxu1 }
 0x96b   :  { %v703_v9 = vadd.f32 %v3774_v7, %v702_v8 }
 0x96d   :  { %2776 = vtanh.f32 %v703_v9 }
 0x973   :  { %v2777_v10 = vpop.eup %2776 }
 0x974   :  { %2679 = vmatmul.msk.f32.vlgmr.msra.gmra.mxu2 %vm261_vm0, %v2777_v10 }
 0x975   :  { %1091 = vmatpush.msra.mxu2 %v3659_v51 }
 0x977   :  { %1092 = vmatpush.msra.mxu2 %v3674_v18 }
 0x979   :  { %1093 = vmatpush.msra.mxu2 %v3677_v4 }
 0x97b   :  { %1094 = vmatpush.msra.mxu2 %v3679_v19 }
 0x97c   :  { %2682 = vmatmul.msk.f32.vlgmr.msrb.gmra.mxu2 %vm261_vm0, %v3691_v25 }
 0x97d   :  { %1179 = vmatpush.msrb.mxu2 %v3709_v45 }
 0x97f   :  { %1180 = vmatpush.msrb.mxu2 %v3711_v20 }
 0x981   :  { %1181 = vmatpush.msrb.mxu2 %v3714_v50 }
 0x983   :  { %1182 = vmatpush.msrb.mxu2 %v3717_v55 }
 0x984   :  { %2686 = vmatmul.msk.f32.vlgmr.msra.gmra.mxu2 %vm261_vm0, %v682_v23 }
 0x985   :  { %1248 = vmatpush.msra.mxu2 %v3412_v31 }
 0x987   :  { %1249 = vmatpush.msra.mxu2 %v3417_v33 }
 0x989   :  { %1250 = vmatpush.msra.mxu2 %v3423_v34 }
 0x98b   :  { %1251 = vmatpush.msra.mxu2 %v3429_v35 }
 0x98d   :  { %1252 = vmatpush.msra.mxu2 %v3435_v37 }
 0x98f   :  { %1253 = vmatpush.msra.mxu2 %v3441_v38 }
 0x991   :  { %1254 = vmatpush.msra.mxu2 %v3447_v39 }
 0x993   :  { %1255 = vmatpush.msra.mxu2 %v3453_v41 }
 0x995   :  { %1256 = vmatpush.msra.mxu2 %v3459_v42 }
 0x997   :  { %1257 = vmatpush.msra.mxu2 %v3465_v43 }
 0x999   :  { %1258 = vmatpush.msra.mxu2 %v3471_v44 }
 0x99b   :  { %1259 = vmatpush.msra.mxu2 %v3477_v47 }
 0x99d   :  { %1260 = vmatpush.msra.mxu2 %v3483_v49 }
 0x99f   :  { %1261 = vmatpush.msra.mxu2 %v3490_v52 }
 0x9a1   :  { %1262 = vmatpush.msra.mxu2 %v3496_v53 }
 0x9a3   :  { %1263 = vmatpush.msra.mxu2 %v3502_v54 }
 0x9f7   :  { %v729_v1 = vpop.f32.mrf.mxu2 }
 0x9f8   :  { %v730_v2 = vadd.f32 %v3808_v0, %v729_v1 }
 0x9fa   :  { %733 = vst [vmem:[#allocation14 + $0x2] sm:$0x3] %v730_v2  ;;  %v735_v41 = vsel %vm734_vm15, %v730_v2, -inf }
 0x9ff   :  { %v807_v3 = vpop.f32.mrf.mxu2 }
 0xa00   :  { %v811_v31 = vrot.slane %v807_v3, 1  ;;  %v812_v33 = vperm.slane %v807_v3, 0 }
 0xa02   :  { %v813_v34 = vperm.slane %v811_v31, 0  ;;  %901 = vrot.lane.b32.xlu2 %v812_v33, %s3183_s0  ;;  %v816_v35 = vmul.f32 %v812_v33, %v3358_v11  ;;  %v2681_v31 = vld [vmem:[%s4585_s13 + $0x1] sm:$0x1] }
 0xa03   :  { %vm760_vm8 = vcmp.gt.f32.partialorder %v2681_v31, 0.0  ;;  %v4587_v31 = vld [vmem:[#allocation20_spill] sm:$0xff] }
 0xa04   :  { %v818_v37 = vsel %vm261_vm0, %v816_v35, 0.0  ;;  %v817_v38 = vmul.f32 %v813_v34, %v3363_v17  ;;  %v4586_v35 = vmov 0  }
 0xa05   :  { %819 = vadd.xlane.f32.xlu1 %v818_v37  ;;  %v763_v37 = vsel %vm760_vm8, 1, %v4586_v35 }
 0xa06   :  { %v821_v39 = vsel %vm261_vm0, %v817_v38, 0.0  ;;  %v764_v38 = vperm.slane %v763_v37, 0 }
 0xa07   :  { %822 = vadd.xlane.f32.xlu0 %v821_v39 }
 0xa0a   :  { %903 = vrot.lane.b32.xlu2 %v813_v34, %s3183_s0 }
 0xa0f   :  { %736 = vmax.xlane.f32.xlu0 %v735_v41 }
 0xa5c   :  { %v902_v42 = vpop.permute.xlu2 %901 }
 0xa5d   :  { %v907_v53 = vmul.f32 %v902_v42, %v3374_v21 }
 0xa5f   :  { %v909_v54 = vsel %vm403_vm1, %v907_v53, 0.0 }
 0xa64   :  { %v904_v43 = vpop.permute.xlu2 %903 }
 0xa65   :  { %v908_v44 = vmul.f32 %v904_v43, %v3387_v32 }
 0xa67   :  { %v912_v11 = vsel %vm403_vm1, %v908_v44, 0.0 }
 0xa68   :  { %913 = vadd.xlane.f32.xlu1 %v912_v11 }
 0xa78   :  { %v820_v47 = vpop.xlane.xlu1 %819 }
 0xa79   :  { %v824_v17 = vadd.f32 %v820_v47, %v3377_v24 }
 0xa7a   :  { %v823_v49 = vpop.xlane.xlu0 %822 }
 0xa7b   :  { %829 = vperm.xlu2 %2743, %v824_v17   ;;  %v825_v52 = vadd.f32 %v823_v49, %v3381_v28 }
 0xa82   :  { %v737_v13 = vpop.xlane.xlu0 %736 }
 0xa83   :  { %832 = vperm.xlu2 %2743, %v825_v52   ;;  %vm738_vm7 = vcmp.eq.f32.partialorder %v730_v2, %v737_v13 }
 0xa84   :  { %v739_v14 = vsel %vm738_vm7, %v3391_v36, 128 }
 0xa85   :  { %v740_v30 = vsel %vm734_vm15, %v739_v14, 2147483647 }
 0xa86   :  { %v742_v21 = vshra.s32 %v740_v30, 16  ;;  %v741_v53 = vand.u32 65535, %v740_v30 }
 0xa88   :  { %v744_v57 = vcvt.s32.f32 %v742_v21 }
 0xaac   :  { %910 = vadd.xlane.f32.xlu2 %v909_v54  ;;  %v743_v54 = vcvt.s32.f32 %v741_v53  ;;  %v3857_v53 = vld [vmem:[#allocation5 + $0x8] sm:$0xff] }
 0xad5   :  { %v830_v12 = vpop.permute.xlu2 %829 }
 0xad6   :  { %v834_v25 = vperm.slane %v830_v12, %v3391_v36 }
 0xadb   :  { %v914_v46 = vpop.xlane.xlu1 %913 }
 0xadc   :  { %v918_v22 = vperm.slane %v914_v46, %v3391_v36 }
 0xadd   :  { %v833_v32 = vpop.permute.xlu2 %832 }
 0xade   :  { %v835_v29 = vperm.slane %v833_v32, %v3391_v36 }
 0xae0   :  { %v836_v26 = vsel %vm328_vm2, %v835_v29, %v834_v25 }
 0xae1   :  { %v838_v40 = vsel %vm331_vm3, %v836_v26, -inf }
 0xae2   :  { %839 = vmax.xlane.f32.xlu1 %v838_v40  ;;  %v4567_v40 = vmov 0.0  }
 0xae3   :  { %233 = vst [vmem:[#allocation14] sm:$0x3] %v4567_v40 }
 0xaea   :  { %745 = vmin.xlane.f32.xlu1 %v744_v57 }
 0xb1f   :  { %v911_v58 = vpop.xlane.xlu2 %910 }
 0xb20   :  { %v917_v27 = vperm.slane %v911_v58, %v3391_v36 }
 0xb22   :  { %v919_v48 = vsel %vm328_vm2, %v918_v22, %v917_v27 }
 0xb23   :  { %v921_v56 = vsel %vm416_vm4, %v919_v48, -inf }
 0xb24   :  { %922 = vmax.xlane.f32.xlu0 %v921_v56 }
 0xb55   :  { %v840_v23 = vpop.xlane.xlu1 %839 }
 0xb56   :  { %v842_v8 = vperm.slane %v840_v23, 0  ;;  %v843_v9 = vperm.slane %v840_v23, 1 }
 0xb58   :  { %v846_v10 = vsub.f32 %v824_v17, %v842_v8  ;;  %v847_v1 = vsub.f32 %v825_v52, %v843_v9 }
 0xb5a   :  { %v848_v2 = vmul.f32 1.442695, %v846_v10  ;;  %v850_v3 = vmul.f32 1.442695, %v847_v1  ;;  %v762_v10 = vld [vmem:[#allocation2 + $0x2] sm:$0x3] }
 0xb5c   :  { %2778 = vpow2.f32 %v848_v2 }
 0xb5d   :  { %2780 = vpow2.f32 %v850_v3  ;;  %v746_v52 = vpop.xlane.xlu1 %745 }
 0xb5e   :  { %vm747_vm9 = vcmp.eq.f32.partialorder %v744_v57, %v746_v52  ;;  %v752_v27 = vcvt.f32.s32 %v746_v52 }
 0xb5f   :  { %v748_v12 = vsel %vm747_vm9, %v743_v54, inf }
 0xb60   :  { %v753_v56 = vshll.u32 %v752_v27, 16 }
 0xb62   :  { %v3837_v33 = vpop.eup %2778 }
 0xb63   :  { %v2781_v34 = vpop.eup %2780  ;;  %855 = vperm.xlu0 %2741, %v3837_v33  }
 0xb64   :  { %858 = vperm.xlu1 %2742, %v2781_v34  }
 0xb6c   :  { %766 = vperm.xlu1 %2742, %v764_v38  }
 0xb97   :  { %v923_v39 = vpop.xlane.xlu0 %922 }
 0xb98   :  { %v925_v41 = vperm.slane %v923_v39, 0  ;;  %v926_v42 = vperm.slane %v923_v39, 1 }
 0xb9a   :  { %v929_v43 = vsub.f32 %v911_v58, %v925_v41  ;;  %v930_v44 = vsub.f32 %v914_v46, %v926_v42 }
 0xb9c   :  { %v931_v11 = vmul.f32 1.442695, %v929_v43  ;;  %v933_v47 = vmul.f32 1.442695, %v930_v44 }
 0xb9e   :  { %2782 = vpow2.f32 %v931_v11 }
 0xb9f   :  { %2784 = vpow2.f32 %v933_v47 }
 0xba4   :  { %v2783_v17 = vpop.eup %2782 }
 0xba5   :  { %v2785_v49 = vpop.eup %2784  ;;  %938 = vperm.xlu2 %2743, %v2783_v17  }
 0xba6   :  { %941 = vperm.xlu0 %2741, %v2785_v49  }
 0xbd0   :  { %749 = vmin.xlane.f32.xlu0 %v748_v12 }
 0xbd5   :  { %v856_v13 = vpop.permute.xlu0 %855 }
 0xbd6   :  { %v859_v32 = vpop.permute.xlu1 %858  ;;  %v860_v14 = vperm.slane %v856_v13, %v3391_v36 }
 0xbd7   :  { %v861_v25 = vperm.slane %v859_v32, %v3391_v36 }
 0xbd9   :  { %v862_v29 = vsel %vm328_vm2, %v861_v25, %v860_v14 }
 0xbda   :  { %v864_v26 = vsel %vm331_vm3, %v862_v29, 0.0 }
 0xbdb   :  { %865 = vadd.xlane.f32.xlu1 %v864_v26 }
 0xbde   :  { %v767_v8 = vpop.permute.xlu1 %766 }
 0xbdf   :  { %vm768_vm11 = vcmp.eq.s32.totalorder %v767_v8, 1 }
 0xbff   :  { %v939_v21 = vpop.permute.xlu2 %938 }
 0xc00   :  { %v943_v57 = vperm.slane %v939_v21, %v3391_v36 }
 0xc18   :  { %v942_v30 = vpop.permute.xlu0 %941 }
 0xc19   :  { %v944_v46 = vperm.slane %v942_v30, %v3391_v36 }
 0xc1b   :  { %v945_v58 = vsel %vm328_vm2, %v944_v46, %v943_v57 }
 0xc1c   :  { %v947_v22 = vsel %vm416_vm4, %v945_v58, 0.0 }
 0xc1d   :  { %948 = vadd.xlane.f32.xlu2 %v947_v22 }
 0xc43   :  { %v750_v48 = vpop.xlane.xlu0 %749 }
 0xc44   :  { %v751_v23 = vcvt.f32.s32 %v750_v48  ;;  %v3870_v48 = vld [vmem:[%s4576_s21] sm:$0x3f] }
 0xc46   :  { %v754_v9 = vadd.s32 %v753_v56, %v751_v23 }
 0xc48   :  { %vm755_vm10 = vcmp.eq.s32.totalorder %v3391_v36, %v754_v9 }
 0xc49   :  { %v2680_v1 = vsel %vm755_vm10, 1.0, %v4567_v40 }
 0xc4a   :  { %v769_v2 = vsel %vm768_vm11, %v762_v10, %v2680_v1  ;;  %v3877_v1 = vld [vmem:[%s4576_s21 + $0x8] sm:$0x3f] }
 0xc4b   :  { %786 = vmatmul.f32.vlgmr.msrb.gmra.mxu1 %v769_v2 }
 0xc4c   :  { %1966 = vmatpush.msrb.mxu1 %v3537_v62 }
 0xc4e   :  { %v866_v3 = vpop.xlane.xlu1 %865  ;;  %1967 = vmatpush.msrb.mxu1 %v3544_v63 }
 0xc4f   :  { %2786 = vrcp.f32 %v866_v3 }
 0xc50   :  { %1968 = vmatpush.msrb.mxu1 %v3554_v6 }
 0xc52   :  { %1969 = vmatpush.msrb.mxu1 %v4587_v31 }
 0xc55   :  { %v2787_v37 = vpop.eup %2786 }
 0xc56   :  { %v870_v38 = vperm.slane %v2787_v37, 1  ;;  %v869_v39 = vperm.slane %v2787_v37, 0 }
 0xc58   :  { %v874_v41 = vmul.f32 %v2781_v34, %v870_v38  ;;  %v873_v42 = vmul.f32 %v3837_v33, %v869_v39  ;;  %v3860_v34 = vld [vmem:[#allocation5] sm:$0xff] }
 0xc5a   :  { %882 = vperm.xlu1 %2742, %v874_v41   ;;  %877 = vperm.xlu0 %2741, %v873_v42  }
 0xc90   :  { %v949_v43 = vpop.xlane.xlu2 %948 }
 0xc91   :  { %2788 = vrcp.f32 %v949_v43 }
 0xc97   :  { %v2789_v44 = vpop.eup %2788 }
 0xc98   :  { %v953_v62 = vperm.slane %v2789_v44, 1  ;;  %v952_v11 = vperm.slane %v2789_v44, 0 }
 0xc9a   :  { %v957_v47 = vmul.f32 %v2785_v49, %v953_v62  ;;  %v956_v63 = vmul.f32 %v2783_v17, %v952_v11 }
 0xc9c   :  { %965 = vperm.xlu0 %2741, %v957_v47   ;;  %960 = vperm.xlu2 %2743, %v956_v63  }
 0xccc   :  { %v883_v6 = vpop.permute.xlu1 %882  ;;  %v878_v52 = vpop.permute.xlu0 %877 }
 0xccd   :  { %v886_v54 = vmul.f32 %v3857_v53, %v883_v6  ;;  %v885_v33 = vmul.f32 %v3860_v34, %v878_v52  ;;  %v787_v6 = vpop.f32.mrf.mxu1 }
 0xccf   :  { %v894_v12 = vsel %vm261_vm0, %v886_v54, 0.0  ;;  %v887_v13 = vsel %vm261_vm0, %v885_v33, 0.0 }
 0xcd0   :  { %v895_v32 = vrot.slane %v894_v12, 4  ;;  %v888_v14 = vrot.slane %v887_v13, 4 }
 0xcd2   :  { %v896_v49 = vadd.f32 %v895_v32, %v894_v12  ;;  %v889_v17 = vadd.f32 %v888_v14, %v887_v13  ;;  %v4588_v12 = vld [vmem:[#allocation23_spill] sm:$0xff]  ;;  %v4589_v13 = vld [vmem:[#allocation24_spill] sm:$0xff]  ;;  %v4590_v32 = vld [vmem:[#allocation25_spill] sm:$0xff] }
 0xcd3   :  { %v4591_v14 = vld [vmem:[#allocation26_spill] sm:$0xff] }
 0xcd4   :  { %v897_v25 = vrot.slane %v896_v49, 2  ;;  %v890_v29 = vrot.slane %v889_v17, 2 }
 0xcd6   :  { %v898_v26 = vadd.f32 %v897_v25, %v896_v49  ;;  %v891_v21 = vadd.f32 %v890_v29, %v889_v17  ;;  %v1015_v49 = vpop.f32.mrf.mxu3  ;;  %v4592_v29 = vld [vmem:[#allocation21_spill] sm:$0xff] }
 0xcd8   :  { %v892_v30 = vrot.slane %v891_v21, 1  ;;  %v899_v57 = vrot.slane %v898_v26, 1 }
 0xcda   :  { %v893_v46 = vadd.f32 %v892_v30, %v891_v21  ;;  %v900_v58 = vadd.f32 %v899_v57, %v898_v26 }
 0xcdc   :  { %v986_v22 = vsel %vm328_vm2, %v900_v58, %v893_v46 }
 0xcdd   :  { %987 = vrot.lane.b32.xlu0 %v986_v22, %s3178_s22 }
 0xcf6   :  { %v961_v27 = vpop.permute.xlu2 %960 }
 0xcf7   :  { %v968_v56 = vmul.f32 %v3870_v48, %v961_v27 }
 0xcf9   :  { %v970_v23 = vsel %vm403_vm1, %v968_v56, 0.0 }
 0xcfa   :  { %v971_v8 = vrot.slane %v970_v23, 4 }
 0xcfc   :  { %v972_v9 = vadd.f32 %v971_v8, %v970_v23 }
 0xcfe   :  { %v973_v3 = vrot.slane %v972_v9, 2 }
 0xd00   :  { %v974_v38 = vadd.f32 %v973_v3, %v972_v9 }
 0xd02   :  { %v975_v42 = vrot.slane %v974_v38, 1 }
 0xd04   :  { %v976_v62 = vadd.f32 %v975_v42, %v974_v38  ;;  %v4593_v38 = vld [vmem:[#allocation22_spill] sm:$0xff] }
 0xd0e   :  { %v966_v10 = vpop.permute.xlu0 %965 }
 0xd0f   :  { %v969_v2 = vmul.f32 %v3877_v1, %v966_v10 }
 0xd11   :  { %v977_v31 = vsel %vm403_vm1, %v969_v2, 0.0 }
 0xd12   :  { %v978_v37 = vrot.slane %v977_v31, 4 }
 0xd14   :  { %v979_v39 = vadd.f32 %v978_v37, %v977_v31 }
 0xd16   :  { %v980_v41 = vrot.slane %v979_v39, 2 }
 0xd18   :  { %v981_v43 = vadd.f32 %v980_v41, %v979_v39 }
 0xd1a   :  { %v982_v44 = vrot.slane %v981_v43, 1 }
 0xd1c   :  { %v983_v11 = vadd.f32 %v982_v44, %v981_v43 }
 0xd1e   :  { %v992_v47 = vsel %vm328_vm2, %v983_v11, %v976_v62 }
 0xd1f   :  { %993 = vrot.lane.b32.xlu1 %v992_v47, %s3185_s4  ;;  %v3908_v47 = vld [vmem:[%s4541_s8 + $0x18] sm:$0xff] }
 0xd4f   :  { %v988_v63 = vpop.permute.xlu0 %987 }
 0xd50   :  { %v996_v52 = vsel %vm261_vm0, %v787_v6, %v988_v63  ;;  %v3915_v63 = vld [vmem:[%s4541_s8 + $0x10] sm:$0xff]  ;;  %v3922_v6 = vld [vmem:[%s4541_s8 + $0x8] sm:$0xff] }
 0xd91   :  { %v994_v54 = vpop.permute.xlu1 %993 }
 0xd92   :  { %v997_v33 = vsel %vm493_vm5, %v996_v52, %v994_v54  ;;  %v1096_v52 = vpop.f32.mrf.mxu2 }
 0xd93   :  { %2684 = vmatmul.msk.f32.vlgmr.msrb.gmra.mxu0 %vm515_vm6, %v997_v33  ;;  %v4594_v33 = vld [vmem:[#allocation27_spill] sm:$0xff] }
 0xd94   :  { %1594 = vmatpush.msrb.mxu0 %v4588_v12 }
 0xd96   :  { %1595 = vmatpush.msrb.mxu0 %v4589_v13 }
 0xd98   :  { %1596 = vmatpush.msrb.mxu0 %v4590_v32 }
 0xd9a   :  { %1597 = vmatpush.msrb.mxu0 %v4591_v14 }
 0xe10   :  { %v1038_v17 = vpop.f32.mrf.mxu0 }
 0xe11   :  { %v1039_v25 = vadd.f32 %v1038_v17, %v1015_v49 }
 0xe13   :  { %v1041_v26 = vadd.f32 %v4592_v29, %v1039_v25 }
 0xe15   :  { %2790 = vtanh.f32 %v1041_v26  ;;  %v2685_v30 = vmul.f32 -1.442695, %v1041_v26 }
 0xe17   :  { %2792 = vpow2.f32 %v2685_v30 }
 0xe1b   :  { %v2791_v21 = vpop.eup %2790 }
 0xe1c   :  { %1064 = vrot.lane.b32.xlu0 %v2791_v21, %s3185_s4 }
 0xe1d   :  { %v2793_v57 = vpop.eup %2792 }
 0xe1e   :  { %v1045_v46 = vadd.f32 1.0, %v2793_v57 }
 0xe20   :  { %2794 = vrcp.f32 %v1045_v46  ;;  %v1057_v8 = vand.u32 2147483648, %v1045_v46  ;;  %vm1051_vm13 = vweird.f32 %v1045_v46  ;;  %v1055_v9 = vand.u32 2147483647, %v1045_v46 }
 0xe22   :  { %v1058_v2 = vor.u32 1.1754944e-38, %v1057_v8  ;;  %vm1056_vm7 = vcmp.eq.f32.partialorder %v1055_v9, 8.507059e+37 }
 0xe26   :  { %v2795_v58 = vpop.eup %2794 }
 0xe27   :  { %v1047_v22 = vmul.f32 %v2795_v58, %v1045_v46  ;;  %vm1052_vm12 = vweird.f32 %v2795_v58 }
 0xe28   :  { %vm1053_vm14 = vmor %vm1051_vm13, %vm1052_vm12 }
 0xe29   :  { %v1048_v27 = vsub.f32 1.0, %v1047_v22 }
 0xe2b   :  { %v1049_v56 = vmul.f32 %v2795_v58, %v1048_v27 }
 0xe2d   :  { %v1050_v23 = vadd.f32 %v2795_v58, %v1049_v56 }
 0xe2f   :  { %v1054_v10 = vsel %vm1053_vm14, %v2795_v58, %v1050_v23 }
 0xe30   :  { %v1059_v31 = vsel %vm1056_vm7, %v1058_v2, %v1054_v10 }
 0xe31   :  { %v1062_v39 = vmul.f32 %v1059_v31, %v4593_v38  ;;  %v3970_v38 = vld [vmem:[%s4542_s9 + $0x38] sm:$0xff] }
 0xe8e   :  { %v1065_v3 = vpop.permute.xlu0 %1064 }
 0xe8f   :  { %v1067_v37 = vmul.f32 %v1065_v3, %v1059_v31  ;;  %v3946_v3 = vld [vmem:[%s4542_s9 + $0x58] sm:$0xff] }
 0xe91   :  { %1069 = vrot.lane.b32.xlu2 %v1067_v37, %s3178_s22  ;;  %v3964_v37 = vld [vmem:[%s4542_s9 + $0x40] sm:$0xff] }
 0xeeb   :  { %v1070_v41 = vpop.permute.xlu2 %1069 }
 0xeec   :  { %v3894_v42 = vadd.f32 %v1070_v41, %v1062_v39  ;;  %v3976_v39 = vld [vmem:[%s4542_s9 + $0x30] sm:$0xff]  ;;  %v3982_v41 = vld [vmem:[%s4542_s9 + $0x28] sm:$0xff] }
 0xeee   :  { %2796 = vtanh.f32 %v3894_v42 }
 0xef4   :  { %v2797_v43 = vpop.eup %2796 }
 0xef5   :  { %1075 = vrot.lane.b32.xlu1 %v2797_v43, %s3185_s4  ;;  %v3988_v43 = vld [vmem:[%s4542_s9 + $0x20] sm:$0xff] }
 0xf67   :  { %v1076_v44 = vpop.permute.xlu1 %1075 }
 0xf68   :  { %v1078_v62 = vmul.f32 %v1076_v44, %v1059_v31  ;;  %v3958_v31 = vld [vmem:[%s4542_s9 + $0x48] sm:$0xff]  ;;  %v3994_v44 = vld [vmem:[%s4542_s9 + $0x18] sm:$0xff] }
 0xf6a   :  { %1100 = vrot.lane.b32.xlu0 %v1078_v62, %s3178_s22  ;;  %v4000_v62 = vld [vmem:[%s4542_s9 + $0x10] sm:$0xff] }
 0xfdc   :  { %v3899_v11 = vpop.permute.xlu0 %1100 }
 0xfdd   :  { %2687 = vmatmul.msk.f32.vlgmr.msra.gmra.mxu3 %vm261_vm0, %v3899_v11  ;;  %2694 = vmatmul.msk.f32.vlgmr.msra.gmra.mxu0 %vm261_vm0, %v3899_v11 }
 0xfde   :  { %1280 = vmatpush.msra.mxu3 %v3908_v47  ;;  %1681 = vmatpush.msra.mxu0 %v3751_v59  ;;  %v3929_v59 = vld [vmem:[%s4541_s8] sm:$0xff] }
 0xfe0   :  { %1281 = vmatpush.msra.mxu3 %v3915_v63  ;;  %1682 = vmatpush.msra.mxu0 %v3754_v60 }
 0xfe2   :  { %1282 = vmatpush.msra.mxu3 %v3922_v6  ;;  %1683 = vmatpush.msra.mxu0 %v3757_v61 }
 0xfe4   :  { %1283 = vmatpush.msra.mxu3 %v3929_v59  ;;  %1684 = vmatpush.msra.mxu0 %v3761_v5 }
0x1060   :  { %v1121_v60 = vpop.f32.mrf.mxu3 }
0x1061   :  { %v1122_v54 = vadd.f32 %v1121_v60, %v1096_v52  ;;  %v4006_v52 = vld [vmem:[%s4542_s9 + $0x8] sm:$0xff] }
0x1063   :  { %v1124_v12 = vadd.f32 %v4594_v33, %v1122_v54 }
0x1065   :  { %2798 = vtanh.f32 %v1124_v12  ;;  %v2688_v32 = vmul.f32 -1.442695, %v1124_v12  ;;  %v4092_v12 = vld [vmem:[%s4540_s7 + $0x20] sm:$0xff] }
0x1067   :  { %2800 = vpow2.f32 %v2688_v32  ;;  %v4104_v32 = vld [vmem:[%s4540_s7 + $0x10] sm:$0xff] }
0x106b   :  { %v2799_v13 = vpop.eup %2798 }
0x106c   :  { %1147 = vrot.lane.b32.xlu2 %v2799_v13, %s3185_s4  ;;  %v4098_v13 = vld [vmem:[%s4540_s7 + $0x18] sm:$0xff] }
0x106d   :  { %v2801_v61 = vpop.eup %2800 }
0x106e   :  { %v1128_v14 = vadd.f32 1.0, %v2801_v61  ;;  %v4110_v61 = vld [vmem:[%s4540_s7 + $0x8] sm:$0xff] }
0x1070   :  { %2802 = vrcp.f32 %v1128_v14  ;;  %v1140_v5 = vand.u32 2147483648, %v1128_v14  ;;  %vm1134_vm9 = vweird.f32 %v1128_v14  ;;  %v1138_v21 = vand.u32 2147483647, %v1128_v14 }
0x1072   :  { %v1141_v57 = vor.u32 1.1754944e-38, %v1140_v5  ;;  %vm1139_vm11 = vcmp.eq.f32.partialorder %v1138_v21, 8.507059e+37 }
0x1076   :  { %v2803_v49 = vpop.eup %2802 }
0x1077   :  { %v1130_v17 = vmul.f32 %v2803_v49, %v1128_v14  ;;  %vm1135_vm8 = vweird.f32 %v2803_v49  ;;  %v4116_v14 = vld [vmem:[%s4540_s7] sm:$0xff] }
0x1078   :  { %vm1136_vm10 = vmor %vm1134_vm9, %vm1135_vm8 }
0x1079   :  { %v1131_v25 = vsub.f32 1.0, %v1130_v17 }
0x107b   :  { %v1132_v29 = vmul.f32 %v2803_v49, %v1131_v25 }
0x107d   :  { %v1133_v26 = vadd.f32 %v2803_v49, %v1132_v29 }
0x107f   :  { %v1137_v30 = vsel %vm1136_vm10, %v2803_v49, %v1133_v26 }
0x1080   :  { %v1142_v58 = vsel %vm1139_vm11, %v1141_v57, %v1137_v30 }
0x1081   :  { %v1145_v27 = vmul.f32 %v1142_v58, %v3705_v15  ;;  %v3952_v15 = vld [vmem:[%s4542_s9 + $0x50] sm:$0xff] }
0x10c6   :  { %v1148_v46 = vpop.permute.xlu2 %1147 }
0x10c7   :  { %v1150_v22 = vmul.f32 %v1148_v46, %v1142_v58 }
0x10c9   :  { %1152 = vrot.lane.b32.xlu1 %v1150_v22, %s3178_s22 }
0x113b   :  { %v1153_v56 = vpop.permute.xlu1 %1152 }
0x113c   :  { %v3937_v23 = vadd.f32 %v1153_v56, %v1145_v27 }
0x113e   :  { %2804 = vtanh.f32 %v3937_v23 }
0x1144   :  { %v2805_v8 = vpop.eup %2804 }
0x1145   :  { %1158 = vrot.lane.b32.xlu0 %v2805_v8, %s3185_s4 }
0x11b7   :  { %v1159_v9 = vpop.permute.xlu0 %1158 }
0x11b8   :  { %v1161_v10 = vmul.f32 %v1159_v9, %v1142_v58 }
0x11ba   :  { %1163 = vrot.lane.b32.xlu2 %v1161_v10, %s3178_s22 }
0x1214   :  { %v1164_v2 = vpop.permute.xlu2 %1163 }
0x1215   :  { %2689 = vmatmul.msk.f32.vlgmr.msrb.gmra.mxu2 %vm261_vm0, %v1164_v2 }
0x1216   :  { %1981 = vmatpush.msrb.mxu2 %v3946_v3 }
0x1218   :  { %1982 = vmatpush.msrb.mxu2 %v3952_v15 }
0x121a   :  { %1983 = vmatpush.msrb.mxu2 %v3958_v31 }
0x121c   :  { %1984 = vmatpush.msrb.mxu2 %v3964_v37 }
0x121e   :  { %1985 = vmatpush.msrb.mxu2 %v3970_v38 }
0x1220   :  { %1986 = vmatpush.msrb.mxu2 %v3976_v39 }
0x1222   :  { %1987 = vmatpush.msrb.mxu2 %v3982_v41 }
0x1224   :  { %1988 = vmatpush.msrb.mxu2 %v3988_v43 }
0x1226   :  { %1989 = vmatpush.msrb.mxu2 %v3994_v44 }
0x1228   :  { %1990 = vmatpush.msrb.mxu2 %v4000_v62 }
0x122a   :  { %1991 = vmatpush.msrb.mxu2 %v4006_v52 }
0x122c   :  { %1992 = vmatpush.msrb.mxu2 %v3620_v16  ;;  %v4026_v16 = vld [vmem:[%s4540_s7 + $0x78] sm:$0xff] }
0x1298   :  { %v1184_v60 = vpop.f32.mrf.mxu2 }
0x1299   :  { %v1185_v54 = vadd.f32 %v3774_v7, %v1184_v60  ;;  %v4080_v7 = vld [vmem:[%s4540_s7 + $0x30] sm:$0xff] }
0x129b   :  { %2806 = vtanh.f32 %v1185_v54 }
0x12a1   :  { %v2807_v33 = vpop.eup %2806 }
0x12a2   :  { %2690 = vmatmul.msk.f32.vlgmr.msrb.gmra.mxu3 %vm261_vm0, %v2807_v33 }
0x12a3   :  { %1569 = vmatpush.msrb.mxu3 %v3659_v51  ;;  %v4032_v51 = vld [vmem:[%s4540_s7 + $0x70] sm:$0xff] }
0x12a5   :  { %1570 = vmatpush.msrb.mxu3 %v3674_v18  ;;  %v4038_v18 = vld [vmem:[%s4540_s7 + $0x68] sm:$0xff] }
0x12a7   :  { %1571 = vmatpush.msrb.mxu3 %v3677_v4  ;;  %v4044_v4 = vld [vmem:[%s4540_s7 + $0x60] sm:$0xff] }
0x12a9   :  { %1572 = vmatpush.msrb.mxu3 %v3679_v19  ;;  %v4050_v19 = vld [vmem:[%s4540_s7 + $0x58] sm:$0xff] }
0x12aa   :  { %2693 = vmatmul.msk.f32.vlgmr.msra.gmra.mxu3 %vm261_vm0, %v3899_v11  ;;  %v4086_v11 = vld [vmem:[%s4540_s7 + $0x28] sm:$0xff] }
0x12ab   :  { %1657 = vmatpush.msra.mxu3 %v3709_v45  ;;  %v4056_v45 = vld [vmem:[%s4540_s7 + $0x50] sm:$0xff] }
0x12ad   :  { %1658 = vmatpush.msra.mxu3 %v3711_v20  ;;  %v4062_v20 = vld [vmem:[%s4540_s7 + $0x48] sm:$0xff] }
0x12af   :  { %1659 = vmatpush.msra.mxu3 %v3714_v50  ;;  %v4068_v50 = vld [vmem:[%s4540_s7 + $0x40] sm:$0xff] }
0x12b1   :  { %1660 = vmatpush.msra.mxu3 %v3717_v55  ;;  %v4074_v55 = vld [vmem:[%s4540_s7 + $0x38] sm:$0xff] }
0x12b2   :  { %2697 = vmatmul.msk.f32.vlgmr.msrb.gmra.mxu3 %vm261_vm0, %v1164_v2 }
0x12b3   :  { %1726 = vmatpush.msrb.mxu3 %v4026_v16 }
0x12b5   :  { %1727 = vmatpush.msrb.mxu3 %v4032_v51 }
0x12b7   :  { %1728 = vmatpush.msrb.mxu3 %v4038_v18 }
0x12b9   :  { %1729 = vmatpush.msrb.mxu3 %v4044_v4 }
0x12bb   :  { %1730 = vmatpush.msrb.mxu3 %v4050_v19 }
0x12bd   :  { %1731 = vmatpush.msrb.mxu3 %v4056_v45 }
0x12bf   :  { %1732 = vmatpush.msrb.mxu3 %v4062_v20 }
0x12c1   :  { %1733 = vmatpush.msrb.mxu3 %v4068_v50 }
0x12c3   :  { %1734 = vmatpush.msrb.mxu3 %v4074_v55 }
0x12c5   :  { %1735 = vmatpush.msrb.mxu3 %v4080_v7 }
0x12c7   :  { %1736 = vmatpush.msrb.mxu3 %v4086_v11 }
0x12c9   :  { %1737 = vmatpush.msrb.mxu3 %v4092_v12 }
0x12cb   :  { %1738 = vmatpush.msrb.mxu3 %v4098_v13 }
0x12cd   :  { %1739 = vmatpush.msrb.mxu3 %v4104_v32 }
0x12cf   :  { %1740 = vmatpush.msrb.mxu3 %v4110_v61 }
0x12d1   :  { %1741 = vmatpush.msrb.mxu3 %v4116_v14 }
0x1325   :  { %v1208_v49 = vpop.f32.mrf.mxu3 }
0x1326   :  { %v1209_v17 = vadd.f32 %v3808_v0, %v1208_v49 }
0x1328   :  { %1212 = vst [vmem:[#allocation14 + $0x4] sm:$0x3] %v1209_v17  ;;  %v1213_v0 = vsel %vm734_vm15, %v1209_v17, -inf }
0x132d   :  { %v1285_v25 = vpop.f32.mrf.mxu3 }
0x132e   :  { %v1289_v29 = vrot.slane %v1285_v25, 1  ;;  %v1290_v26 = vperm.slane %v1285_v25, 0 }
0x1330   :  { %v1291_v5 = vperm.slane %v1289_v29, 0  ;;  %1379 = vrot.lane.b32.xlu2 %v1290_v26, %s3183_s0  ;;  %v1294_v21 = vmul.f32 %v3860_v34, %v1290_v26 }
0x1332   :  { %v1296_v30 = vsel %vm261_vm0, %v1294_v21, 0.0  ;;  %v1295_v57 = vmul.f32 %v3857_v53, %v1291_v5 }
0x1333   :  { %1297 = vadd.xlane.f32.xlu1 %v1296_v30 }
0x1334   :  { %v1299_v46 = vsel %vm261_vm0, %v1295_v57, 0.0 }
0x1335   :  { %1300 = vadd.xlane.f32.xlu0 %v1299_v46 }
0x1338   :  { %1381 = vrot.lane.b32.xlu2 %v1291_v5, %s3183_s0 }
0x133d   :  { %1214 = vmax.xlane.f32.xlu0 %v1213_v0 }
0x138a   :  { %v1380_v58 = vpop.permute.xlu2 %1379 }
0x138b   :  { %v1385_v60 = vmul.f32 %v3870_v48, %v1380_v58 }
0x138d   :  { %v1387_v54 = vsel %vm403_vm1, %v1385_v60, 0.0 }
0x1392   :  { %v1382_v22 = vpop.permute.xlu2 %1381 }
0x1393   :  { %v1386_v27 = vmul.f32 %v3877_v1, %v1382_v22 }
0x1395   :  { %v1390_v56 = vsel %vm403_vm1, %v1386_v27, 0.0 }
0x1396   :  { %1391 = vadd.xlane.f32.xlu1 %v1390_v56 }
0x13a6   :  { %v1298_v8 = vpop.xlane.xlu1 %1297 }
0x13a7   :  { %v1302_v9 = vadd.f32 %v1298_v8, %v3377_v24 }
0x13a8   :  { %v1301_v10 = vpop.xlane.xlu0 %1300 }
0x13a9   :  { %1307 = vperm.xlu2 %2743, %v1302_v9   ;;  %v1303_v2 = vadd.f32 %v1301_v10, %v3381_v28 }
0x13b0   :  { %v1215_v49 = vpop.xlane.xlu0 %1214 }
0x13b1   :  { %1310 = vperm.xlu2 %2743, %v1303_v2   ;;  %vm1216_vm12 = vcmp.eq.f32.partialorder %v1209_v17, %v1215_v49 }
0x13b2   :  { %v1217_v29 = vsel %vm1216_vm12, %v3391_v36, 128 }
0x13b3   :  { %v1218_v30 = vsel %vm734_vm15, %v1217_v29, 2147483647 }
0x13b4   :  { %v1220_v46 = vshra.s32 %v1218_v30, 16 }
0x13b6   :  { %v1222_v0 = vcvt.s32.f32 %v1220_v46 }
0x13da   :  { %1388 = vadd.xlane.f32.xlu2 %v1387_v54 }
0x1403   :  { %v1308_v33 = vpop.permute.xlu2 %1307 }
0x1404   :  { %v1312_v26 = vperm.slane %v1308_v33, %v3391_v36 }
0x1409   :  { %v1392_v58 = vpop.xlane.xlu1 %1391 }
0x140a   :  { %v1396_v17 = vperm.slane %v1392_v58, %v3391_v36 }
0x140b   :  { %v1311_v25 = vpop.permute.xlu2 %1310 }
0x140c   :  { %v1313_v5 = vperm.slane %v1311_v25, %v3391_v36 }
0x140e   :  { %v1314_v21 = vsel %vm328_vm2, %v1313_v5, %v1312_v26  ;;  %v2692_v26 = vld [vmem:[%s4585_s13 + $0x2] sm:$0x1] }
0x140f   :  { %v1316_v57 = vsel %vm331_vm3, %v1314_v21, -inf  ;;  %vm1238_vm13 = vcmp.gt.f32.partialorder %v2692_v26, 0.0 }
0x1410   :  { %1317 = vmax.xlane.f32.xlu1 %v1316_v57 }
0x1418   :  { %1223 = vmin.xlane.f32.xlu1 %v1222_v0 }
0x144d   :  { %v1389_v22 = vpop.xlane.xlu2 %1388 }
0x144e   :  { %v1395_v27 = vperm.slane %v1389_v22, %v3391_v36 }
0x1450   :  { %v1397_v56 = vsel %vm328_vm2, %v1396_v17, %v1395_v27 }
0x1451   :  { %v1399_v8 = vsel %vm416_vm4, %v1397_v56, -inf }
0x1452   :  { %1400 = vmax.xlane.f32.xlu0 %v1399_v8 }
0x1483   :  { %v1318_v10 = vpop.xlane.xlu1 %1317 }
0x1484   :  { %v1320_v60 = vperm.slane %v1318_v10, 0  ;;  %v1321_v54 = vperm.slane %v1318_v10, 1 }
0x1486   :  { %v1324_v33 = vsub.f32 %v1302_v9, %v1320_v60  ;;  %v1325_v49 = vsub.f32 %v1303_v2, %v1321_v54  ;;  %v1241_v9 = vsel %vm1238_vm13, 1, %v4586_v35 }
0x1487   :  { %v1242_v2 = vperm.slane %v1241_v9, 0 }
0x1488   :  { %v1326_v25 = vmul.f32 1.442695, %v1324_v33  ;;  %v1328_v29 = vmul.f32 1.442695, %v1325_v49  ;;  %v1219_v49 = vand.u32 65535, %v1218_v30 }
0x148a   :  { %2808 = vpow2.f32 %v1326_v25  ;;  %v1221_v25 = vcvt.s32.f32 %v1219_v49 }
0x148b   :  { %2810 = vpow2.f32 %v1328_v29  ;;  %v1224_v33 = vpop.xlane.xlu1 %1223 }
0x148c   :  { %vm1225_vm14 = vcmp.eq.f32.partialorder %v1222_v0, %v1224_v33 }
0x148d   :  { %v1226_v29 = vsel %vm1225_vm14, %v1221_v25, inf }
0x1490   :  { %v4146_v5 = vpop.eup %2808 }
0x1491   :  { %v4148_v21 = vpop.eup %2810  ;;  %1333 = vperm.xlu0 %2741, %v4146_v5  }
0x1492   :  { %1336 = vperm.xlu1 %2742, %v4148_v21  }
0x149a   :  { %1244 = vperm.xlu1 %2742, %v1242_v2  }
0x14c5   :  { %v1401_v57 = vpop.xlane.xlu0 %1400 }
0x14c6   :  { %v1403_v46 = vperm.slane %v1401_v57, 0  ;;  %v1404_v17 = vperm.slane %v1401_v57, 1 }
0x14c8   :  { %v1407_v27 = vsub.f32 %v1389_v22, %v1403_v46  ;;  %v1408_v56 = vsub.f32 %v1392_v58, %v1404_v17 }
0x14ca   :  { %v1409_v8 = vmul.f32 1.442695, %v1407_v27  ;;  %v1411_v10 = vmul.f32 1.442695, %v1408_v56 }
0x14cc   :  { %2812 = vpow2.f32 %v1409_v8  ;;  %v1230_v8 = vcvt.f32.s32 %v1224_v33  ;;  %v2934_v33 = vld [vmem:[%s4543_s10 + $0x10] sm:$0xff] }
0x14cd   :  { %2814 = vpow2.f32 %v1411_v10 }
0x14ce   :  { %v1231_v49 = vshll.u32 %v1230_v8, 16 }
0x14d2   :  { %v2813_v60 = vpop.eup %2812 }
0x14d3   :  { %v2815_v54 = vpop.eup %2814  ;;  %1416 = vperm.xlu2 %2743, %v2813_v60  }
0x14d4   :  { %1419 = vperm.xlu0 %2741, %v2815_v54  }
0x14fe   :  { %1227 = vmin.xlane.f32.xlu0 %v1226_v29 }
0x1503   :  { %v1334_v26 = vpop.permute.xlu0 %1333 }
0x1504   :  { %v1337_v9 = vpop.permute.xlu1 %1336  ;;  %v1338_v2 = vperm.slane %v1334_v26, %v3391_v36 }
0x1505   :  { %v1339_v58 = vperm.slane %v1337_v9, %v3391_v36  ;;  %v1240_v9 = vld [vmem:[#allocation2 + $0x4] sm:$0x3] }
0x1507   :  { %v1340_v22 = vsel %vm328_vm2, %v1339_v58, %v1338_v2 }
0x1508   :  { %v1342_v57 = vsel %vm331_vm3, %v1340_v22, 0.0  ;;  %v2933_v22 = vld [vmem:[%s4543_s10 + $0x18] sm:$0xff] }
0x1509   :  { %1343 = vadd.xlane.f32.xlu1 %v1342_v57 }
0x150c   :  { %v1245_v29 = vpop.permute.xlu1 %1244 }
0x150d   :  { %vm1246_vm8 = vcmp.eq.s32.totalorder %v1245_v29, 1 }
0x152d   :  { %v1417_v46 = vpop.permute.xlu2 %1416 }
0x152e   :  { %v1421_v27 = vperm.slane %v1417_v46, %v3391_v36  ;;  %v2935_v46 = vld [vmem:[%s4543_s10 + $0x8] sm:$0xff] }
0x1546   :  { %v1420_v17 = vpop.permute.xlu0 %1419 }
0x1547   :  { %v1422_v30 = vperm.slane %v1420_v17, %v3391_v36  ;;  %v2936_v17 = vld [vmem:[%s4543_s10] sm:$0xff] }
0x1549   :  { %v1423_v0 = vsel %vm328_vm2, %v1422_v30, %v1421_v27 }
0x154a   :  { %v1425_v56 = vsel %vm416_vm4, %v1423_v0, 0.0 }
0x154b   :  { %1426 = vadd.xlane.f32.xlu2 %v1425_v56 }
0x1571   :  { %v1228_v10 = vpop.xlane.xlu0 %1227 }
0x1572   :  { %v1229_v25 = vcvt.f32.s32 %v1228_v10 }
0x1574   :  { %v1232_v26 = vadd.s32 %v1231_v49, %v1229_v25 }
0x1576   :  { %vm1233_vm7 = vcmp.eq.s32.totalorder %v3391_v36, %v1232_v26 }
0x1577   :  { %v2691_v2 = vsel %vm1233_vm7, 1.0, %v4567_v40 }
0x1578   :  { %v1247_v58 = vsel %vm1246_vm8, %v1240_v9, %v2691_v2 }
0x1579   :  { %1264 = vmatmul.f32.vlgmr.msra.gmra.mxu2 %v1247_v58 }
0x157a   :  { %2444 = vmatpush.msra.mxu2 %v2933_v22 }
0x157c   :  { %v1344_v57 = vpop.xlane.xlu1 %1343  ;;  %2445 = vmatpush.msra.mxu2 %v2934_v33 }
0x157d   :  { %2816 = vrcp.f32 %v1344_v57 }
0x157e   :  { %2446 = vmatpush.msra.mxu2 %v2935_v46 }
0x1580   :  { %2447 = vmatpush.msra.mxu2 %v2936_v17 }
0x1583   :  { %v2817_v27 = vpop.eup %2816 }
0x1584   :  { %v1348_v30 = vperm.slane %v2817_v27, 1  ;;  %v1347_v0 = vperm.slane %v2817_v27, 0 }
0x1586   :  { %v1352_v56 = vmul.f32 %v4148_v21, %v1348_v30  ;;  %v1351_v8 = vmul.f32 %v4146_v5, %v1347_v0 }
0x1588   :  { %1360 = vperm.xlu1 %2742, %v1352_v56   ;;  %1355 = vperm.xlu0 %2741, %v1351_v8  }
0x15be   :  { %v1427_v10 = vpop.xlane.xlu2 %1426 }
0x15bf   :  { %2818 = vrcp.f32 %v1427_v10 }
0x15c5   :  { %v2819_v49 = vpop.eup %2818 }
0x15c6   :  { %v1431_v25 = vperm.slane %v2819_v49, 1  ;;  %v1430_v29 = vperm.slane %v2819_v49, 0 }
0x15c8   :  { %v1435_v26 = vmul.f32 %v2815_v54, %v1431_v25  ;;  %v1434_v9 = vmul.f32 %v2813_v60, %v1430_v29 }
0x15ca   :  { %1443 = vperm.xlu0 %2741, %v1435_v26   ;;  %1438 = vperm.xlu2 %2743, %v1434_v9  }
0x15fa   :  { %v1361_v2 = vpop.permute.xlu1 %1360  ;;  %v1356_v58 = vpop.permute.xlu0 %1355 }
0x15fb   :  { %v1364_v22 = vmul.f32 %v3857_v53, %v1361_v2  ;;  %v1363_v57 = vmul.f32 %v3860_v34, %v1356_v58 }
0x15fd   :  { %v1372_v21 = vsel %vm261_vm0, %v1364_v22, 0.0  ;;  %v1365_v5 = vsel %vm261_vm0, %v1363_v57, 0.0 }
0x15fe   :  { %v1373_v33 = vrot.slane %v1372_v21, 4  ;;  %v1366_v46 = vrot.slane %v1365_v5, 4 }
0x1600   :  { %v1374_v17 = vadd.f32 %v1373_v33, %v1372_v21  ;;  %v1367_v27 = vadd.f32 %v1366_v46, %v1365_v5 }
0x1602   :  { %v1375_v30 = vrot.slane %v1374_v17, 2  ;;  %v1368_v0 = vrot.slane %v1367_v27, 2 }
0x1604   :  { %v1376_v54 = vadd.f32 %v1375_v30, %v1374_v17  ;;  %v1369_v60 = vadd.f32 %v1368_v0, %v1367_v27 }
0x1606   :  { %v1370_v56 = vrot.slane %v1369_v60, 1  ;;  %v1377_v8 = vrot.slane %v1376_v54, 1 }
0x1608   :  { %v1371_v10 = vadd.f32 %v1370_v56, %v1369_v60  ;;  %v1378_v49 = vadd.f32 %v1377_v8, %v1376_v54 }
0x160a   :  { %v1464_v25 = vsel %vm328_vm2, %v1378_v49, %v1371_v10  ;;  %v1265_v49 = vpop.f32.mrf.mxu2 }
0x160b   :  { %1465 = vrot.lane.b32.xlu0 %v1464_v25, %s3178_s22 }
0x1624   :  { %v1439_v29 = vpop.permute.xlu2 %1438 }
0x1625   :  { %v1446_v26 = vmul.f32 %v3870_v48, %v1439_v29 }
0x1627   :  { %v1448_v9 = vsel %vm403_vm1, %v1446_v26, 0.0 }
0x1628   :  { %v1449_v2 = vrot.slane %v1448_v9, 4 }
0x162a   :  { %v1450_v58 = vadd.f32 %v1449_v2, %v1448_v9  ;;  %v4192_v9 = vld [vmem:[#allocation8 + $0x18] sm:$0xff]  ;;  %v4195_v2 = vld [vmem:[#allocation8 + $0x10] sm:$0xff] }
0x162c   :  { %v1451_v21 = vrot.slane %v1450_v58, 2 }
0x162e   :  { %v1452_v46 = vadd.f32 %v1451_v21, %v1450_v58  ;;  %v4198_v58 = vld [vmem:[#allocation8 + $0x8] sm:$0xff] }
0x1630   :  { %v1453_v30 = vrot.slane %v1452_v46, 1 }
0x1632   :  { %v1454_v60 = vadd.f32 %v1453_v30, %v1452_v46 }
0x163c   :  { %v1444_v22 = vpop.permute.xlu0 %1443 }
0x163d   :  { %v1447_v57 = vmul.f32 %v3877_v1, %v1444_v22  ;;  %v4201_v22 = vld [vmem:[#allocation8] sm:$0xff] }
0x163f   :  { %v1455_v5 = vsel %vm403_vm1, %v1447_v57, 0.0  ;;  %v1493_v57 = vpop.f32.mrf.mxu0 }
0x1640   :  { %v1456_v33 = vrot.slane %v1455_v5, 4 }
0x1642   :  { %v1457_v17 = vadd.f32 %v1456_v33, %v1455_v5  ;;  %v4207_v33 = vld [vmem:[%s4544_s11] ss:$0 sm:$0xff] }
0x1644   :  { %v1458_v27 = vrot.slane %v1457_v17, 2 }
0x1646   :  { %v1459_v0 = vadd.f32 %v1458_v27, %v1457_v17 }
0x1648   :  { %v1460_v54 = vrot.slane %v1459_v0, 1 }
0x164a   :  { %v1461_v56 = vadd.f32 %v1460_v54, %v1459_v0 }
0x164c   :  { %v1470_v8 = vsel %vm328_vm2, %v1461_v56, %v1454_v60 }
0x164d   :  { %1471 = vrot.lane.b32.xlu0 %v1470_v8, %s3185_s4 }
0x167d   :  { %v1466_v10 = vpop.permute.xlu0 %1465 }
0x167e   :  { %v1474_v25 = vsel %vm261_vm0, %v1265_v49, %v1466_v10 }
0x16bf   :  { %v1472_v29 = vpop.permute.xlu0 %1471 }
0x16c0   :  { %v1475_v26 = vsel %vm493_vm5, %v1474_v25, %v1472_v29 }
0x16c1   :  { %2695 = vmatmul.msk.f32.vlgmr.msra.gmra.mxu1 %vm515_vm6, %v1475_v26 }
0x16c2   :  { %2072 = vmatpush.msra.mxu1 %v4192_v9 }
0x16c4   :  { %2073 = vmatpush.msra.mxu1 %v4195_v2 }
0x16c6   :  { %2074 = vmatpush.msra.mxu1 %v4198_v58 }
0x16c8   :  { %2075 = vmatpush.msra.mxu1 %v4201_v22 }
0x173e   :  { %v1516_v21 = vpop.f32.mrf.mxu1 }
0x173f   :  { %v1517_v5 = vadd.f32 %v1516_v21, %v1493_v57 }
0x1741   :  { %v1519_v46 = vadd.f32 %v4207_v33, %v1517_v5 }
0x1743   :  { %2820 = vtanh.f32 %v1519_v46  ;;  %v2696_v27 = vmul.f32 -1.442695, %v1519_v46 }
0x1745   :  { %2822 = vpow2.f32 %v2696_v27 }
0x1749   :  { %v2821_v17 = vpop.eup %2820 }
0x174a   :  { %1542 = vrot.lane.b32.xlu2 %v2821_v17, %s3185_s4 }
0x174b   :  { %v2823_v30 = vpop.eup %2822 }
0x174c   :  { %v1523_v0 = vadd.f32 1.0, %v2823_v30 }
0x174e   :  { %2824 = vrcp.f32 %v1523_v0  ;;  %v1535_v49 = vand.u32 2147483648, %v1523_v0  ;;  %vm1529_vm10 = vweird.f32 %v1523_v0  ;;  %v1533_v25 = vand.u32 2147483647, %v1523_v0 }
0x1750   :  { %v1536_v26 = vor.u32 1.1754944e-38, %v1535_v49  ;;  %vm1534_vm12 = vcmp.eq.f32.partialorder %v1533_v25, 8.507059e+37 }
0x1754   :  { %v2825_v54 = vpop.eup %2824 }
0x1755   :  { %v1525_v60 = vmul.f32 %v2825_v54, %v1523_v0  ;;  %vm1530_vm9 = vweird.f32 %v2825_v54 }
0x1756   :  { %vm1531_vm11 = vmor %vm1529_vm10, %vm1530_vm9 }
0x1757   :  { %v1526_v56 = vsub.f32 1.0, %v1525_v60 }
0x1759   :  { %v1527_v8 = vmul.f32 %v2825_v54, %v1526_v56  ;;  %v4229_v56 = vld [vmem:[#allocation13 + $0x10] sm:$0xff] }
0x175b   :  { %v1528_v10 = vadd.f32 %v2825_v54, %v1527_v8  ;;  %v4233_v8 = vld [vmem:[#allocation13 + $0x8] sm:$0xff] }
0x175d   :  { %v1532_v29 = vsel %vm1531_vm11, %v2825_v54, %v1528_v10  ;;  %v4237_v10 = vld [vmem:[#allocation13] sm:$0xff] }
0x175e   :  { %v1537_v21 = vsel %vm1534_vm12, %v1536_v26, %v1532_v29 }
0x175f   :  { %v1540_v46 = vmul.f32 %v1537_v21, %v3894_v42  ;;  %v4225_v42 = vld [vmem:[#allocation13 + $0x18] sm:$0xff] }
0x17a4   :  { %v1543_v57 = vpop.permute.xlu2 %1542 }
0x17a5   :  { %v1545_v5 = vmul.f32 %v1543_v57, %v1537_v21 }
0x17a7   :  { %1547 = vrot.lane.b32.xlu1 %v1545_v5, %s3178_s22 }
0x1819   :  { %v1548_v17 = vpop.permute.xlu1 %1547 }
0x181a   :  { %v4213_v27 = vadd.f32 %v1548_v17, %v1540_v46 }
0x181c   :  { %2826 = vtanh.f32 %v4213_v27 }
0x1822   :  { %v2827_v30 = vpop.eup %2826 }
0x1823   :  { %1553 = vrot.lane.b32.xlu0 %v2827_v30, %s3185_s4 }
0x1895   :  { %v1554_v0 = vpop.permute.xlu0 %1553 }
0x1896   :  { %v1556_v60 = vmul.f32 %v1554_v0, %v1537_v21 }
0x1898   :  { %1578 = vrot.lane.b32.xlu2 %v1556_v60, %s3178_s22 }
0x18f2   :  { %v4218_v54 = vpop.permute.xlu2 %1578 }
0x18f3   :  { %2698 = vmatmul.msk.f32.vlgmr.msrb.gmra.mxu0 %vm261_vm0, %v4218_v54  ;;  %2705 = vmatmul.msk.f32.vlgmr.msrb.gmra.mxu1 %vm261_vm0, %v4218_v54 }
0x18f4   :  { %1758 = vmatpush.msrb.mxu0 %v3908_v47  ;;  %2159 = vmatpush.msrb.mxu1 %v4225_v42  ;;  %v1574_v47 = vpop.f32.mrf.mxu3 }
0x18f6   :  { %1759 = vmatpush.msrb.mxu0 %v3915_v63  ;;  %2160 = vmatpush.msrb.mxu1 %v4229_v56  ;;  %v4243_v63 = vld [vmem:[%s4547_s14] ss:$0 sm:$0xff] }
0x18f8   :  { %1760 = vmatpush.msrb.mxu0 %v3922_v6  ;;  %2161 = vmatpush.msrb.mxu1 %v4233_v8 }
0x18fa   :  { %1761 = vmatpush.msrb.mxu0 %v3929_v59  ;;  %2162 = vmatpush.msrb.mxu1 %v4237_v10 }
0x1970   :  { %v1599_v49 = vpop.f32.mrf.mxu0 }
0x1971   :  { %v1600_v25 = vadd.f32 %v1599_v49, %v1574_v47 }
0x1973   :  { %v1602_v6 = vadd.f32 %v4243_v63, %v1600_v25 }
0x1975   :  { %2828 = vtanh.f32 %v1602_v6  ;;  %v2699_v26 = vmul.f32 -1.442695, %v1602_v6 }
0x1977   :  { %2830 = vpow2.f32 %v2699_v26 }
0x197b   :  { %v2829_v29 = vpop.eup %2828 }
0x197c   :  { %1625 = vrot.lane.b32.xlu1 %v2829_v29, %s3185_s4 }
0x197d   :  { %v2831_v59 = vpop.eup %2830 }
0x197e   :  { %v1606_v57 = vadd.f32 1.0, %v2831_v59 }
0x1980   :  { %2832 = vrcp.f32 %v1606_v57  ;;  %v1618_v0 = vand.u32 2147483648, %v1606_v57  ;;  %vm1612_vm14 = vweird.f32 %v1606_v57  ;;  %v1616_v60 = vand.u32 2147483647, %v1606_v57 }
0x1982   :  { %v1619_v49 = vor.u32 1.1754944e-38, %v1618_v0  ;;  %vm1617_vm8 = vcmp.eq.f32.partialorder %v1616_v60, 8.507059e+37 }
0x1986   :  { %v2833_v21 = vpop.eup %2832 }
0x1987   :  { %v1608_v5 = vmul.f32 %v2833_v21, %v1606_v57  ;;  %vm1613_vm13 = vweird.f32 %v2833_v21 }
0x1988   :  { %vm1614_vm7 = vmor %vm1612_vm14, %vm1613_vm13 }
0x1989   :  { %v1609_v46 = vsub.f32 1.0, %v1608_v5 }
0x198b   :  { %v1610_v17 = vmul.f32 %v2833_v21, %v1609_v46 }
0x198d   :  { %v1611_v30 = vadd.f32 %v2833_v21, %v1610_v17  ;;  %v4299_v17 = vld [vmem:[#allocation11] sm:$0xff] }
0x198f   :  { %v1615_v47 = vsel %vm1614_vm7, %v2833_v21, %v1611_v30 }
0x1990   :  { %v1620_v29 = vsel %vm1617_vm8, %v1619_v49, %v1615_v47 }
0x1991   :  { %v1623_v26 = vmul.f32 %v1620_v29, %v3937_v23  ;;  %v2947_v23 = vld [vmem:[%s4542_s9] sm:$0xff]  ;;  %s2651_s9 = sshll.u32 %s3187_s25, 4  ;;  %s2652_s9 = int_to_ptr.vmem [resolvable:$true] %s2651_s9 }
0x19ee   :  { %v1626_v25 = vpop.permute.xlu1 %1625 }
0x19ef   :  { %v1628_v6 = vmul.f32 %v1626_v25, %v1620_v29 }
0x19f1   :  { %1630 = vrot.lane.b32.xlu0 %v1628_v6, %s3178_s22 }
0x1a63   :  { %v1631_v59 = vpop.permute.xlu0 %1630 }
0x1a64   :  { %v4249_v40 = vadd.f32 %v1631_v59, %v1623_v26 }
0x1a66   :  { %2834 = vtanh.f32 %v4249_v40 }
0x1a6c   :  { %v2835_v5 = vpop.eup %2834 }
0x1a6d   :  { %1636 = vrot.lane.b32.xlu2 %v2835_v5, %s3185_s4 }
0x1ac7   :  { %v1637_v57 = vpop.permute.xlu2 %1636 }
0x1ac8   :  { %v1639_v46 = vmul.f32 %v1637_v57, %v1620_v29 }
0x1aca   :  { %1641 = vrot.lane.b32.xlu1 %v1639_v46, %s3178_s22 }
0x1b3c   :  { %v1642_v21 = vpop.permute.xlu1 %1641 }
0x1b3d   :  { %2700 = vmatmul.msk.f32.vlgmr.msra.gmra.mxu3 %vm261_vm0, %v1642_v21 }
0x1b3e   :  { %2459 = vmatpush.msra.mxu3 %v3946_v3 }
0x1b40   :  { %2460 = vmatpush.msra.mxu3 %v3952_v15  ;;  %v4272_v15 = vld [vmem:[%s4549_s16] ss:$0 sm:$0xff] }
0x1b42   :  { %2461 = vmatpush.msra.mxu3 %v3958_v31 }
0x1b44   :  { %2462 = vmatpush.msra.mxu3 %v3964_v37 }
0x1b46   :  { %2463 = vmatpush.msra.mxu3 %v3970_v38  ;;  %v4276_v38 = vld [vmem:[#allocation10 + $0x18] sm:$0xff] }
0x1b48   :  { %2464 = vmatpush.msra.mxu3 %v3976_v39  ;;  %v4279_v39 = vld [vmem:[#allocation10 + $0x10] sm:$0xff] }
0x1b4a   :  { %2465 = vmatpush.msra.mxu3 %v3982_v41  ;;  %v4282_v41 = vld [vmem:[#allocation10 + $0x8] sm:$0xff] }
0x1b4c   :  { %2466 = vmatpush.msra.mxu3 %v3988_v43  ;;  %v4285_v43 = vld [vmem:[#allocation10] sm:$0xff] }
0x1b4e   :  { %2467 = vmatpush.msra.mxu3 %v3994_v44  ;;  %v4290_v44 = vld [vmem:[#allocation11 + $0x18] sm:$0xff] }
0x1b50   :  { %2468 = vmatpush.msra.mxu3 %v4000_v62  ;;  %v4293_v62 = vld [vmem:[#allocation11 + $0x10] sm:$0xff] }
0x1b52   :  { %2469 = vmatpush.msra.mxu3 %v4006_v52  ;;  %v4296_v52 = vld [vmem:[#allocation11 + $0x8] sm:$0xff] }
0x1b54   :  { %2470 = vmatpush.msra.mxu3 %v2947_v23 }
0x1bc0   :  { %v1662_v3 = vpop.f32.mrf.mxu3 }
0x1bc1   :  { %v1663_v31 = vadd.f32 %v4272_v15, %v1662_v3 }
0x1bc3   :  { %2836 = vtanh.f32 %v1663_v31 }
0x1bc9   :  { %v2837_v37 = vpop.eup %2836 }
0x1bca   :  { %2701 = vmatmul.msk.f32.vlgmr.msra.gmra.mxu0 %vm261_vm0, %v2837_v37 }
0x1bcb   :  { %2047 = vmatpush.msra.mxu0 %v4276_v38 }
0x1bcd   :  { %2048 = vmatpush.msra.mxu0 %v4279_v39 }
0x1bcf   :  { %2049 = vmatpush.msra.mxu0 %v4282_v41 }
0x1bd1   :  { %2050 = vmatpush.msra.mxu0 %v4285_v43 }
0x1bd2   :  { %2704 = vmatmul.msk.f32.vlgmr.msrb.gmra.mxu0 %vm261_vm0, %v4218_v54 }
0x1bd3   :  { %2135 = vmatpush.msrb.mxu0 %v4290_v44 }
0x1bd5   :  { %2136 = vmatpush.msrb.mxu0 %v4293_v62 }
0x1bd7   :  { %2137 = vmatpush.msrb.mxu0 %v4296_v52 }
0x1bd9   :  { %2138 = vmatpush.msrb.mxu0 %v4299_v17 }
0x1bda   :  { %2708 = vmatmul.msk.f32.vlgmr.msra.gmra.mxu0 %vm261_vm0, %v1642_v21 }
0x1bdb   :  { %2204 = vmatpush.msra.mxu0 %v4026_v16 }
0x1bdd   :  { %2205 = vmatpush.msra.mxu0 %v4032_v51  ;;  %v4322_v51 = vld [vmem:[%s4551_s18] ss:$0 sm:$0xff] }
0x1bdf   :  { %2206 = vmatpush.msra.mxu0 %v4038_v18 }
0x1be1   :  { %2207 = vmatpush.msra.mxu0 %v4044_v4 }
0x1be3   :  { %2208 = vmatpush.msra.mxu0 %v4050_v19 }
0x1be5   :  { %2209 = vmatpush.msra.mxu0 %v4056_v45 }
0x1be7   :  { %2210 = vmatpush.msra.mxu0 %v4062_v20 }
0x1be9   :  { %2211 = vmatpush.msra.mxu0 %v4068_v50 }
0x1beb   :  { %2212 = vmatpush.msra.mxu0 %v4074_v55 }
0x1bed   :  { %2213 = vmatpush.msra.mxu0 %v4080_v7 }
0x1bef   :  { %2214 = vmatpush.msra.mxu0 %v4086_v11 }
0x1bf1   :  { %2215 = vmatpush.msra.mxu0 %v4092_v12 }
0x1bf3   :  { %2216 = vmatpush.msra.mxu0 %v4098_v13 }
0x1bf5   :  { %2217 = vmatpush.msra.mxu0 %v4104_v32 }
0x1bf7   :  { %2218 = vmatpush.msra.mxu0 %v4110_v61 }
0x1bf9   :  { %2219 = vmatpush.msra.mxu0 %v4116_v14 }
0x1c47   :  { %v1686_v16 = vpop.f32.mrf.mxu0 }
0x1c48   :  { %v1687_v18 = vadd.f32 %v4322_v51, %v1686_v16 }
0x1c4a   :  { %1690 = vst [vmem:[#allocation14 + $0x6] sm:$0x3] %v1687_v18  ;;  %v1691_v12 = vsel %vm734_vm15, %v1687_v18, -inf }
0x1c4f   :  { %v1763_v4 = vpop.f32.mrf.mxu0 }
0x1c50   :  { %v1767_v19 = vrot.slane %v1763_v4, 1  ;;  %v1768_v45 = vperm.slane %v1763_v4, 0 }
0x1c52   :  { %v1769_v20 = vperm.slane %v1767_v19, 0  ;;  %1857 = vrot.lane.b32.xlu1 %v1768_v45, %s3183_s0  ;;  %v1772_v50 = vmul.f32 %v3860_v34, %v1768_v45 }
0x1c54   :  { %v1774_v55 = vsel %vm261_vm0, %v1772_v50, 0.0  ;;  %v1773_v7 = vmul.f32 %v3857_v53, %v1769_v20 }
0x1c55   :  { %1775 = vadd.xlane.f32.xlu0 %v1774_v55  ;;  %v2703_v55 = vld [vmem:[%s4585_s13 + $0x3] sm:$0x1] }
0x1c56   :  { %v1777_v11 = vsel %vm261_vm0, %v1773_v7, 0.0  ;;  %vm1716_vm10 = vcmp.gt.f32.partialorder %v2703_v55, 0.0 }
0x1c57   :  { %1778 = vadd.xlane.f32.xlu2 %v1777_v11 }
0x1c5a   :  { %1859 = vrot.lane.b32.xlu1 %v1769_v20, %s3183_s0 }
0x1c5d   :  { %1692 = vmax.xlane.f32.xlu0 %v1691_v12  ;;  %v1719_v12 = vsel %vm1716_vm10, 1, %v4586_v35 }
0x1cc4   :  { %v1858_v13 = vpop.permute.xlu1 %1857 }
0x1cc5   :  { %v1863_v0 = vmul.f32 %v3870_v48, %v1858_v13  ;;  %v1720_v13 = vperm.slane %v1719_v12, 0 }
0x1cc7   :  { %v1865_v60 = vsel %vm403_vm1, %v1863_v0, 0.0 }
0x1cc8   :  { %v1776_v32 = vpop.xlane.xlu0 %1775 }
0x1cc9   :  { %v1780_v61 = vadd.f32 %v1776_v32, %v3377_v24 }
0x1cca   :  { %v1779_v54 = vpop.xlane.xlu2 %1778 }
0x1ccb   :  { %1785 = vperm.xlu1 %2742, %v1780_v61   ;;  %v1781_v30 = vadd.f32 %v1779_v54, %v3381_v28 }
0x1ccc   :  { %v1860_v14 = vpop.permute.xlu1 %1859 }
0x1ccd   :  { %v1864_v34 = vmul.f32 %v3877_v1, %v1860_v14 }
0x1ccf   :  { %v1868_v53 = vsel %vm403_vm1, %v1864_v34, 0.0 }
0x1cd0   :  { %1869 = vadd.xlane.f32.xlu2 %v1868_v53  ;;  %v1693_v49 = vpop.xlane.xlu0 %1692 }
0x1cd1   :  { %vm1694_vm9 = vcmp.eq.f32.partialorder %v1687_v18, %v1693_v49 }
0x1cd2   :  { %v1695_v29 = vsel %vm1694_vm9, %v3391_v36, 128 }
0x1cd3   :  { %1788 = vperm.xlu1 %2742, %v1781_v30   ;;  %v1696_v59 = vsel %vm734_vm15, %v1695_v29, 2147483647 }
0x1cd4   :  { %v1698_v48 = vshra.s32 %v1696_v59, 16  ;;  %v1697_v49 = vand.u32 65535, %v1696_v59 }
0x1cd6   :  { %v1700_v57 = vcvt.s32.f32 %v1698_v48 }
0x1cfd   :  { %1866 = vadd.xlane.f32.xlu1 %v1865_v60 }
0x1d3d   :  { %v1786_v47 = vpop.permute.xlu1 %1785 }
0x1d3e   :  { %v1790_v1 = vperm.slane %v1786_v47, %v3391_v36 }
0x1d43   :  { %v1870_v46 = vpop.xlane.xlu2 %1869 }
0x1d44   :  { %v1874_v23 = vperm.slane %v1870_v46, %v3391_v36 }
0x1d45   :  { %v1789_v25 = vpop.permute.xlu1 %1788 }
0x1d46   :  { %v1791_v6 = vperm.slane %v1789_v25, %v3391_v36  ;;  %v1699_v25 = vcvt.s32.f32 %v1697_v49 }
0x1d48   :  { %v1792_v26 = vsel %vm328_vm2, %v1791_v6, %v1790_v1 }
0x1d49   :  { %v1794_v5 = vsel %vm331_vm3, %v1792_v26, -inf }
0x1d4a   :  { %1795 = vmax.xlane.f32.xlu2 %v1794_v5 }
0x1d52   :  { %1701 = vmin.xlane.f32.xlu2 %v1700_v57 }
0x1d70   :  { %v1867_v21 = vpop.xlane.xlu1 %1866 }
0x1d71   :  { %v1873_v3 = vperm.slane %v1867_v21, %v3391_v36 }
0x1d73   :  { %v1875_v31 = vsel %vm328_vm2, %v1874_v23, %v1873_v3 }
0x1d74   :  { %v1877_v37 = vsel %vm416_vm4, %v1875_v31, -inf }
0x1d75   :  { %1878 = vmax.xlane.f32.xlu0 %v1877_v37 }
0x1dbd   :  { %v1796_v16 = vpop.xlane.xlu2 %1795 }
0x1dbe   :  { %v1798_v18 = vperm.slane %v1796_v16, 0  ;;  %v1799_v4 = vperm.slane %v1796_v16, 1 }
0x1dc0   :  { %v1802_v19 = vsub.f32 %v1780_v61, %v1798_v18  ;;  %v1803_v45 = vsub.f32 %v1781_v30, %v1799_v4 }
0x1dc2   :  { %v1804_v20 = vmul.f32 1.442695, %v1802_v19  ;;  %v1806_v50 = vmul.f32 1.442695, %v1803_v45 }
0x1dc4   :  { %2838 = vpow2.f32 %v1804_v20  ;;  %v1718_v20 = vld [vmem:[#allocation2 + $0x6] sm:$0x3] }
0x1dc5   :  { %2840 = vpow2.f32 %v1806_v50  ;;  %v1702_v47 = vpop.xlane.xlu2 %1701  ;;  %v4595_v50 = vmov 0.0  }
0x1dc6   :  { %vm1703_vm11 = vcmp.eq.f32.partialorder %v1700_v57, %v1702_v47  ;;  %v1708_v37 = vcvt.f32.s32 %v1702_v47 }
0x1dc7   :  { %v1704_v29 = vsel %vm1703_vm11, %v1699_v25, inf }
0x1dc8   :  { %v1709_v18 = vshll.u32 %v1708_v37, 16 }
0x1dca   :  { %v2839_v7 = vpop.eup %2838 }
0x1dcb   :  { %v2841_v11 = vpop.eup %2840  ;;  %1811 = vperm.xlu0 %2741, %v2839_v7  }
0x1dcc   :  { %1814 = vperm.xlu2 %2743, %v2841_v11  }
0x1dd4   :  { %1722 = vperm.xlu2 %2743, %v1720_v13  }
0x1de8   :  { %v1879_v32 = vpop.xlane.xlu0 %1878 }
0x1de9   :  { %v1881_v61 = vperm.slane %v1879_v32, 0  ;;  %v1882_v14 = vperm.slane %v1879_v32, 1 }
0x1deb   :  { %v1885_v34 = vsub.f32 %v1867_v21, %v1881_v61  ;;  %v1886_v54 = vsub.f32 %v1870_v46, %v1882_v14 }
0x1ded   :  { %v1887_v53 = vmul.f32 1.442695, %v1885_v34  ;;  %v1889_v30 = vmul.f32 1.442695, %v1886_v54 }
0x1def   :  { %2842 = vpow2.f32 %v1887_v53 }
0x1df0   :  { %2844 = vpow2.f32 %v1889_v30 }
0x1df5   :  { %v2843_v0 = vpop.eup %2842 }
0x1df6   :  { %v2845_v60 = vpop.eup %2844  ;;  %1894 = vperm.xlu1 %2742, %v2843_v0  }
0x1df7   :  { %1897 = vperm.xlu0 %2741, %v2845_v60  }
0x1e21   :  { %1705 = vmin.xlane.f32.xlu0 %v1704_v29 }
0x1e26   :  { %v1815_v1 = vpop.permute.xlu2 %1814 }
0x1e27   :  { %v1817_v26 = vperm.slane %v1815_v1, %v3391_v36 }
0x1e2e   :  { %v1723_v19 = vpop.permute.xlu2 %1722 }
0x1e2f   :  { %vm1724_vm13 = vcmp.eq.s32.totalorder %v1723_v19, 1 }
0x1e3d   :  { %v1812_v6 = vpop.permute.xlu0 %1811 }
0x1e3e   :  { %v1816_v5 = vperm.slane %v1812_v6, %v3391_v36  ;;  %v4362_v6 = vld [vmem:[#allocation5 + $0x8] sm:$0xff] }
0x1e40   :  { %v1818_v48 = vsel %vm328_vm2, %v1817_v26, %v1816_v5 }
0x1e41   :  { %v1820_v46 = vsel %vm331_vm3, %v1818_v48, 0.0 }
0x1e42   :  { %1821 = vadd.xlane.f32.xlu2 %v1820_v46  ;;  %v4366_v46 = vld [vmem:[#allocation5] sm:$0xff] }
0x1e68   :  { %v1895_v21 = vpop.permute.xlu1 %1894 }
0x1e69   :  { %v1899_v23 = vperm.slane %v1895_v21, %v3391_v36  ;;  %v1898_v3 = vpop.permute.xlu0 %1897 }
0x1e6a   :  { %v1900_v59 = vperm.slane %v1898_v3, %v3391_v36 }
0x1e6c   :  { %v1901_v57 = vsel %vm328_vm2, %v1900_v59, %v1899_v23 }
0x1e6d   :  { %v1903_v31 = vsel %vm416_vm4, %v1901_v57, 0.0 }
0x1e6e   :  { %1904 = vadd.xlane.f32.xlu1 %v1903_v31 }
0x1e94   :  { %v1706_v16 = vpop.xlane.xlu0 %1705 }
0x1e95   :  { %v1707_v4 = vcvt.f32.s32 %v1706_v16 }
0x1e97   :  { %v1710_v45 = vadd.s32 %v1709_v18, %v1707_v4 }
0x1e99   :  { %vm1711_vm12 = vcmp.eq.s32.totalorder %v3391_v36, %v1710_v45 }
0x1e9a   :  { %v2702_v55 = vsel %vm1711_vm12, 1.0, %v4595_v50 }
0x1e9b   :  { %v1725_v12 = vsel %vm1724_vm13, %v1718_v20, %v2702_v55  ;;  %v4375_v55 = vld [vmem:[%s4576_s21] sm:$0x3f] }
0x1e9c   :  { %1742 = vmatmul.f32.vlgmr.msrb.gmra.mxu3 %v1725_v12 }
0x1eb5   :  { %v1822_v13 = vpop.xlane.xlu2 %1821 }
0x1eb6   :  { %2846 = vrcp.f32 %v1822_v13  ;;  %v4381_v13 = vld [vmem:[%s4576_s21 + $0x8] sm:$0x3f] }
0x1ebc   :  { %v2847_v32 = vpop.eup %2846 }
0x1ebd   :  { %v1826_v61 = vperm.slane %v2847_v32, 1  ;;  %v1825_v14 = vperm.slane %v2847_v32, 0 }
0x1ebf   :  { %v1830_v34 = vmul.f32 %v2841_v11, %v1826_v61  ;;  %v1829_v54 = vmul.f32 %v2839_v7, %v1825_v14 }
0x1ec1   :  { %1838 = vperm.xlu2 %2743, %v1830_v34   ;;  %1833 = vperm.xlu0 %2741, %v1829_v54  }
0x1ee1   :  { %v1905_v53 = vpop.xlane.xlu1 %1904 }
0x1ee2   :  { %2848 = vrcp.f32 %v1905_v53 }
0x1ee8   :  { %v2849_v30 = vpop.eup %2848 }
0x1ee9   :  { %v1909_v47 = vperm.slane %v2849_v30, 1  ;;  %v1908_v49 = vperm.slane %v2849_v30, 0 }
0x1eeb   :  { %v1913_v25 = vmul.f32 %v2845_v60, %v1909_v47  ;;  %v1912_v29 = vmul.f32 %v2843_v0, %v1908_v49 }
0x1eed   :  { %1921 = vperm.xlu0 %2741, %v1913_v25   ;;  %1916 = vperm.xlu1 %2742, %v1912_v29  }
0x1f1b   :  { %v1839_v1 = vpop.permute.xlu2 %1838 }
0x1f1c   :  { %v1842_v26 = vmul.f32 %v4362_v6, %v1839_v1 }
0x1f1e   :  { %v1850_v5 = vsel %vm261_vm0, %v1842_v26, 0.0 }
0x1f1f   :  { %v1851_v11 = vrot.slane %v1850_v5, 4 }
0x1f21   :  { %v1852_v7 = vadd.f32 %v1851_v11, %v1850_v5 }
0x1f23   :  { %v1853_v23 = vrot.slane %v1852_v7, 2 }
0x1f25   :  { %v1854_v3 = vadd.f32 %v1853_v23, %v1852_v7 }
0x1f27   :  { %v1855_v37 = vrot.slane %v1854_v3, 1 }
0x1f29   :  { %v1856_v4 = vadd.f32 %v1855_v37, %v1854_v3  ;;  %v1971_v3 = vpop.f32.mrf.mxu1 }
0x1f33   :  { %v1834_v48 = vpop.permute.xlu0 %1833 }
0x1f34   :  { %v1841_v21 = vmul.f32 %v4366_v46, %v1834_v48 }
0x1f36   :  { %v1843_v60 = vsel %vm261_vm0, %v1841_v21, 0.0  ;;  %v1743_v21 = vpop.f32.mrf.mxu3 }
0x1f37   :  { %v1844_v0 = vrot.slane %v1843_v60, 4 }
0x1f39   :  { %v1845_v59 = vadd.f32 %v1844_v0, %v1843_v60 }
0x1f3b   :  { %v1846_v57 = vrot.slane %v1845_v59, 2 }
0x1f3d   :  { %v1847_v31 = vadd.f32 %v1846_v57, %v1845_v59 }
0x1f3f   :  { %v1848_v16 = vrot.slane %v1847_v31, 1 }
0x1f41   :  { %v1849_v18 = vadd.f32 %v1848_v16, %v1847_v31 }
0x1f43   :  { %v1942_v19 = vsel %vm328_vm2, %v1856_v4, %v1849_v18 }
0x1f44   :  { %1943 = vrot.lane.b32.xlu0 %v1942_v19, %s3178_s22 }
0x1f5f   :  { %v1917_v45 = vpop.permute.xlu1 %1916  ;;  %v1922_v20 = vpop.permute.xlu0 %1921 }
0x1f60   :  { %v1924_v12 = vmul.f32 %v4375_v55, %v1917_v45  ;;  %v1925_v32 = vmul.f32 %v4381_v13, %v1922_v20 }
0x1f62   :  { %v1926_v61 = vsel %vm403_vm1, %v1924_v12, 0.0  ;;  %v1933_v14 = vsel %vm403_vm1, %v1925_v32, 0.0 }
0x1f63   :  { %v1927_v34 = vrot.slane %v1926_v61, 4  ;;  %v1934_v54 = vrot.slane %v1933_v14, 4 }
0x1f65   :  { %v1928_v53 = vadd.f32 %v1927_v34, %v1926_v61  ;;  %v1935_v30 = vadd.f32 %v1934_v54, %v1933_v14 }
0x1f67   :  { %v1929_v47 = vrot.slane %v1928_v53, 2  ;;  %v1936_v49 = vrot.slane %v1935_v30, 2 }
0x1f69   :  { %v1930_v25 = vadd.f32 %v1929_v47, %v1928_v53  ;;  %v1937_v29 = vadd.f32 %v1936_v49, %v1935_v30 }
0x1f6b   :  { %v1931_v1 = vrot.slane %v1930_v25, 1  ;;  %v1938_v26 = vrot.slane %v1937_v29, 1 }
0x1f6d   :  { %v1932_v5 = vadd.f32 %v1931_v1, %v1930_v25  ;;  %v1939_v11 = vadd.f32 %v1938_v26, %v1937_v29  ;;  %v2963_v29 = vld [vmem:[%s4541_s8 + $0x10] sm:$0xff]  ;;  %v2964_v1 = vld [vmem:[%s4541_s8 + $0x8] sm:$0xff]  ;;  %v2965_v26 = vld [vmem:[%s4541_s8] sm:$0xff] }
0x1f6f   :  { %v1948_v7 = vsel %vm328_vm2, %v1939_v11, %v1932_v5 }
0x1f70   :  { %1949 = vrot.lane.b32.xlu2 %v1948_v7, %s3185_s4 }
0x1fb6   :  { %v1944_v48 = vpop.permute.xlu0 %1943 }
0x1fb7   :  { %v1952_v23 = vsel %vm261_vm0, %v1743_v21, %v1944_v48 }
0x1fca   :  { %v1950_v60 = vpop.permute.xlu2 %1949 }
0x1fcb   :  { %v1953_v0 = vsel %vm493_vm5, %v1952_v23, %v1950_v60 }
0x1fcc   :  { %2706 = vmatmul.msk.f32.vlgmr.msrb.gmra.mxu2 %vm515_vm6, %v1953_v0 }
0x1fcd   :  { %2550 = vmatpush.msrb.mxu2 %v4192_v9 }
0x1fcf   :  { %2551 = vmatpush.msrb.mxu2 %v4195_v2 }
0x1fd1   :  { %2552 = vmatpush.msrb.mxu2 %v4198_v58 }
0x1fd3   :  { %2553 = vmatpush.msrb.mxu2 %v4201_v22 }
0x204f   :  { %v1994_v59 = vpop.f32.mrf.mxu2 }
0x2050   :  { %v1995_v57 = vadd.f32 %v1994_v59, %v1971_v3 }
0x2052   :  { %v1997_v31 = vadd.f32 %v4207_v33, %v1995_v57 }
0x2054   :  { %2850 = vtanh.f32 %v1997_v31  ;;  %v2707_v16 = vmul.f32 -1.442695, %v1997_v31 }
0x2056   :  { %2852 = vpow2.f32 %v2707_v16 }
0x205a   :  { %v2851_v37 = vpop.eup %2850 }
0x205b   :  { %2020 = vrot.lane.b32.xlu0 %v2851_v37, %s3185_s4 }
0x205c   :  { %v2853_v18 = vpop.eup %2852 }
0x205d   :  { %v2001_v4 = vadd.f32 1.0, %v2853_v18 }
0x205f   :  { %2854 = vrcp.f32 %v2001_v4  ;;  %v2013_v22 = vand.u32 2147483648, %v2001_v4  ;;  %vm2007_vm7 = vweird.f32 %v2001_v4  ;;  %v2011_v20 = vand.u32 2147483647, %v2001_v4 }
0x2061   :  { %v2014_v12 = vor.u32 1.1754944e-38, %v2013_v22  ;;  %vm2012_vm9 = vcmp.eq.f32.partialorder %v2011_v20, 8.507059e+37 }
0x2065   :  { %v2855_v9 = vpop.eup %2854 }
0x2066   :  { %v2003_v2 = vmul.f32 %v2855_v9, %v2001_v4  ;;  %vm2008_vm14 = vweird.f32 %v2855_v9 }
0x2067   :  { %vm2009_vm8 = vmor %vm2007_vm7, %vm2008_vm14 }
0x2068   :  { %v2004_v19 = vsub.f32 1.0, %v2003_v2 }
0x206a   :  { %v2005_v58 = vmul.f32 %v2855_v9, %v2004_v19 }
0x206c   :  { %v2006_v45 = vadd.f32 %v2855_v9, %v2005_v58 }
0x206e   :  { %v2010_v33 = vsel %vm2009_vm8, %v2855_v9, %v2006_v45 }
0x206f   :  { %v2015_v61 = vsel %vm2012_vm9, %v2014_v12, %v2010_v33 }
0x2070   :  { %v2018_v34 = vmul.f32 %v2015_v61, %v4213_v27  ;;  %v2962_v27 = vld [vmem:[%s4541_s8 + $0x18] sm:$0xff] }
0x20cd   :  { %v2021_v32 = vpop.permute.xlu0 %2020 }
0x20ce   :  { %v2023_v14 = vmul.f32 %v2021_v32, %v2015_v61 }
0x20d0   :  { %2025 = vrot.lane.b32.xlu1 %v2023_v14, %s3178_s22 }
0x2142   :  { %v2026_v54 = vpop.permute.xlu1 %2025 }
0x2143   :  { %v4399_v53 = vadd.f32 %v2026_v54, %v2018_v34 }
0x2145   :  { %2856 = vtanh.f32 %v4399_v53 }
0x214b   :  { %v2857_v30 = vpop.eup %2856 }
0x214c   :  { %2031 = vrot.lane.b32.xlu2 %v2857_v30, %s3185_s4 }
0x21a6   :  { %v2032_v47 = vpop.permute.xlu2 %2031 }
0x21a7   :  { %v2034_v49 = vmul.f32 %v2032_v47, %v2015_v61 }
0x21a9   :  { %2056 = vrot.lane.b32.xlu0 %v2034_v49, %s3178_s22 }
0x221b   :  { %v4404_v25 = vpop.permute.xlu0 %2056 }
0x221c   :  { %2709 = vmatmul.msk.f32.vlgmr.msra.gmra.mxu1 %vm261_vm0, %v4404_v25  ;;  %2716 = vmatmul.msk.f32.vlgmr.msra.gmra.mxu2 %vm261_vm0, %v4404_v25 }
0x221d   :  { %2236 = vmatpush.msra.mxu1 %v2962_v27  ;;  %2637 = vmatpush.msra.mxu2 %v4225_v42  ;;  %v2052_v42 = vpop.f32.mrf.mxu0 }
0x221f   :  { %2237 = vmatpush.msra.mxu1 %v2963_v29  ;;  %2638 = vmatpush.msra.mxu2 %v4229_v56 }
0x2221   :  { %2238 = vmatpush.msra.mxu1 %v2964_v1  ;;  %2639 = vmatpush.msra.mxu2 %v4233_v8 }
0x2223   :  { %2239 = vmatpush.msra.mxu1 %v2965_v26  ;;  %2640 = vmatpush.msra.mxu2 %v4237_v10 }
0x2299   :  { %v2077_v5 = vpop.f32.mrf.mxu1 }
0x229a   :  { %v2078_v11 = vadd.f32 %v2077_v5, %v2052_v42 }
0x229c   :  { %v2080_v7 = vadd.f32 %v4243_v63, %v2078_v11 }
0x229e   :  { %2858 = vtanh.f32 %v2080_v7  ;;  %v2710_v48 = vmul.f32 -1.442695, %v2080_v7 }
0x22a0   :  { %2860 = vpow2.f32 %v2710_v48 }
0x22a4   :  { %v2859_v56 = vpop.eup %2858 }
0x22a5   :  { %2103 = vrot.lane.b32.xlu1 %v2859_v56, %s3185_s4 }
0x22a6   :  { %v2861_v21 = vpop.eup %2860 }
0x22a7   :  { %v2084_v8 = vadd.f32 1.0, %v2861_v21 }
0x22a9   :  { %2862 = vrcp.f32 %v2084_v8  ;;  %v2096_v10 = vand.u32 2147483648, %v2084_v8  ;;  %vm2090_vm11 = vweird.f32 %v2084_v8  ;;  %v2094_v57 = vand.u32 2147483647, %v2084_v8 }
0x22ab   :  { %v2097_v31 = vor.u32 1.1754944e-38, %v2096_v10  ;;  %vm2095_vm13 = vcmp.eq.f32.partialorder %v2094_v57, 8.507059e+37 }
0x22af   :  { %v2863_v23 = vpop.eup %2862 }
0x22b0   :  { %v2086_v60 = vmul.f32 %v2863_v23, %v2084_v8  ;;  %vm2091_vm10 = vweird.f32 %v2863_v23 }
0x22b1   :  { %vm2092_vm12 = vmor %vm2090_vm11, %vm2091_vm10 }
0x22b2   :  { %v2087_v0 = vsub.f32 1.0, %v2086_v60 }
0x22b4   :  { %v2088_v3 = vmul.f32 %v2863_v23, %v2087_v0 }
0x22b6   :  { %v2089_v59 = vadd.f32 %v2863_v23, %v2088_v3 }
0x22b8   :  { %v2093_v63 = vsel %vm2092_vm12, %v2863_v23, %v2089_v59 }
0x22b9   :  { %v2098_v16 = vsel %vm2095_vm13, %v2097_v31, %v2093_v63 }
0x22ba   :  { %v2101_v4 = vmul.f32 %v2098_v16, %v4249_v40 }
0x2317   :  { %v2104_v37 = vpop.permute.xlu1 %2103 }
0x2318   :  { %v2106_v18 = vmul.f32 %v2104_v37, %v2098_v16 }
0x231a   :  { %2108 = vrot.lane.b32.xlu2 %v2106_v18, %s3178_s22  ;;  %v2714_v18 = vld [vmem:[%s4585_s13 + $0x4] sm:$0x1] }
0x2374   :  { %v2109_v9 = vpop.permute.xlu2 %2108 }
0x2375   :  { %v4430_v2 = vadd.f32 %v2109_v9, %v2101_v4 }
0x2377   :  { %2864 = vtanh.f32 %v4430_v2 }
0x237d   :  { %v2865_v19 = vpop.eup %2864 }
0x237e   :  { %2114 = vrot.lane.b32.xlu0 %v2865_v19, %s3185_s4 }
0x23f0   :  { %v2115_v58 = vpop.permute.xlu0 %2114 }
0x23f1   :  { %v2117_v45 = vmul.f32 %v2115_v58, %v2098_v16 }
0x23f3   :  { %2119 = vrot.lane.b32.xlu1 %v2117_v45, %s3178_s22 }
0x2465   :  { %v2120_v22 = vpop.permute.xlu1 %2119 }
0x2466   :  { %2711 = vmatmul.msk.f32.vlgmr.msrb.gmra.mxu0 %vm261_vm0, %v2120_v22 }
0x24e3   :  { %v2140_v20 = vpop.f32.mrf.mxu0 }
0x24e4   :  { %v2141_v33 = vadd.f32 %v4272_v15, %v2140_v20 }
0x24e6   :  { %2866 = vtanh.f32 %v2141_v33 }
0x24ec   :  { %v2867_v40 = vpop.eup %2866 }
0x24ed   :  { %2712 = vmatmul.msk.f32.vlgmr.msrb.gmra.mxu1 %vm261_vm0, %v2867_v40 }
0x24ee   :  { %2525 = vmatpush.msrb.mxu1 %v4276_v38 }
0x24f0   :  { %2526 = vmatpush.msrb.mxu1 %v4279_v39 }
0x24f2   :  { %2527 = vmatpush.msrb.mxu1 %v4282_v41 }
0x24f4   :  { %2528 = vmatpush.msrb.mxu1 %v4285_v43 }
0x24f5   :  { %2715 = vmatmul.msk.f32.vlgmr.msra.gmra.mxu1 %vm261_vm0, %v4404_v25 }
0x24f6   :  { %2613 = vmatpush.msra.mxu1 %v4290_v44 }
0x24f8   :  { %2614 = vmatpush.msra.mxu1 %v4293_v62 }
0x24fa   :  { %2615 = vmatpush.msra.mxu1 %v4296_v52 }
0x24fc   :  { %2616 = vmatpush.msra.mxu1 %v4299_v17 }
0x24fd   :  { %2719 = vmatmul.msk.f32.vlgmr.msrb.gmra.mxu1 %vm261_vm0, %v2120_v22 }
0x256a   :  { %v2164_v15 = vpop.f32.mrf.mxu1 }
0x256b   :  { %v2165_v38 = vadd.f32 %v4322_v51, %v2164_v15 }
0x256d   :  { %2168 = vst [vmem:[#allocation14 + $0x8] sm:$0x3] %v2165_v38  ;;  %v2169_v51 = vsel %vm734_vm15, %v2165_v38, -inf }
0x2572   :  { %v2241_v39 = vpop.f32.mrf.mxu1 }
0x2573   :  { %v2245_v41 = vrot.slane %v2241_v39, 1  ;;  %v2246_v43 = vperm.slane %v2241_v39, 0 }
0x2575   :  { %v2247_v12 = vperm.slane %v2245_v41, 0  ;;  %2335 = vrot.lane.b32.xlu1 %v2246_v43, %s3183_s0  ;;  %v2250_v44 = vmul.f32 %v4366_v46, %v2246_v43 }
0x2577   :  { %v2252_v62 = vsel %vm261_vm0, %v2250_v44, 0.0  ;;  %v2251_v52 = vmul.f32 %v4362_v6, %v2247_v12 }
0x2578   :  { %2253 = vadd.xlane.f32.xlu2 %v2252_v62 }
0x2579   :  { %v2255_v17 = vsel %vm261_vm0, %v2251_v52, 0.0 }
0x257a   :  { %2256 = vadd.xlane.f32.xlu0 %v2255_v17 }
0x257d   :  { %2337 = vrot.lane.b32.xlu1 %v2247_v12, %s3183_s0 }
0x2582   :  { %2170 = vmax.xlane.f32.xlu0 %v2169_v51 }
0x25e7   :  { %v2336_v32 = vpop.permute.xlu1 %2335 }
0x25e8   :  { %v2341_v25 = vmul.f32 %v4375_v55, %v2336_v32 }
0x25ea   :  { %v2343_v27 = vsel %vm403_vm1, %v2341_v25, 0.0 }
0x25eb   :  { %v2254_v61 = vpop.xlane.xlu2 %2253 }
0x25ec   :  { %v2258_v14 = vadd.f32 %v2254_v61, %v3377_v24 }
0x25ed   :  { %v2257_v30 = vpop.xlane.xlu0 %2256 }
0x25ee   :  { %2263 = vperm.xlu1 %2742, %v2258_v14   ;;  %v2259_v49 = vadd.f32 %v2257_v30, %v3381_v28 }
0x25ef   :  { %v2338_v34 = vpop.permute.xlu1 %2337 }
0x25f0   :  { %v2342_v54 = vmul.f32 %v4381_v13, %v2338_v34 }
0x25f2   :  { %v2346_v47 = vsel %vm403_vm1, %v2342_v54, 0.0 }
0x25f3   :  { %2347 = vadd.xlane.f32.xlu2 %v2346_v47 }
0x25f5   :  { %v2171_v1 = vpop.xlane.xlu0 %2170 }
0x25f6   :  { %2266 = vperm.xlu1 %2742, %v2259_v49   ;;  %vm2172_vm14 = vcmp.eq.f32.partialorder %v2165_v38, %v2171_v1 }
0x25f7   :  { %v2173_v26 = vsel %vm2172_vm14, %v3391_v36, 128 }
0x25f8   :  { %v2174_v28 = vsel %vm734_vm15, %v2173_v26, 2147483647  ;;  %vm2194_vm15 = vcmp.gt.f32.partialorder %v2714_v18, 0.0 }
0x25f9   :  { %v2176_v56 = vshra.s32 %v2174_v28, 16  ;;  %v2197_v19 = vsel %vm2194_vm15, 1, %v4586_v35  ;;  %v2175_v43 = vand.u32 65535, %v2174_v28 }
0x25fa   :  { %v2198_v58 = vperm.slane %v2197_v19, 0 }
0x25fb   :  { %v2178_v48 = vcvt.s32.f32 %v2176_v56  ;;  %v2177_v44 = vcvt.s32.f32 %v2175_v43 }
0x2620   :  { %2344 = vadd.xlane.f32.xlu1 %v2343_v27 }
0x2660   :  { %v2264_v29 = vpop.permute.xlu1 %2263 }
0x2661   :  { %v2268_v42 = vperm.slane %v2264_v29, %v3391_v36 }
0x2666   :  { %v2348_v21 = vpop.xlane.xlu2 %2347 }
0x2667   :  { %v2352_v23 = vperm.slane %v2348_v21, %v3391_v36 }
0x2668   :  { %v2267_v24 = vpop.permute.xlu1 %2266 }
0x2669   :  { %v2269_v5 = vperm.slane %v2267_v24, %v3391_v36 }
0x266b   :  { %v2270_v11 = vsel %vm328_vm2, %v2269_v5, %v2268_v42  ;;  %v2196_v42 = vld [vmem:[#allocation2 + $0x8] sm:$0x3] }
0x266c   :  { %v2272_v7 = vsel %vm331_vm3, %v2270_v11, -inf }
0x266d   :  { %2273 = vmax.xlane.f32.xlu2 %v2272_v7 }
0x2675   :  { %2179 = vmin.xlane.f32.xlu2 %v2178_v48 }
0x2693   :  { %v2345_v8 = vpop.xlane.xlu1 %2344 }
0x2694   :  { %v2351_v60 = vperm.slane %v2345_v8, %v3391_v36 }
0x2696   :  { %v2353_v0 = vsel %vm328_vm2, %v2352_v23, %v2351_v60 }
0x2697   :  { %v2355_v3 = vsel %vm416_vm4, %v2353_v0, -inf }
0x2698   :  { %2356 = vmax.xlane.f32.xlu0 %v2355_v3 }
0x26e0   :  { %v2274_v59 = vpop.xlane.xlu2 %2273 }
0x26e1   :  { %v2276_v10 = vperm.slane %v2274_v59, 0  ;;  %v2277_v57 = vperm.slane %v2274_v59, 1 }
0x26e3   :  { %v2280_v63 = vsub.f32 %v2258_v14, %v2276_v10  ;;  %v2281_v31 = vsub.f32 %v2259_v49, %v2277_v57 }
0x26e5   :  { %v2282_v37 = vmul.f32 1.442695, %v2280_v63  ;;  %v2284_v16 = vmul.f32 1.442695, %v2281_v31 }
0x26e7   :  { %2868 = vpow2.f32 %v2282_v37 }
0x26e8   :  { %2870 = vpow2.f32 %v2284_v16  ;;  %v2180_v12 = vpop.xlane.xlu2 %2179 }
0x26e9   :  { %vm2181_vm7 = vcmp.eq.f32.partialorder %v2178_v48, %v2180_v12  ;;  %v2186_v25 = vcvt.f32.s32 %v2180_v12 }
0x26ea   :  { %v2182_v35 = vsel %vm2181_vm7, %v2177_v44, inf }
0x26eb   :  { %v2187_v29 = vshll.u32 %v2186_v25, 16 }
0x26ed   :  { %v2869_v4 = vpop.eup %2868 }
0x26ee   :  { %v2871_v9 = vpop.eup %2870  ;;  %2289 = vperm.xlu0 %2741, %v2869_v4  }
0x26ef   :  { %2292 = vperm.xlu2 %2743, %v2871_v9  }
0x26f7   :  { %2200 = vperm.xlu2 %2743, %v2198_v58  }
0x270b   :  { %v2357_v45 = vpop.xlane.xlu0 %2356 }
0x270c   :  { %v2359_v22 = vperm.slane %v2357_v45, 0  ;;  %v2360_v20 = vperm.slane %v2357_v45, 1 }
0x270e   :  { %v2363_v33 = vsub.f32 %v2345_v8, %v2359_v22  ;;  %v2364_v40 = vsub.f32 %v2348_v21, %v2360_v20 }
0x2710   :  { %v2365_v15 = vmul.f32 1.442695, %v2363_v33  ;;  %v2367_v38 = vmul.f32 1.442695, %v2364_v40 }
0x2712   :  { %2872 = vpow2.f32 %v2365_v15 }
0x2713   :  { %2874 = vpow2.f32 %v2367_v38 }
0x2718   :  { %v2873_v39 = vpop.eup %2872 }
0x2719   :  { %v2875_v41 = vpop.eup %2874  ;;  %2372 = vperm.xlu1 %2742, %v2873_v39  }
0x271a   :  { %2375 = vperm.xlu0 %2741, %v2875_v41  }
0x2744   :  { %2183 = vmin.xlane.f32.xlu0 %v2182_v35 }
0x2749   :  { %v2293_v62 = vpop.permute.xlu2 %2292 }
0x274a   :  { %v2295_v17 = vperm.slane %v2293_v62, %v3391_v36 }
0x2751   :  { %v2201_v24 = vpop.permute.xlu2 %2200 }
0x2752   :  { %vm2202_vm8 = vcmp.eq.s32.totalorder %v2201_v24, 1 }
0x2760   :  { %v2290_v52 = vpop.permute.xlu0 %2289 }
0x2761   :  { %v2294_v51 = vperm.slane %v2290_v52, %v3391_v36 }
0x2763   :  { %v2296_v32 = vsel %vm328_vm2, %v2295_v17, %v2294_v51 }
0x2764   :  { %v2298_v61 = vsel %vm331_vm3, %v2296_v32, 0.0 }
0x2765   :  { %2299 = vadd.xlane.f32.xlu2 %v2298_v61 }
0x278b   :  { %v2373_v14 = vpop.permute.xlu1 %2372 }
0x278c   :  { %v2377_v34 = vperm.slane %v2373_v14, %v3391_v36  ;;  %v2376_v54 = vpop.permute.xlu0 %2375 }
0x278d   :  { %v2378_v30 = vperm.slane %v2376_v54, %v3391_v36 }
0x278f   :  { %v2379_v47 = vsel %vm328_vm2, %v2378_v30, %v2377_v34 }
0x2790   :  { %v2381_v49 = vsel %vm416_vm4, %v2379_v47, 0.0 }
0x2791   :  { %2382 = vadd.xlane.f32.xlu1 %v2381_v49 }
0x27b7   :  { %v2184_v27 = vpop.xlane.xlu0 %2183 }
0x27b8   :  { %v2185_v1 = vcvt.f32.s32 %v2184_v27 }
0x27ba   :  { %v2188_v26 = vadd.s32 %v2187_v29, %v2185_v1  ;;  %v2449_v29 = vpop.f32.mrf.mxu2 }
0x27bc   :  { %vm2189_vm3 = vcmp.eq.s32.totalorder %v3391_v36, %v2188_v26  ;;  %v2966_v26 = vld [vmem:[%s4544_s11] ss:$0 sm:$0xff] }
0x27bd   :  { %v2713_v5 = vsel %vm2189_vm3, 1.0, %v4595_v50 }
0x27be   :  { %v2203_v11 = vsel %vm2202_vm8, %v2196_v42, %v2713_v5 }
0x27bf   :  { %2220 = vmatmul.f32.vlgmr.msra.gmra.mxu0 %v2203_v11 }
0x27d8   :  { %v2300_v28 = vpop.xlane.xlu2 %2299 }
0x27d9   :  { %2876 = vrcp.f32 %v2300_v28 }
0x27df   :  { %v2877_v7 = vpop.eup %2876 }
0x27e0   :  { %v2303_v56 = vperm.slane %v2877_v7, 0  ;;  %v2304_v48 = vperm.slane %v2877_v7, 1 }
0x27e2   :  { %v2308_v21 = vmul.f32 %v2871_v9, %v2304_v48  ;;  %v2307_v8 = vmul.f32 %v2869_v4, %v2303_v56 }
0x27e4   :  { %2316 = vperm.xlu2 %2743, %v2308_v21   ;;  %2311 = vperm.xlu0 %2741, %v2307_v8  }
0x2804   :  { %v2383_v23 = vpop.xlane.xlu1 %2382 }
0x2805   :  { %2878 = vrcp.f32 %v2383_v23 }
0x280b   :  { %v2879_v60 = vpop.eup %2878 }
0x280c   :  { %v2386_v0 = vperm.slane %v2879_v60, 0  ;;  %v2387_v3 = vperm.slane %v2879_v60, 1 }
0x280e   :  { %v2391_v36 = vmul.f32 %v2875_v41, %v2387_v3  ;;  %v2390_v59 = vmul.f32 %v2873_v39, %v2386_v0 }
0x2810   :  { %2399 = vperm.xlu0 %2741, %v2391_v36   ;;  %2394 = vperm.xlu1 %2742, %v2390_v59  }
0x283c   :  { %v2221_v47 = vpop.f32.mrf.mxu0 }
0x283e   :  { %v2317_v50 = vpop.permute.xlu2 %2316 }
0x283f   :  { %v2320_v10 = vmul.f32 %v4362_v6, %v2317_v50 }
0x2841   :  { %v2328_v57 = vsel %vm261_vm0, %v2320_v10, 0.0 }
0x2842   :  { %v2329_v63 = vrot.slane %v2328_v57, 4 }
0x2844   :  { %v2330_v31 = vadd.f32 %v2329_v63, %v2328_v57 }
0x2846   :  { %v2331_v18 = vrot.slane %v2330_v31, 2 }
0x2848   :  { %v2332_v19 = vadd.f32 %v2331_v18, %v2330_v31 }
0x284a   :  { %v2333_v22 = vrot.slane %v2332_v19, 1 }
0x284c   :  { %v2334_v15 = vadd.f32 %v2333_v22, %v2332_v19 }
0x2856   :  { %v2312_v37 = vpop.permute.xlu0 %2311 }
0x2857   :  { %v2319_v16 = vmul.f32 %v4366_v46, %v2312_v37 }
0x2859   :  { %v2321_v4 = vsel %vm261_vm0, %v2319_v16, 0.0 }
0x285a   :  { %v2322_v9 = vrot.slane %v2321_v4, 4 }
0x285c   :  { %v2323_v58 = vadd.f32 %v2322_v9, %v2321_v4  ;;  %v2530_v9 = vpop.f32.mrf.mxu1 }
0x285e   :  { %v2324_v45 = vrot.slane %v2323_v58, 2 }
0x2860   :  { %v2325_v20 = vadd.f32 %v2324_v45, %v2323_v58 }
0x2862   :  { %v2326_v33 = vrot.slane %v2325_v20, 1 }
0x2864   :  { %v2327_v40 = vadd.f32 %v2326_v33, %v2325_v20 }
0x2866   :  { %v2420_v6 = vsel %vm328_vm2, %v2334_v15, %v2327_v40 }
0x2867   :  { %2421 = vrot.lane.b32.xlu0 %v2420_v6, %s3178_s22 }
0x2882   :  { %v2395_v38 = vpop.permute.xlu1 %2394  ;;  %v2400_v39 = vpop.permute.xlu0 %2399 }
0x2883   :  { %v2402_v46 = vmul.f32 %v4375_v55, %v2395_v38  ;;  %v2403_v41 = vmul.f32 %v4381_v13, %v2400_v39 }
0x2885   :  { %v2404_v43 = vsel %vm403_vm1, %v2402_v46, 0.0  ;;  %v2411_v12 = vsel %vm403_vm1, %v2403_v41, 0.0 }
0x2886   :  { %v2405_v44 = vrot.slane %v2404_v43, 4  ;;  %v2412_v35 = vrot.slane %v2411_v12, 4 }
0x2888   :  { %v2406_v62 = vadd.f32 %v2405_v44, %v2404_v43  ;;  %v2413_v52 = vadd.f32 %v2412_v35, %v2411_v12 }
0x288a   :  { %v2407_v17 = vrot.slane %v2406_v62, 2  ;;  %v2414_v51 = vrot.slane %v2413_v52, 2 }
0x288c   :  { %v2408_v32 = vadd.f32 %v2407_v17, %v2406_v62  ;;  %v2415_v61 = vadd.f32 %v2414_v51, %v2413_v52 }
0x288e   :  { %v2409_v14 = vrot.slane %v2408_v32, 1  ;;  %v2416_v34 = vrot.slane %v2415_v61, 1 }
0x2890   :  { %v2410_v54 = vadd.f32 %v2409_v14, %v2408_v32  ;;  %v2417_v30 = vadd.f32 %v2416_v34, %v2415_v61 }
0x2892   :  { %v2426_v55 = vsel %vm328_vm2, %v2417_v30, %v2410_v54 }
0x2893   :  { %2427 = vrot.lane.b32.xlu2 %v2426_v55, %s3185_s4  ;;  %v2968_v55 = vld [vmem:[%s4549_s16] ss:$0 sm:$0xff] }
0x28d9   :  { %v2422_v13 = vpop.permute.xlu0 %2421 }
0x28da   :  { %v2430_v49 = vsel %vm261_vm0, %v2221_v47, %v2422_v13 }
0x28ed   :  { %v2428_v25 = vpop.permute.xlu2 %2427 }
0x28ee   :  { %v2431_v27 = vsel %vm493_vm5, %v2430_v49, %v2428_v25  ;;  %v2969_v49 = vld [vmem:[%s4551_s18] ss:$0 sm:$0xff] }
0x28ef   :  { %2717 = vmatmul.msk.f32.vlgmr.msra.gmra.mxu3 %vm515_vm6, %v2431_v27 }
0x2972   :  { %v2472_v1 = vpop.f32.mrf.mxu3 }
0x2973   :  { %v2473_v24 = vadd.f32 %v2472_v1, %v2449_v29 }
0x2975   :  { %v2475_v42 = vadd.f32 %v2966_v26, %v2473_v24 }
0x2977   :  { %2880 = vtanh.f32 %v2475_v42  ;;  %v2718_v11 = vmul.f32 -1.442695, %v2475_v42 }
0x2979   :  { %2882 = vpow2.f32 %v2718_v11 }
0x297d   :  { %v2881_v5 = vpop.eup %2880 }
0x297e   :  { %2498 = vrot.lane.b32.xlu0 %v2881_v5, %s3185_s4 }
0x297f   :  { %v2883_v28 = vpop.eup %2882 }
0x2980   :  { %v2479_v7 = vadd.f32 1.0, %v2883_v28 }
0x2982   :  { %2884 = vrcp.f32 %v2479_v7  ;;  %v2491_v60 = vand.u32 2147483648, %v2479_v7  ;;  %vm2485_vm2 = vweird.f32 %v2479_v7  ;;  %v2489_v0 = vand.u32 2147483647, %v2479_v7 }
0x2984   :  { %v2492_v36 = vor.u32 1.1754944e-38, %v2491_v60  ;;  %vm2490_vm5 = vcmp.eq.f32.partialorder %v2489_v0, 8.507059e+37 }
0x2988   :  { %v2885_v56 = vpop.eup %2884 }
0x2989   :  { %v2481_v48 = vmul.f32 %v2885_v56, %v2479_v7  ;;  %vm2486_vm1 = vweird.f32 %v2885_v56 }
0x298a   :  { %vm2487_vm4 = vmor %vm2485_vm2, %vm2486_vm1 }
0x298b   :  { %v2482_v21 = vsub.f32 1.0, %v2481_v48 }
0x298d   :  { %v2483_v8 = vmul.f32 %v2885_v56, %v2482_v21 }
0x298f   :  { %v2484_v23 = vadd.f32 %v2885_v56, %v2483_v8 }
0x2991   :  { %v2488_v3 = vsel %vm2487_vm4, %v2885_v56, %v2484_v23 }
0x2992   :  { %v2493_v50 = vsel %vm2490_vm5, %v2492_v36, %v2488_v3 }
0x2993   :  { %v2496_v57 = vmul.f32 %v2493_v50, %v4399_v53  ;;  %v2967_v53 = vld [vmem:[%s4547_s14] ss:$0 sm:$0xff] }
0x29f0   :  { %v2499_v59 = vpop.permute.xlu0 %2498 }
0x29f1   :  { %v2501_v10 = vmul.f32 %v2499_v59, %v2493_v50 }
0x29f3   :  { %2503 = vrot.lane.b32.xlu2 %v2501_v10, %s3178_s22 }
0x2a4d   :  { %v2504_v63 = vpop.permute.xlu2 %2503 }
0x2a4e   :  { %v2506_v31 = vadd.f32 %v2504_v63, %v2496_v57 }
0x2a50   :  { %2886 = vtanh.f32 %v2506_v31 }
0x2a56   :  { %v2887_v37 = vpop.eup %2886 }
0x2a57   :  { %2509 = vrot.lane.b32.xlu1 %v2887_v37, %s3185_s4 }
0x2ac9   :  { %v2510_v16 = vpop.permute.xlu1 %2509 }
0x2aca   :  { %v2512_v18 = vmul.f32 %v2510_v16, %v2493_v50 }
0x2acc   :  { %2534 = vrot.lane.b32.xlu0 %v2512_v18, %s3178_s22 }
0x2b3e   :  { %v2535_v4 = vpop.permute.xlu0 %2534 }
0x2b3f   :  { %2720 = vmatmul.msk.f32.vlgmr.msrb.gmra.mxu2 %vm261_vm0, %v2535_v4 }
0x2bc2   :  { %v2555_v19 = vpop.f32.mrf.mxu2 }
0x2bc3   :  { %v2556_v58 = vadd.f32 %v2555_v19, %v2530_v9 }
0x2bc5   :  { %v2558_v45 = vadd.f32 %v2967_v53, %v2556_v58 }
0x2bc7   :  { %2888 = vtanh.f32 %v2558_v45  ;;  %v2721_v20 = vmul.f32 -1.442695, %v2558_v45 }
0x2bc9   :  { %2890 = vpow2.f32 %v2721_v20 }
0x2bcd   :  { %v2889_v22 = vpop.eup %2888 }
0x2bce   :  { %2581 = vrot.lane.b32.xlu2 %v2889_v22, %s3185_s4 }
0x2bcf   :  { %v2891_v33 = vpop.eup %2890 }
0x2bd0   :  { %v2562_v40 = vadd.f32 1.0, %v2891_v33 }
0x2bd2   :  { %2892 = vrcp.f32 %v2562_v40  ;;  %v2574_v41 = vand.u32 2147483648, %v2562_v40  ;;  %vm2568_vm9 = vweird.f32 %v2562_v40  ;;  %v2572_v43 = vand.u32 2147483647, %v2562_v40 }
0x2bd4   :  { %v2575_v44 = vor.u32 1.1754944e-38, %v2574_v41  ;;  %vm2573_vm11 = vcmp.eq.f32.partialorder %v2572_v43, 8.507059e+37 }
0x2bd8   :  { %v2893_v15 = vpop.eup %2892 }
0x2bd9   :  { %v2564_v6 = vmul.f32 %v2893_v15, %v2562_v40  ;;  %vm2569_vm6 = vweird.f32 %v2893_v15 }
0x2bda   :  { %vm2570_vm10 = vmor %vm2568_vm9, %vm2569_vm6 }
0x2bdb   :  { %v2565_v38 = vsub.f32 1.0, %v2564_v6 }
0x2bdd   :  { %v2566_v39 = vmul.f32 %v2893_v15, %v2565_v38 }
0x2bdf   :  { %v2567_v46 = vadd.f32 %v2893_v15, %v2566_v39 }
0x2be1   :  { %v2571_v12 = vsel %vm2570_vm10, %v2893_v15, %v2567_v46 }
0x2be2   :  { %v2576_v62 = vsel %vm2573_vm11, %v2575_v44, %v2571_v12 }
0x2be3   :  { %v2579_v17 = vmul.f32 %v2576_v62, %v4430_v2 }
0x2c28   :  { %v2582_v35 = vpop.permute.xlu2 %2581 }
0x2c29   :  { %v2584_v52 = vmul.f32 %v2582_v35, %v2576_v62 }
0x2c2b   :  { %2586 = vrot.lane.b32.xlu1 %v2584_v52, %s3178_s22 }
0x2c9d   :  { %v2587_v51 = vpop.permute.xlu1 %2586 }
0x2c9e   :  { %v2589_v32 = vadd.f32 %v2587_v51, %v2579_v17 }
0x2ca0   :  { %2894 = vtanh.f32 %v2589_v32 }
0x2ca6   :  { %v2895_v61 = vpop.eup %2894 }
0x2ca7   :  { %2592 = vrot.lane.b32.xlu0 %v2895_v61, %s3185_s4 }
0x2d19   :  { %v2593_v14 = vpop.permute.xlu0 %2592 }
0x2d1a   :  { %v2595_v34 = vmul.f32 %v2593_v14, %v2576_v62 }
0x2d1c   :  { %2597 = vrot.lane.b32.xlu2 %v2595_v34, %s3178_s22 }
0x2d76   :  { %v2598_v54 = vpop.permute.xlu2 %2597 }
0x2d77   :  { %2722 = vmatmul.msk.f32.vlgmr.msra.gmra.mxu1 %vm261_vm0, %v2598_v54 }
0x2df4   :  { %v2618_v30 = vpop.f32.mrf.mxu1 }
0x2df5   :  { %v2619_v13 = vadd.f32 %v2968_v55, %v2618_v30 }
0x2df7   :  { %2896 = vtanh.f32 %v2619_v13 }
0x2dfd   :  { %v2897_v2 = vpop.eup %2896 }
0x2dfe   :  { %2723 = vmatmul.msk.f32.vlgmr.msra.gmra.mxu2 %vm261_vm0, %v2897_v2 }
0x2e81   :  { %v2642_v47 = vpop.f32.mrf.mxu2 }
0x2e82   :  { %v2643_v25 = vadd.f32 %v2969_v49, %v2642_v47 }
0x2e84   :  { %2646 = vst [vmem:[#allocation14 + $0xa] sm:$0x3] %v2643_v25 }
0x2e85   :  { %2659 = dma.vmem_to_hbm [thread:$0]  %s2652_s9, 192, %s2654_s27, [#allocation4], %s3178_s22, %s3178_s22, %s3179_s26  }
0x2e86   :  { %3170 = dma.done.wait [#allocation4], 192  }
0x2e87   :  { %3171 = vsyncadd [#allocation4], 4294967104 }
0x2e88   :  { %2664 = vsyncpa [#allocation3], 1 }
0x2e89   :  { %2665 = vsyncpa [#allocation6], 1 }
0x2e8a   :  { %2666 = vsyncpa [#allocation9], 1 }
0x2e8b   :  { %2667 = vsyncpa [#allocation12], 1 }
0x2e8c   :  { %2668 = vsyncpa [#allocation4], 1 }

</bundles_post_ra>
